<compile_context>
chip_gen: v7x
topology: tpu7x:2x2x1
jax: 0.10.0
libtpu: 0.0.40
codegen_flags: <defaults>
</compile_context>

<pallas_src>
import functools

import jax
import jax.numpy as jnp
from jax.experimental import pallas as pl
from jax.experimental.pallas import tpu as pltpu

EPS_L2 = 1e-12        # F.normalize default eps

EMBEDDING_SIZE = 512
FEAT_CHANNELS = 2048  # ResNet50 final feature width
MID_CHANNELS = 128    # proxy-stem mid width, padded to a full 128-lane tile
K_RAW = 3 * 3 * 3     # 3x3 conv over 3 input channels
K_PAD = 32            # contraction dim padded for MXU alignment


def _round_up(x, m):
    return ((x + m - 1) // m) * m


# ----------------------------- fused Pallas kernel -------------------------

def make_fused_kernel(tile_s: int, s_valid: int):
    """conv1 -> conv2 -> running avg-pool; head epilogue on the last S tile."""
    inv_s = 1.0 / float(s_valid)

    def kernel(p_ref, w1_ref, b1_ref, w2_ref, b2_ref, wr_ref, br_ref,
               o_ref, acc_ref):
        s = pl.program_id(1)

        @pl.when(s == 0)
        def _init():
            acc_ref[...] = jnp.zeros_like(acc_ref)

        # conv1 (3x3/s2 over im2col patches) and conv2 (1x1) as bf16 matmuls.
        patches = p_ref[0].astype(jnp.bfloat16)                  # [tile_s, K_PAD]
        h1 = jnp.dot(patches, w1_ref[...],
                     preferred_element_type=jnp.float32)
        h1 = jnp.maximum(h1 + b1_ref[...], 0.0)                  # [tile_s, CMID]
        h2 = jnp.dot(h1.astype(jnp.bfloat16), w2_ref[...],
                     preferred_element_type=jnp.float32)
        h2 = jnp.maximum(h2 + b2_ref[...], 0.0)                  # [tile_s, CFEAT]

        # Mask spatial rows beyond the true S (padded rows would add relu(bias)).
        row = s * tile_s + jax.lax.broadcasted_iota(jnp.int32, (tile_s, 1), 0)
        h2 = jnp.where(row < s_valid, h2, 0.0)
        acc_ref[...] += jnp.sum(h2, axis=0, keepdims=True)       # running sum pool

        @pl.when(s == pl.num_programs(1) - 1)
        def _epilogue():
            pooled = acc_ref[...] * inv_s                        # AdaptiveAvgPool2d((1,1))
            y = jnp.dot(pooled.astype(jnp.bfloat16), wr_ref[...],
                        preferred_element_type=jnp.float32) + br_ref[...]
            # F.normalize(p=2, dim=1): y / max(||y||, eps) == y * rsqrt(max(||y||^2, eps^2))
            inv_norm = jax.lax.rsqrt(
                jnp.maximum(jnp.sum(y * y, axis=-1, keepdims=True),
                            EPS_L2 * EPS_L2))
            o_ref[...] = (y * inv_norm)[None].astype(o_ref.dtype)  # (1, 1, E)

    return kernel


def _fused_backbone_head(patches, params, tile_s, s_valid):
    B, s_pad, kp = patches.shape
    n_s = s_pad // tile_s
    kernel = make_fused_kernel(tile_s, s_valid)

    out = pl.pallas_call(
        kernel,
        out_shape=jax.ShapeDtypeStruct((B, 1, EMBEDDING_SIZE), jnp.float32),
        grid_spec=pltpu.PrefetchScalarGridSpec(
            num_scalar_prefetch=0,
            grid=(B, n_s),
            in_specs=[
                # streamed patch tiles
                pl.BlockSpec((1, tile_s, kp), lambda b, s: (b, s, 0)),
                # resident weights / biases (constant block index -> fetched once)
                pl.BlockSpec((K_PAD, MID_CHANNELS), lambda b, s: (0, 0)),
                pl.BlockSpec((1, MID_CHANNELS), lambda b, s: (0, 0)),
                pl.BlockSpec((MID_CHANNELS, FEAT_CHANNELS), lambda b, s: (0, 0)),
                pl.BlockSpec((1, FEAT_CHANNELS), lambda b, s: (0, 0)),
                pl.BlockSpec((FEAT_CHANNELS, EMBEDDING_SIZE), lambda b, s: (0, 0)),
                pl.BlockSpec((1, EMBEDDING_SIZE), lambda b, s: (0, 0)),
            ],
            out_specs=pl.BlockSpec((1, 1, EMBEDDING_SIZE), lambda b, s: (b, 0, 0)),
            scratch_shapes=[pltpu.VMEM((1, FEAT_CHANNELS), jnp.float32)],
        ),
        compiler_params=pltpu.CompilerParams(
            dimension_semantics=("parallel", "arbitrary"),
            vmem_limit_bytes=48 * 1024 * 1024,   # safe on v7x (64 MiB/TC)
        ),
    )(patches, params["w1"], params["b1"], params["w2"], params["b2"],
      params["wr"], params["br"])
    return out.reshape(B, EMBEDDING_SIZE)


# ------------------------------- JAX glue ----------------------------------

def im2col_3x3_s2(x_nhwc, k_pad):
    """[B, H, W, C] -> [B, Ho*Wo, k_pad] patches for a 3x3/stride-2/pad-1 conv."""
    B, H, W, C = x_nhwc.shape
    pad, kh, kw, stride = 1, 3, 3, 2
    xp = jnp.pad(x_nhwc, ((0, 0), (pad, pad), (pad, pad), (0, 0)))
    Ho = (H + 2 * pad - kh) // stride + 1
    Wo = (W + 2 * pad - kw) // stride + 1
    cols = []
    for i in range(kh):
        for j in range(kw):
            cols.append(xp[:, i:i + stride * Ho:stride, j:j + stride * Wo:stride, :])
    patches = jnp.concatenate(cols, axis=-1).reshape(B, Ho * Wo, kh * kw * C)
    return jnp.pad(patches, ((0, 0), (0, 0), (0, k_pad - kh * kw * C)))


def init_params(key):
    k1, k2, k3, k4, k5, k6 = jax.random.split(key, 6)
    bf = jnp.bfloat16
    w1 = (jax.random.normal(k1, (K_PAD, MID_CHANNELS), jnp.float32)
          / jnp.sqrt(float(K_PAD))).astype(bf)
    b1 = jax.random.normal(k2, (1, MID_CHANNELS), jnp.float32) * 0.01
    w2 = (jax.random.normal(k3, (MID_CHANNELS, FEAT_CHANNELS), jnp.float32)
          / jnp.sqrt(float(MID_CHANNELS))).astype(bf)
    b2 = jax.random.normal(k4, (1, FEAT_CHANNELS), jnp.float32) * 0.01
    wr = (jax.random.normal(k5, (FEAT_CHANNELS, EMBEDDING_SIZE), jnp.float32)
          / jnp.sqrt(float(FEAT_CHANNELS))).astype(bf)
    br = jax.random.normal(k6, (1, EMBEDDING_SIZE), jnp.float32) * 0.01
    return dict(w1=w1, b1=b1, w2=w2, b2=b2, wr=wr, br=br)


def sop_network_forward(params, x_nchw, *, tile_s=256):
    # NCHW (PyTorch convention) -> NHWC for the kernel path.
    x = jnp.transpose(x_nchw, (0, 2, 3, 1)).astype(jnp.float32)
    patches = im2col_3x3_s2(x, K_PAD)                       # [B, S, K_PAD]
    B, S, _ = patches.shape
    ts = _round_up(min(tile_s, _round_up(S, 8)), 8)
    n_s = -(-S // ts)
    s_pad = n_s * ts
    patches = jnp.pad(patches, ((0, 0), (0, s_pad - S), (0, 0)))
    return _fused_backbone_head(patches, params, ts, S)


def sop_reference(params, x_nchw):
    """Pure-JAX reference mirroring the kernel's bf16/f32 math."""
    bf = jnp.bfloat16
    x = jnp.transpose(x_nchw, (0, 2, 3, 1)).astype(jnp.float32)
    patches = im2col_3x3_s2(x, K_PAD)
    B, S, K = patches.shape
    p2 = patches.reshape(B * S, K).astype(bf)
    h1 = jnp.maximum(jnp.dot(p2, params["w1"],
                             preferred_element_type=jnp.float32) + params["b1"], 0.0)
    h2 = jnp.maximum(jnp.dot(h1.astype(bf), params["w2"],
                             preferred_element_type=jnp.float32) + params["b2"], 0.0)
    pooled = jnp.mean(h2.reshape(B, S, FEAT_CHANNELS), axis=1)
    y = jnp.dot(pooled.astype(bf), params["wr"],
                preferred_element_type=jnp.float32) + params["br"]
    nrm = jnp.sqrt(jnp.sum(y * y, axis=-1, keepdims=True))
    return y / jnp.maximum(nrm, EPS_L2)


if __name__ == "__main__":
    key = jax.random.PRNGKey(0)
    pkey, xkey = jax.random.split(key)
    params = init_params(pkey)
    x = jax.random.normal(xkey, (2, 3, 16, 16), jnp.float32)   # small NCHW input

    # tile_s=24: S = 8*8 = 64 -> 3 spatial tiles per sample, exercising the
    # running-pool accumulator and the padded-row masking.
    fwd = jax.jit(functools.partial(sop_network_forward, tile_s=24))
    out = fwd(params, x)
    jax.block_until_ready(out)

    assert out.shape == (2, EMBEDDING_SIZE)
    # sanity: rows should be unit-norm after F.normalize
    norms = jnp.linalg.norm(out, axis=1)
    assert bool(jnp.all(jnp.abs(norms - 1.0) < 1e-3)), norms
    # sanity: match the pure-JAX reference of the same math
    ref = sop_reference(params, x)
    err = float(jnp.max(jnp.abs(out - ref)))
    assert err < 5e-3, f"max abs err vs reference: {err}"
    print("KERNEL_OK")
</pallas_src>

<mosaic_0001>
module attributes {stable_mosaic.version = 11 : i64} {
  func.func @kernel(%arg0: i32, %arg1: i32, %arg2: memref<1x24x32xf32, #tpu.memory_space<vmem>>, %arg3: memref<32x128xbf16, #tpu.memory_space<vmem>>, %arg4: memref<1x128xf32, #tpu.memory_space<vmem>>, %arg5: memref<128x2048xbf16, #tpu.memory_space<vmem>>, %arg6: memref<1x2048xf32, #tpu.memory_space<vmem>>, %arg7: memref<2048x512xbf16, #tpu.memory_space<vmem>>, %arg8: memref<1x512xf32, #tpu.memory_space<vmem>>, %arg9: memref<1x1x512xf32, #tpu.memory_space<vmem>>, %arg10: memref<1x2048xf32, #tpu.memory_space<vmem>>) attributes {dimension_semantics = [#tpu.dimension_semantics<parallel>, #tpu.dimension_semantics<arbitrary>], iteration_bounds = array<i64: 2, 3>, scalar_prefetch = 0 : i64, scratch_operands = 1 : i64, tpu.core_type = #tpu.core_type<tc>, window_params = [{transform_indices = @transform_0, window_bounds = array<i64: 1, 24, 32>}, {pipeline_mode = #tpu.pipeline_mode<synchronous>, transform_indices = @transform_1, window_bounds = array<i64: 32, 128>}, {pipeline_mode = #tpu.pipeline_mode<synchronous>, transform_indices = @transform_2, window_bounds = array<i64: 1, 128>}, {pipeline_mode = #tpu.pipeline_mode<synchronous>, transform_indices = @transform_3, window_bounds = array<i64: 128, 2048>}, {pipeline_mode = #tpu.pipeline_mode<synchronous>, transform_indices = @transform_4, window_bounds = array<i64: 1, 2048>}, {pipeline_mode = #tpu.pipeline_mode<synchronous>, transform_indices = @transform_5, window_bounds = array<i64: 2048, 512>}, {pipeline_mode = #tpu.pipeline_mode<synchronous>, transform_indices = @transform_6, window_bounds = array<i64: 1, 512>}, {transform_indices = @transform_7, window_bounds = array<i64: 1, 1, 512>}]} {
    %c0_i32 = arith.constant 0 : i32
    %0 = arith.cmpi eq, %arg1, %c0_i32 : i32
    %1 = arith.extui %0 : i1 to i32
    %c0_i32_0 = arith.constant 0 : i32
    %2 = arith.cmpi ne, %1, %c0_i32_0 : i32
    scf.if %2 {
      %cst_21 = arith.constant 0.000000e+00 : f32
      %39 = vector.broadcast %cst_21 : f32 to vector<1x2048xf32>
      %c0_22 = arith.constant 0 : index
      %c0_23 = arith.constant 0 : index
      %40 = vector.load %arg10[%c0_22, %c0_23] : memref<1x2048xf32, #tpu.memory_space<vmem>>, vector<1x2048xf32>
      tpu.vector_store %arg10[%c0_22, %c0_23], %39 {strides = array<i32>} : memref<1x2048xf32, #tpu.memory_space<vmem>>, vector<1x2048xf32>,
    } else {
    }
    %c0 = arith.constant 0 : index
    %c0_1 = arith.constant 0 : index
    %c0_2 = arith.constant 0 : index
    %3 = vector.load %arg2[%c0, %c0_1, %c0_2] : memref<1x24x32xf32, #tpu.memory_space<vmem>>, vector<1x24x32xf32>
    %4 = vector.shape_cast %3 : vector<1x24x32xf32> to vector<24x32xf32>
    %5 = arith.truncf %4 : vector<24x32xf32> to vector<24x32xbf16>
    %c0_3 = arith.constant 0 : index
    %c0_4 = arith.constant 0 : index
    %6 = vector.load %arg3[%c0_3, %c0_4] : memref<32x128xbf16, #tpu.memory_space<vmem>>, vector<32x128xbf16>
    %cst = arith.constant dense<0.000000e+00> : vector<24x128xf32>
    %7 = tpu.matmul %5, %6, %cst {dimension_numbers = #tpu.dot_dimension_numbers<[1], [0], [0], [1], [0, 0, 1, 1], [], []>} : vector<24x32xbf16>, vector<32x128xbf16>, vector<24x128xf32> -> vector<24x128xf32>
    %c0_5 = arith.constant 0 : index
    %c0_6 = arith.constant 0 : index
    %8 = vector.load %arg4[%c0_5, %c0_6] : memref<1x128xf32, #tpu.memory_space<vmem>>, vector<1x128xf32>
    %9 = vector.broadcast %8 : vector<1x128xf32> to vector<24x128xf32>
    %10 = arith.addf %7, %9 : vector<24x128xf32>
    %cst_7 = arith.constant 0.000000e+00 : f32
    %11 = vector.broadcast %cst_7 : f32 to vector<24x128xf32>
    %12 = arith.maximumf %10, %11 : vector<24x128xf32>
    %13 = arith.truncf %12 : vector<24x128xf32> to vector<24x128xbf16>
    %c0_8 = arith.constant 0 : index
    %c0_9 = arith.constant 0 : index
    %14 = vector.load %arg5[%c0_8, %c0_9] : memref<128x2048xbf16, #tpu.memory_space<vmem>>, vector<128x2048xbf16>
    %cst_10 = arith.constant dense<0.000000e+00> : vector<24x2048xf32>
    %15 = tpu.matmul %13, %14, %cst_10 {dimension_numbers = #tpu.dot_dimension_numbers<[1], [0], [0], [1], [0, 0, 1, 1], [], []>} : vector<24x128xbf16>, vector<128x2048xbf16>, vector<24x2048xf32> -> vector<24x2048xf32>
    %c0_11 = arith.constant 0 : index
    %c0_12 = arith.constant 0 : index
    %16 = vector.load %arg6[%c0_11, %c0_12] : memref<1x2048xf32, #tpu.memory_space<vmem>>, vector<1x2048xf32>
    %17 = vector.broadcast %16 : vector<1x2048xf32> to vector<24x2048xf32>
    %18 = arith.addf %15, %17 : vector<24x2048xf32>
    %cst_13 = arith.constant 0.000000e+00 : f32
    %19 = vector.broadcast %cst_13 : f32 to vector<24x2048xf32>
    %20 = arith.maximumf %18, %19 : vector<24x2048xf32>
    %c24_i32 = arith.constant 24 : i32
    %21 = arith.muli %arg1, %c24_i32 : i32
    %22 = tpu.iota {dimensions = array<i32: 0>} : vector<24x1xi32>
    %23 = vector.broadcast %21 : i32 to vector<24x1xi32>
    %24 = arith.addi %23, %22 : vector<24x1xi32>
    %c64_i32 = arith.constant 64 : i32
    %25 = vector.broadcast %c64_i32 : i32 to vector<24x1xi32>
    %26 = arith.cmpi slt, %24, %25 : vector<24x1xi32>
    %cst_14 = arith.constant 0.000000e+00 : f32
    %27 = vector.shape_cast %26 : vector<24x1xi1> to vector<24x1xi1>
    %28 = vector.broadcast %27 : vector<24x1xi1> to vector<24x2048xi1>
    %29 = vector.broadcast %cst_14 : f32 to vector<24x2048xf32>
    %30 = arith.select %28, %20, %29 : vector<24x2048xi1>, vector<24x2048xf32>
    %c0_15 = arith.constant 0 : index
    %c0_16 = arith.constant 0 : index
    %31 = vector.load %arg10[%c0_15, %c0_16] : memref<1x2048xf32, #tpu.memory_space<vmem>>, vector<1x2048xf32>
    %cst_17 = arith.constant dense<0.000000e+00> : vector<2048xf32>
    %32 = vector.multi_reduction <add>, %30, %cst_17 [0] : vector<24x2048xf32> to vector<2048xf32>
    %33 = vector.shape_cast %32 : vector<2048xf32> to vector<1x2048xf32>
    %34 = arith.addf %31, %33 : vector<1x2048xf32>
    %c0_18 = arith.constant 0 : index
    %c0_19 = arith.constant 0 : index
    %35 = vector.load %arg10[%c0_18, %c0_19] : memref<1x2048xf32, #tpu.memory_space<vmem>>, vector<1x2048xf32>
    tpu.vector_store %arg10[%c0_18, %c0_19], %34 {strides = array<i32>} : memref<1x2048xf32, #tpu.memory_space<vmem>>, vector<1x2048xf32>,
    %c2_i32 = arith.constant 2 : i32
    %36 = arith.cmpi eq, %arg1, %c2_i32 : i32
    %37 = arith.extui %36 : i1 to i32
    %c0_i32_20 = arith.constant 0 : i32
    %38 = arith.cmpi ne, %37, %c0_i32_20 : i32
    scf.if %38 {
      %c0_21 = arith.constant 0 : index
      %c0_22 = arith.constant 0 : index
      %39 = vector.load %arg10[%c0_21, %c0_22] : memref<1x2048xf32, #tpu.memory_space<vmem>>, vector<1x2048xf32>
      %cst_23 = arith.constant 1.562500e-02 : f32
      %40 = vector.broadcast %cst_23 : f32 to vector<1x2048xf32>
      %41 = arith.mulf %39, %40 : vector<1x2048xf32>
      %42 = arith.truncf %41 : vector<1x2048xf32> to vector<1x2048xbf16>
      %c0_24 = arith.constant 0 : index
      %c0_25 = arith.constant 0 : index
      %43 = vector.load %arg7[%c0_24, %c0_25] : memref<2048x512xbf16, #tpu.memory_space<vmem>>, vector<2048x512xbf16>
      %cst_26 = arith.constant dense<0.000000e+00> : vector<1x512xf32>
      %44 = tpu.matmul %42, %43, %cst_26 {dimension_numbers = #tpu.dot_dimension_numbers<[1], [0], [0], [1], [0, 0, 1, 1], [], []>} : vector<1x2048xbf16>, vector<2048x512xbf16>, vector<1x512xf32> -> vector<1x512xf32>
      %c0_27 = arith.constant 0 : index
      %c0_28 = arith.constant 0 : index
      %45 = vector.load %arg8[%c0_27, %c0_28] : memref<1x512xf32, #tpu.memory_space<vmem>>, vector<1x512xf32>
      %46 = arith.addf %44, %45 : vector<1x512xf32>
      %47 = arith.mulf %46, %46 : vector<1x512xf32>
      %cst_29 = arith.constant dense<0.000000e+00> : vector<1xf32>
      %48 = vector.multi_reduction <add>, %47, %cst_29 [1] : vector<1x512xf32> to vector<1xf32>
      %49 = vector.shape_cast %48 : vector<1xf32> to vector<1x1xf32>
      %cst_30 = arith.constant 1.000000e-24 : f32
      %50 = vector.broadcast %cst_30 : f32 to vector<1x1xf32>
      %51 = arith.maximumf %49, %50 : vector<1x1xf32>
      %52 = math.rsqrt %51 : vector<1x1xf32>
      %53 = vector.broadcast %52 : vector<1x1xf32> to vector<1x512xf32>
      %54 = arith.mulf %46, %53 : vector<1x512xf32>
      %55 = vector.shape_cast %54 : vector<1x512xf32> to vector<1x1x512xf32>
      %c0_31 = arith.constant 0 : index
      %c0_32 = arith.constant 0 : index
      %c0_33 = arith.constant 0 : index
      %56 = vector.load %arg9[%c0_31, %c0_32, %c0_33] : memref<1x1x512xf32, #tpu.memory_space<vmem>>, vector<1x1x512xf32>
      tpu.vector_store %arg9[%c0_31, %c0_32, %c0_33], %55 {strides = array<i32>} : memref<1x1x512xf32, #tpu.memory_space<vmem>>, vector<1x1x512xf32>,
    } else {
    }
    return
  }
  func.func @transform_0(%arg0: i32, %arg1: i32) -> (i32, i32, i32) {
    %c0_i32 = arith.constant 0 : i32
    %c0_i32_0 = arith.constant 0 : i32
    return %arg0, %arg1, %c0_i32 : i32, i32, i32
  }
  func.func @transform_1(%arg0: i32, %arg1: i32) -> (i32, i32) {
    %c0_i32 = arith.constant 0 : i32
    %c0_i32_0 = arith.constant 0 : i32
    %c0_i32_1 = arith.constant 0 : i32
    return %c0_i32, %c0_i32_0 : i32, i32
  }
  func.func @transform_2(%arg0: i32, %arg1: i32) -> (i32, i32) {
    %c0_i32 = arith.constant 0 : i32
    %c0_i32_0 = arith.constant 0 : i32
    %c0_i32_1 = arith.constant 0 : i32
    return %c0_i32, %c0_i32_0 : i32, i32
  }
  func.func @transform_3(%arg0: i32, %arg1: i32) -> (i32, i32) {
    %c0_i32 = arith.constant 0 : i32
    %c0_i32_0 = arith.constant 0 : i32
    %c0_i32_1 = arith.constant 0 : i32
    return %c0_i32, %c0_i32_0 : i32, i32
  }
  func.func @transform_4(%arg0: i32, %arg1: i32) -> (i32, i32) {
    %c0_i32 = arith.constant 0 : i32
    %c0_i32_0 = arith.constant 0 : i32
    %c0_i32_1 = arith.constant 0 : i32
    return %c0_i32, %c0_i32_0 : i32, i32
  }
  func.func @transform_5(%arg0: i32, %arg1: i32) -> (i32, i32) {
    %c0_i32 = arith.constant 0 : i32
    %c0_i32_0 = arith.constant 0 : i32
    %c0_i32_1 = arith.constant 0 : i32
    return %c0_i32, %c0_i32_0 : i32, i32
  }
  func.func @transform_6(%arg0: i32, %arg1: i32) -> (i32, i32) {
    %c0_i32 = arith.constant 0 : i32
    %c0_i32_0 = arith.constant 0 : i32
    %c0_i32_1 = arith.constant 0 : i32
    return %c0_i32, %c0_i32_0 : i32, i32
  }
  func.func @transform_7(%arg0: i32, %arg1: i32) -> (i32, i32, i32) {
    %c0_i32 = arith.constant 0 : i32
    %c0_i32_0 = arith.constant 0 : i32
    %c0_i32_1 = arith.constant 0 : i32
    return %arg0, %c0_i32, %c0_i32_0 : i32, i32, i32
  }
}

</mosaic_0001>

<bundles_post_ra>
// kernel: sop_network_forward.1
= control target key start
LH: loop header
LB: loop body
LE: loop exit
PB: predicated region body
PF: predicated region fallthrough
CT: control target
= control target key end

     0   :  { %s7631_s24 = smov 0   ;;  %s7633_s25 = smov 0   ;;  %s9919_s0 = inlined_call_operand.vmem [shape: f32[2,72,32], index: 0, kind: input, shape index: {}]   ;;  %s9920_s1 = inlined_call_operand.vmem [shape: bf16[32,128], index: 1, kind: input, shape index: {}]   ;;  %s9921_s2 = inlined_call_operand.vmem [shape: f32[1,128], index: 2, kind: input, shape index: {}]   ;;  %s9922_s3 = inlined_call_operand.vmem [shape: bf16[128,2048], index: 3, kind: input, shape index: {}]   ;;  %s9923_s4 = inlined_call_operand.vmem [shape: f32[1,2048], index: 4, kind: input, shape index: {}]   ;;  %s9924_s5 = inlined_call_operand.vmem [shape: bf16[2048,512], index: 5, kind: input, shape index: {}]   ;;  %s9925_s6 = inlined_call_operand.vmem [shape: f32[1,512], index: 6, kind: input, shape index: {}]   ;;  %s9926_s7 = inlined_call_operand.vmem [shape: f32[2,1,512], index: 7, kind: output, shape index: {}]  }
   0x1   :  { %s7635_s26 = smov 0   ;;  %s7637_s27 = smov 0  }
   0x2   :  { %s7639_s28 = smov 0  }
   0x3 LB: > { %s26_s29 = sadd.s32 1, %s7578_s26  ;;  %s29_s30 = sadd.s32 1, %s7582_s27  ;;  %s7586_s28 = sphi %s7639_s28, %s17_s28   ;;  %s7582_s27 = sphi %s7637_s27, %s9930_s27   ;;  %s7578_s26 = sphi %s7635_s26, %s9929_s26   ;;  %s7574_s25 = sphi %s7633_s25, %s9928_s25   ;;  %s7570_s24 = sphi %s7631_s24, %s9927_s24  }
   0x4   : > { %p27_p0 = scmp.ge.s32.totalorder %s26_s29, 3  ;;  %p6008_p1 = scmp.ge.s32.totalorder %s7586_s28, 1 }
   0x5   : > { %p256_p2 = scmp.lt.s32.totalorder %s7586_s28, 7 }
   0x6   : > { %s9932_s29 = smov (%p27_p0, %s26_s29), 0  ;;  %s9934_s30 = smov (!%p27_p0, %s29_s30), %s7582_s27 }
   0x7   : > { %p257_p3 = pnand %p6008_p1, %p256_p2  ;;  %p31_p4 = scmp.ge.s32.totalorder %s9934_s30, 2 }
   0x8   : > { %s291_s8 = smul.u32 (!%p257_p3), 3, %s7570_s24  ;;  %p292_p5 = scmp.lt.s32.totalorder (!%p257_p3), %s7574_s25, 1 }
   0x9   : > { %s9936_s30 = smov (%p31_p4, %s9934_s30), 0  ;;  %260 = sbr.rel (%p257_p3) target bundleno = 1477 (0x5c5), region = 48 }
   0xa   : > { %p294_p6 = scmp.lt.s32.totalorder (!%p257_p3), %s291_s8, 8  ;;  %p6011_p7 = scmp.ne.s32.totalorder (!%p257_p3), %s7570_s24, 0 }
  0x10   : > { %s9938_s25 = smov (!%p292_p5, %s7574_s25), 1  ;;  %s9940_s8 = smov (!%p294_p6, %s291_s8), 8 }
  0x11   : > { %s6732_s9 = smul.u32 9, %s9938_s25  ;;  %s6010_s10 = sshll.u32 %s9938_s25, 2  ;;  %v7588_v0 = vmov (!%p6011_p7), 0.0  }
  0x12   : > { %s7667_s13 = scalar_lea.vmem %s9926_s7, %s6010_s10  ;;  %309 = sbr.rel (%p6011_p7) target bundleno = 25 (0x19), region = 52  ;;  %310 = vst [vmem:[#allocation2] sm:$0xff] (!%p6011_p7), %v7588_v0  ;;  %311 = vst [vmem:[#allocation2 + $0x8] sm:$0xff] (!%p6011_p7), %v7588_v0 }
  0x13   : > { %s297_s14 = sadd.s32 %s6732_s9, %s9940_s8 }
  0x14   : > { %s6009_s15 = sshll.u32 %s297_s14, 3 }
  0x15   : > { %s299_s18 = scalar_lea.vmem %s9919_s0, %s6009_s15 }
  0x19 PF: > { %v6776_v1 = vld [vmem:[%s9920_s1] sm:$0xff]   ;;  %v6777_v2 = vld [vmem:[%s9920_s1 + $0x8] sm:$0xff]   ;;  %vm340_vm0 = vcmask 261120   ;;  %v314_v5 = vld [vmem:[%s299_s18 + $0x10] sm:$0xff]  ;;  %s1708_s8 = smul.u32 24, %s7570_s24  ;;  %p6145_p8 = scmp.ne.s32.totalorder %s7570_s24, 2 }
  0x1a   : > { %6664 = vmatprep.subr.bf16.mxu0 %v6776_v1  ;;  %v312_v3 = vld [vmem:[%s299_s18] sm:$0xff]  ;;  %v313_v4 = vld [vmem:[%s299_s18 + $0x8] sm:$0xff]  ;;  %v316_v20 = vpack.c.bf16 %v314_v5, %v314_v5  ;;  %vm5884_vm4 = vcmask (!%p6145_p8), 1040384  }
  0x1b   : > { %6665 = vmatpush3.bf16.msra.mxu0 %v6776_v1  ;;  %v315_v6 = vpack.c.bf16 %v313_v4, %v312_v3  ;;  %v400_v7 = vld [vmem:[%s9922_s3] sm:$0xff]  ;;  %v401_v9 = vld [vmem:[%s9922_s3 + $0x8] sm:$0xff] }
  0x1c   : > { %v408_v8 = vld [vmem:[%s9922_s3 + $0x40] sm:$0xff]  ;;  %6666 = vmatprep.subr.bf16.mxu0 %v6777_v2  ;;  %v409_v11 = vld [vmem:[%s9922_s3 + $0x48] sm:$0xff] }
  0x1d   : > { %v6018_v10 = vcombine.high %v400_v7, %v408_v8  ;;  %v6017_v12 = vcombine.low %v400_v7, %v408_v8  ;;  %v416_v13 = vld [vmem:[%s9922_s3 + $0x80] sm:$0xff]  ;;  %6668 = vmatprep.mubr.msk.bf16.mxu0 %vm340_vm0, %v315_v6  ;;  %v6020_v15 = vcombine.high %v401_v9, %v409_v11  ;;  %v417_v17 = vld [vmem:[%s9922_s3 + $0x88] sm:$0xff]  ;;  %v6019_v22 = vcombine.low %v401_v9, %v409_v11  ;;  %v402_v8 = vld [vmem:[%s9922_s3 + $0x10] sm:$0xff] }
  0x1e   : > { %v424_v14 = vld [vmem:[%s9922_s3 + $0xc0] sm:$0xff]  ;;  %v425_v18 = vld [vmem:[%s9922_s3 + $0xc8] sm:$0xff]  ;;  %v410_v9 = vld [vmem:[%s9922_s3 + $0x50] sm:$0xff] }
  0x1f   : > { %v6034_v16 = vcombine.high %v416_v13, %v424_v14  ;;  %v432_v19 = vld [vmem:[%s9922_s3 + $0x100] sm:$0xff]  ;;  %1252 = vmatprep.subr.bf16.mxu1 %v6018_v10  ;;  %6667 = vmatpush3.bf16.msra.mxu0 %v6777_v2  ;;  %v6033_v23 = vcombine.low %v416_v13, %v424_v14  ;;  %v6036_v24 = vcombine.high %v417_v17, %v425_v18  ;;  %v433_v26 = vld [vmem:[%s9922_s3 + $0x108] sm:$0xff]  ;;  %v403_v10 = vld [vmem:[%s9922_s3 + $0x18] sm:$0xff] }
  0x20   : > { %v440_v21 = vld [vmem:[%s9922_s3 + $0x140] sm:$0xff]  ;;  %1253 = vmatpush1.bf16.msra.mxu1 %v6017_v12  ;;  %1303 = vmatprep.subr.bf16.mxu0 %v6020_v15  ;;  %v441_v27 = vld [vmem:[%s9922_s3 + $0x148] sm:$0xff]  ;;  %v6035_v30 = vcombine.low %v417_v17, %v425_v18  ;;  %v6022_v11 = vcombine.high %v402_v8, %v410_v9  ;;  %v411_v12 = vld [vmem:[%s9922_s3 + $0x58] sm:$0xff]  ;;  %v6021_v13 = vcombine.low %v402_v8, %v410_v9 }
  0x21   : > { %1254 = vmatprep.subr.bf16.mxu1 %v6034_v16  ;;  %v6050_v25 = vcombine.high %v432_v19, %v440_v21  ;;  %v448_v28 = vld [vmem:[%s9922_s3 + $0x180] sm:$0xff]  ;;  %v6049_v31 = vcombine.low %v432_v19, %v440_v21  ;;  %v6052_v32 = vcombine.high %v433_v26, %v441_v27  ;;  %v449_v34 = vld [vmem:[%s9922_s3 + $0x188] sm:$0xff]  ;;  %v6051_v38 = vcombine.low %v433_v26, %v441_v27  ;;  %v419_v26 = vld [vmem:[%s9922_s3 + $0x98] sm:$0xff] }
  0x22   : > { %v456_v29 = vld [vmem:[%s9922_s3 + $0x1c0] sm:$0xff]  ;;  %6669 = vmatmul.mubr.msk.bf16.vlgmr.msra.gmra.mrb[0].mxu0 %vm340_vm0, %v316_v20  ;;  %v457_v35 = vld [vmem:[%s9922_s3 + $0x1c8] sm:$0xff]  ;;  %v6023_v14 = vcombine.low %v403_v10, %v411_v12  ;;  %v6024_v15 = vcombine.high %v403_v10, %v411_v12  ;;  %v7589_v16 = vmov 0   ;;  %v427_v27 = vld [vmem:[%s9922_s3 + $0xd8] sm:$0xff] }
  0x23   : > { %1304 = vmatpush1.bf16.msra.mxu0 %v6019_v22  ;;  %v6066_v33 = vcombine.high %v448_v28, %v456_v29  ;;  %v464_v36 = vld [vmem:[%s9922_s3 + $0x200] sm:$0xff]  ;;  %v6065_v39 = vcombine.low %v448_v28, %v456_v29  ;;  %v6068_v40 = vcombine.high %v449_v34, %v457_v35  ;;  %v465_v42 = vld [vmem:[%s9922_s3 + $0x208] sm:$0xff]  ;;  %v6067_v46 = vcombine.low %v449_v34, %v457_v35  ;;  %v434_v34 = vld [vmem:[%s9922_s3 + $0x110] sm:$0xff] }
  0x24   : > { %1255 = vmatpush1.bf16.msra.mxu1 %v6033_v23  ;;  %1305 = vmatprep.subr.bf16.mxu0 %v6036_v24  ;;  %v472_v37 = vld [vmem:[%s9922_s3 + $0x240] sm:$0xff]  ;;  %v473_v43 = vld [vmem:[%s9922_s3 + $0x248] sm:$0xff]  ;;  %v418_v24 = vld [vmem:[%s9922_s3 + $0x90] sm:$0xff] }
  0x25   : > { %1256 = vmatprep.subr.bf16.mxu1 %v6050_v25  ;;  %v6082_v41 = vcombine.high %v464_v36, %v472_v37  ;;  %v480_v44 = vld [vmem:[%s9922_s3 + $0x280] sm:$0xff]  ;;  %v6081_v47 = vcombine.low %v464_v36, %v472_v37  ;;  %v6084_v48 = vcombine.high %v465_v42, %v473_v43  ;;  %v481_v50 = vld [vmem:[%s9922_s3 + $0x288] sm:$0xff]  ;;  %v6083_v52 = vcombine.low %v465_v42, %v473_v43  ;;  %v426_v25 = vld [vmem:[%s9922_s3 + $0xd0] sm:$0xff] }
  0x26   : > { %v488_v45 = vld [vmem:[%s9922_s3 + $0x2c0] sm:$0xff]  ;;  %v489_v51 = vld [vmem:[%s9922_s3 + $0x2c8] sm:$0xff]  ;;  %1284 = vmatprep.mubr.bf16.mxu1 %v7589_v16  ;;  %1335 = vmatprep.mubr.bf16.mxu0 %v7589_v16  ;;  %v442_v35 = vld [vmem:[%s9922_s3 + $0x150] sm:$0xff] }
  0x27   : > { %1306 = vmatpush1.bf16.msra.mxu0 %v6035_v30  ;;  %v6098_v49 = vcombine.high %v480_v44, %v488_v45  ;;  %v6097_v53 = vcombine.low %v480_v44, %v488_v45  ;;  %v6100_v54 = vcombine.high %v481_v50, %v489_v51  ;;  %v6099_v55 = vcombine.low %v481_v50, %v489_v51  ;;  %v496_v56 = vld [vmem:[%s9922_s3 + $0x300] sm:$0xff]  ;;  %v497_v58 = vld [vmem:[%s9922_s3 + $0x308] sm:$0xff]  ;;  %v435_v36 = vld [vmem:[%s9922_s3 + $0x118] sm:$0xff] }
  0x28   : > { %1257 = vmatpush1.bf16.msra.mxu1 %v6049_v31  ;;  %1307 = vmatprep.subr.bf16.mxu0 %v6052_v32  ;;  %v504_v57 = vld [vmem:[%s9922_s3 + $0x340] sm:$0xff]  ;;  %v505_v60 = vld [vmem:[%s9922_s3 + $0x348] sm:$0xff]  ;;  %v6038_v32 = vcombine.high %v418_v24, %v426_v25  ;;  %v443_v37 = vld [vmem:[%s9922_s3 + $0x158] sm:$0xff] }
  0x29   : > { %1258 = vmatprep.subr.bf16.mxu1 %v6066_v33  ;;  %v6114_v59 = vcombine.high %v496_v56, %v504_v57  ;;  %v6115_v61 = vcombine.low %v497_v58, %v505_v60  ;;  %v6116_v62 = vcombine.high %v497_v58, %v505_v60  ;;  %v6113_v63 = vcombine.low %v496_v56, %v504_v57  ;;  %v512_v0 = vld [vmem:[%s9922_s3 + $0x380] sm:$0xff]  ;;  %v513_v2 = vld [vmem:[%s9922_s3 + $0x388] sm:$0xff]  ;;  %v450_v43 = vld [vmem:[%s9922_s3 + $0x190] sm:$0xff] }
  0x2a   : > { %v520_v1 = vld [vmem:[%s9922_s3 + $0x3c0] sm:$0xff]  ;;  %v521_v4 = vld [vmem:[%s9922_s3 + $0x3c8] sm:$0xff]  ;;  %v6040_v33 = vcombine.high %v419_v26, %v427_v27  ;;  %v6056_v42 = vcombine.high %v435_v36, %v443_v37  ;;  %v458_v44 = vld [vmem:[%s9922_s3 + $0x1d0] sm:$0xff] }
  0x2b   : > { %1308 = vmatpush1.bf16.msra.mxu0 %v6051_v38  ;;  %v6130_v3 = vcombine.high %v512_v0, %v520_v1  ;;  %v6131_v5 = vcombine.low %v513_v2, %v521_v4  ;;  %v6132_v6 = vcombine.high %v513_v2, %v521_v4  ;;  %v6129_v7 = vcombine.low %v512_v0, %v520_v1  ;;  %v6012_v17 = vld [vmem:[%s9921_s2] ss:$0 sm:$0xff]  ;;  %v451_v45 = vld [vmem:[%s9922_s3 + $0x198] sm:$0xff]  ;;  %v482_v60 = vld [vmem:[%s9922_s3 + $0x290] sm:$0xff] }
  0x2c   : > { %1259 = vmatpush1.bf16.msra.mxu1 %v6065_v39  ;;  %1309 = vmatprep.subr.bf16.mxu0 %v6068_v40  ;;  %v6037_v38 = vcombine.low %v418_v24, %v426_v25  ;;  %v6039_v39 = vcombine.low %v419_v26, %v427_v27  ;;  %v6070_v50 = vcombine.high %v450_v43, %v458_v44  ;;  %v498_v4 = vld [vmem:[%s9922_s3 + $0x310] sm:$0xff]  ;;  %v413_v24 = vld [vmem:[%s9922_s3 + $0x68] sm:$0xff] }
  0x2d   : > { %1260 = vmatprep.subr.bf16.mxu1 %v6082_v41  ;;  %v6054_v41 = vcombine.high %v434_v34, %v442_v35  ;;  %v6069_v56 = vcombine.low %v450_v43, %v458_v44  ;;  %v514_v12 = vld [vmem:[%s9922_s3 + $0x390] sm:$0xff] }
  0x2f   : > { %1310 = vmatpush1.bf16.msra.mxu0 %v6067_v46  ;;  %v459_v46 = vld [vmem:[%s9922_s3 + $0x1d8] sm:$0xff] }
  0x30   : > { %1261 = vmatpush1.bf16.msra.mxu1 %v6081_v47  ;;  %1311 = vmatprep.subr.bf16.mxu0 %v6084_v48  ;;  %v6053_v47 = vcombine.low %v434_v34, %v442_v35  ;;  %v6055_v48 = vcombine.low %v435_v36, %v443_v37  ;;  %v6072_v51 = vcombine.high %v451_v45, %v459_v46 }
  0x31   : > { %1262 = vmatprep.subr.bf16.mxu1 %v6098_v49  ;;  %v6071_v57 = vcombine.low %v451_v45, %v459_v46  ;;  %v452_v46 = vld [vmem:[%s9922_s3 + $0x1a0] sm:$0xff] }
  0x33   : > { %1312 = vmatpush1.bf16.msra.mxu0 %v6083_v52  ;;  %v466_v52 = vld [vmem:[%s9922_s3 + $0x210] sm:$0xff] }
  0x34   : > { %1263 = vmatpush1.bf16.msra.mxu1 %v6097_v53  ;;  %1313 = vmatprep.subr.bf16.mxu0 %v6100_v54  ;;  %v474_v53 = vld [vmem:[%s9922_s3 + $0x250] sm:$0xff]  ;;  %v467_v54 = vld [vmem:[%s9922_s3 + $0x218] sm:$0xff] }
  0x35   : > { %1264 = vmatprep.subr.bf16.mxu1 %v6114_v59  ;;  %v6086_v58 = vcombine.high %v466_v52, %v474_v53  ;;  %v6085_v0 = vcombine.low %v466_v52, %v474_v53 }
  0x37   : > { %1314 = vmatpush1.bf16.msra.mxu0 %v6099_v55  ;;  %v475_v55 = vld [vmem:[%s9922_s3 + $0x258] sm:$0xff] }
  0x38   : > { %1315 = vmatprep.subr.bf16.mxu0 %v6116_v62  ;;  %1265 = vmatpush1.bf16.msra.mxu1 %v6113_v63  ;;  %v6088_v59 = vcombine.high %v467_v54, %v475_v55  ;;  %v483_v62 = vld [vmem:[%s9922_s3 + $0x298] sm:$0xff]  ;;  %v6087_v1 = vcombine.low %v467_v54, %v475_v55  ;;  %v468_v55 = vld [vmem:[%s9922_s3 + $0x220] sm:$0xff] }
  0x39   : > { %1266 = vmatprep.subr.bf16.mxu1 %v6130_v3  ;;  %v491_v63 = vld [vmem:[%s9922_s3 + $0x2d8] sm:$0xff] }
  0x3a   : > { %v6104_v3 = vcombine.high %v483_v62, %v491_v63  ;;  %v6103_v9 = vcombine.low %v483_v62, %v491_v63  ;;  %v484_v63 = vld [vmem:[%s9922_s3 + $0x2a0] sm:$0xff] }
  0x3b   : > { %1316 = vmatpush1.bf16.msra.mxu0 %v6115_v61  ;;  %v490_v61 = vld [vmem:[%s9922_s3 + $0x2d0] sm:$0xff] }
  0x3c   : > { %1317 = vmatprep.subr.bf16.mxu0 %v6132_v6  ;;  %1267 = vmatpush1.bf16.msra.mxu1 %v6129_v7  ;;  %v6102_v2 = vcombine.high %v482_v60, %v490_v61  ;;  %v499_v6 = vld [vmem:[%s9922_s3 + $0x318] sm:$0xff]  ;;  %v6101_v8 = vcombine.low %v482_v60, %v490_v61 }
  0x3d   : > { %1354 = vmatprep.subr.bf16.mxu1 %v6022_v11  ;;  %v507_v7 = vld [vmem:[%s9922_s3 + $0x358] sm:$0xff] }
  0x3e   : > { %v6120_v11 = vcombine.high %v499_v6, %v507_v7 }
  0x3f   : > { %1318 = vmatpush1.bf16.msra.mxu0 %v6131_v5  ;;  %v506_v5 = vld [vmem:[%s9922_s3 + $0x350] sm:$0xff] }
  0x40   : > { %1405 = vmatprep.subr.bf16.mxu0 %v6024_v15  ;;  %v6118_v10 = vcombine.high %v498_v4, %v506_v5  ;;  %v523_v15 = vld [vmem:[%s9922_s3 + $0x3d8] sm:$0xff] }
  0xf5   : > { %v6670_v18 = vpop.f32.mrb[0].mxu0 }
  0xf6   : > { %v381_v19 = vpop.f32.mrb[1].mxu0  ;;  %v390_v30 = vadd.f32 %v6670_v18, %v6012_v17  ;;  %v6119_v18 = vcombine.low %v499_v6, %v507_v7  ;;  %v500_v7 = vld [vmem:[%s9922_s3 + $0x320] sm:$0xff] }
  0xf7   : > { %v382_v20 = vadd.f32 %v6012_v17, %v381_v19  ;;  %v6671_v21 = vpop.f32.mrb[2].mxu0 }
  0xf8   : > { %v384_v22 = vpop.f32.mrb[3].mxu0  ;;  %v397_v40 = vmax.f32 %v390_v30, 0.0  ;;  %v404_v21 = vld [vmem:[%s9922_s3 + $0x20] sm:$0xff] }
  0xf9   : > { %v385_v23 = vadd.f32 %v6012_v17, %v384_v22  ;;  %v395_v28 = vmax.f32 %v382_v20, 0.0  ;;  %v6117_v17 = vcombine.low %v498_v4, %v506_v5  ;;  %v412_v22 = vld [vmem:[%s9922_s3 + $0x60] sm:$0xff] }
  0xfa   : > { %v7836_v49 = vpack.c.bf16 %v397_v40, %v397_v40  ;;  %v6026_v27 = vcombine.high %v404_v21, %v412_v22  ;;  %v428_v30 = vld [vmem:[%s9922_s3 + $0xe0] sm:$0xff]  ;;  %v6025_v34 = vcombine.low %v404_v21, %v412_v22  ;;  %v437_v40 = vld [vmem:[%s9922_s3 + $0x128] sm:$0xff] }
  0xfb   : > { %v396_v29 = vmax.f32 %v385_v23, 0.0  ;;  %v405_v23 = vld [vmem:[%s9922_s3 + $0x28] sm:$0xff] }
  0xfc   : > { %v6027_v35 = vcombine.low %v405_v23, %v413_v24 }
  0xfd   : > { %v7806_v31 = vpack.c.bf16 %v396_v29, %v395_v28  ;;  %v6028_v28 = vcombine.high %v405_v23, %v413_v24  ;;  %v420_v29 = vld [vmem:[%s9922_s3 + $0xa0] sm:$0xff]  ;;  %v406_v24 = vld [vmem:[%s9922_s3 + $0x30] sm:$0xff] }
  0xfe   : > { %v6042_v36 = vcombine.high %v420_v29, %v428_v30 }
  0xff   : > { %1285 = vmatmul.mubr.bf16.vlgmr.msra.gmra.mrb[0].mxu1 %v7806_v31  ;;  %1336 = vmatmul.mubr.bf16.vlgmr.msra.gmra.mrb[4].mxu0 %v7806_v31 }
 0x100   : > { %1355 = vmatpush1.bf16.msra.mxu1 %v6021_v13  ;;  %1406 = vmatpush1.bf16.msra.mxu0 %v6023_v14  ;;  %v522_v13 = vld [vmem:[%s9922_s3 + $0x3d0] sm:$0xff]  ;;  %v515_v14 = vld [vmem:[%s9922_s3 + $0x398] sm:$0xff] }
 0x101   : > { %1356 = vmatprep.subr.bf16.mxu1 %v6038_v32  ;;  %1407 = vmatprep.subr.bf16.mxu0 %v6040_v33  ;;  %v6134_v19 = vcombine.high %v514_v12, %v522_v13  ;;  %v6136_v20 = vcombine.high %v515_v14, %v523_v15  ;;  %v6133_v25 = vcombine.low %v514_v12, %v522_v13  ;;  %v421_v32 = vld [vmem:[%s9922_s3 + $0xa8] sm:$0xff] }
 0x102   : > { %1294 = vmatprep.mubr.bf16.mxu1 %v7589_v16  ;;  %1345 = vmatprep.mubr.bf16.mxu0 %v7589_v16  ;;  %v6135_v26 = vcombine.low %v515_v14, %v523_v15  ;;  %v429_v33 = vld [vmem:[%s9922_s3 + $0xe8] sm:$0xff]  ;;  %v516_v15 = vld [vmem:[%s9922_s3 + $0x3a0] sm:$0xff] }
 0x103   : > { %v6044_v37 = vcombine.high %v421_v32, %v429_v33  ;;  %v6043_v43 = vcombine.low %v421_v32, %v429_v33  ;;  %v422_v33 = vld [vmem:[%s9922_s3 + $0xb0] sm:$0xff] }
 0x104   : > { %1357 = vmatpush1.bf16.msra.mxu1 %v6037_v38  ;;  %1408 = vmatpush1.bf16.msra.mxu0 %v6039_v39  ;;  %v436_v38 = vld [vmem:[%s9922_s3 + $0x120] sm:$0xff] }
 0x105   : > { %1358 = vmatprep.subr.bf16.mxu1 %v6054_v41  ;;  %1409 = vmatprep.subr.bf16.mxu0 %v6056_v42  ;;  %v444_v39 = vld [vmem:[%s9922_s3 + $0x160] sm:$0xff]  ;;  %v445_v41 = vld [vmem:[%s9922_s3 + $0x168] sm:$0xff]  ;;  %v6041_v42 = vcombine.low %v420_v29, %v428_v30 }
 0x106   : > { %v6058_v44 = vcombine.high %v436_v38, %v444_v39  ;;  %v6060_v45 = vcombine.high %v437_v40, %v445_v41  ;;  %v6059_v52 = vcombine.low %v437_v40, %v445_v41  ;;  %v438_v41 = vld [vmem:[%s9922_s3 + $0x130] sm:$0xff] }
 0x107   : > { %1295 = vmatmul.mubr.bf16.gmra.mrb[4].mxu1 %v7836_v49  ;;  %1346 = vmatmul.mubr.bf16.gmra.mrb[8].mxu0 %v7836_v49 }
 0x108   : > { %1359 = vmatpush1.bf16.msra.mxu1 %v6053_v47  ;;  %1410 = vmatpush1.bf16.msra.mxu0 %v6055_v48  ;;  %v460_v47 = vld [vmem:[%s9922_s3 + $0x1e0] sm:$0xff]  ;;  %v453_v48 = vld [vmem:[%s9922_s3 + $0x1a8] sm:$0xff] }
 0x109   : > { %1360 = vmatprep.subr.bf16.mxu1 %v6070_v50  ;;  %1411 = vmatprep.subr.bf16.mxu0 %v6072_v51  ;;  %v461_v50 = vld [vmem:[%s9922_s3 + $0x1e8] sm:$0xff]  ;;  %v6057_v51 = vcombine.low %v436_v38, %v444_v39  ;;  %v6074_v53 = vcombine.high %v452_v46, %v460_v47 }
 0x10a   : > { %1386 = vmatprep.mubr.bf16.mxu1 %v7589_v16  ;;  %1437 = vmatprep.mubr.bf16.mxu0 %v7589_v16  ;;  %v6076_v54 = vcombine.high %v453_v48, %v461_v50  ;;  %v6075_v60 = vcombine.low %v453_v48, %v461_v50  ;;  %v454_v50 = vld [vmem:[%s9922_s3 + $0x1b0] sm:$0xff] }
 0x10c   : > { %1361 = vmatpush1.bf16.msra.mxu1 %v6069_v56  ;;  %1412 = vmatpush1.bf16.msra.mxu0 %v6071_v57  ;;  %v476_v56 = vld [vmem:[%s9922_s3 + $0x260] sm:$0xff]  ;;  %v469_v57 = vld [vmem:[%s9922_s3 + $0x228] sm:$0xff] }
 0x10d   : > { %1362 = vmatprep.subr.bf16.mxu1 %v6086_v58  ;;  %1413 = vmatprep.subr.bf16.mxu0 %v6088_v59  ;;  %v477_v58 = vld [vmem:[%s9922_s3 + $0x268] sm:$0xff]  ;;  %v6073_v59 = vcombine.low %v452_v46, %v460_v47  ;;  %v6090_v61 = vcombine.high %v468_v55, %v476_v56 }
 0x10e   : > { %v6092_v62 = vcombine.high %v469_v57, %v477_v58  ;;  %v6091_v4 = vcombine.low %v469_v57, %v477_v58  ;;  %v470_v58 = vld [vmem:[%s9922_s3 + $0x230] sm:$0xff] }
 0x110   : > { %1363 = vmatpush1.bf16.msra.mxu1 %v6085_v0  ;;  %1414 = vmatpush1.bf16.msra.mxu0 %v6087_v1  ;;  %v492_v0 = vld [vmem:[%s9922_s3 + $0x2e0] sm:$0xff]  ;;  %v485_v1 = vld [vmem:[%s9922_s3 + $0x2a8] sm:$0xff] }
 0x111   : > { %1364 = vmatprep.subr.bf16.mxu1 %v6102_v2  ;;  %1415 = vmatprep.subr.bf16.mxu0 %v6104_v3  ;;  %v493_v2 = vld [vmem:[%s9922_s3 + $0x2e8] sm:$0xff]  ;;  %v6089_v3 = vcombine.low %v468_v55, %v476_v56  ;;  %v6106_v5 = vcombine.high %v484_v63, %v492_v0 }
 0x112   : > { %v6108_v6 = vcombine.high %v485_v1, %v493_v2  ;;  %v6107_v12 = vcombine.low %v485_v1, %v493_v2  ;;  %v486_v2 = vld [vmem:[%s9922_s3 + $0x2b0] sm:$0xff] }
 0x114   : > { %1365 = vmatpush1.bf16.msra.mxu1 %v6101_v8  ;;  %1416 = vmatpush1.bf16.msra.mxu0 %v6103_v9  ;;  %v508_v8 = vld [vmem:[%s9922_s3 + $0x360] sm:$0xff]  ;;  %v501_v9 = vld [vmem:[%s9922_s3 + $0x328] sm:$0xff] }
 0x115   : > { %1366 = vmatprep.subr.bf16.mxu1 %v6118_v10  ;;  %1417 = vmatprep.subr.bf16.mxu0 %v6120_v11  ;;  %v509_v10 = vld [vmem:[%s9922_s3 + $0x368] sm:$0xff]  ;;  %v6105_v11 = vcombine.low %v484_v63, %v492_v0  ;;  %v6122_v13 = vcombine.high %v500_v7, %v508_v8 }
 0x116   : > { %v6124_v14 = vcombine.high %v501_v9, %v509_v10  ;;  %v6123_v21 = vcombine.low %v501_v9, %v509_v10  ;;  %v502_v10 = vld [vmem:[%s9922_s3 + $0x330] sm:$0xff] }
 0x118   : > { %1367 = vmatpush1.bf16.msra.mxu1 %v6117_v17  ;;  %1418 = vmatpush1.bf16.msra.mxu0 %v6119_v18  ;;  %v524_v17 = vld [vmem:[%s9922_s3 + $0x3e0] sm:$0xff]  ;;  %v517_v18 = vld [vmem:[%s9922_s3 + $0x3a8] sm:$0xff] }
 0x119   : > { %1368 = vmatprep.subr.bf16.mxu1 %v6134_v19  ;;  %1419 = vmatprep.subr.bf16.mxu0 %v6136_v20  ;;  %v525_v19 = vld [vmem:[%s9922_s3 + $0x3e8] sm:$0xff]  ;;  %v6121_v20 = vcombine.low %v500_v7, %v508_v8  ;;  %v6138_v22 = vcombine.high %v516_v15, %v524_v17 }
 0x11a   : > { %v6140_v23 = vcombine.high %v517_v18, %v525_v19  ;;  %v6139_v29 = vcombine.low %v517_v18, %v525_v19  ;;  %v518_v19 = vld [vmem:[%s9922_s3 + $0x3b0] sm:$0xff] }
 0x11c   : > { %1369 = vmatpush1.bf16.msra.mxu1 %v6133_v25  ;;  %1420 = vmatpush1.bf16.msra.mxu0 %v6135_v26  ;;  %v414_v25 = vld [vmem:[%s9922_s3 + $0x70] sm:$0xff]  ;;  %v407_v26 = vld [vmem:[%s9922_s3 + $0x38] sm:$0xff] }
 0x11d   : > { %1456 = vmatprep.subr.bf16.mxu1 %v6026_v27  ;;  %1507 = vmatprep.subr.bf16.mxu0 %v6028_v28  ;;  %v415_v27 = vld [vmem:[%s9922_s3 + $0x78] sm:$0xff]  ;;  %v6137_v28 = vcombine.low %v516_v15, %v524_v17  ;;  %v6030_v30 = vcombine.high %v406_v24, %v414_v25 }
 0x11e   : > { %v6032_v32 = vcombine.high %v407_v26, %v415_v27  ;;  %v6031_v38 = vcombine.low %v407_v26, %v415_v27 }
 0x11f   : > { %1387 = vmatmul.mubr.bf16.vlgmr.msra.gmra.mrb[8].mxu1 %v7806_v31  ;;  %1438 = vmatmul.mubr.bf16.vlgmr.msra.gmra.mrb[12].mxu0 %v7806_v31 }
 0x120   : > { %1457 = vmatpush1.bf16.msra.mxu1 %v6025_v34  ;;  %1508 = vmatpush1.bf16.msra.mxu0 %v6027_v35  ;;  %v430_v34 = vld [vmem:[%s9922_s3 + $0xf0] sm:$0xff]  ;;  %v423_v35 = vld [vmem:[%s9922_s3 + $0xb8] sm:$0xff] }
 0x121   : > { %1458 = vmatprep.subr.bf16.mxu1 %v6042_v36  ;;  %1509 = vmatprep.subr.bf16.mxu0 %v6044_v37  ;;  %v431_v36 = vld [vmem:[%s9922_s3 + $0xf8] sm:$0xff]  ;;  %v6029_v37 = vcombine.low %v406_v24, %v414_v25  ;;  %v6046_v39 = vcombine.high %v422_v33, %v430_v34 }
 0x122   : > { %1396 = vmatprep.mubr.bf16.mxu1 %v7589_v16  ;;  %1447 = vmatprep.mubr.bf16.mxu0 %v7589_v16  ;;  %v6048_v40 = vcombine.high %v423_v35, %v431_v36  ;;  %v6047_v46 = vcombine.low %v423_v35, %v431_v36  ;;  %v1713_v35 = vstv %s1708_s8 }
 0x124   : > { %1459 = vmatpush1.bf16.msra.mxu1 %v6041_v42  ;;  %1510 = vmatpush1.bf16.msra.mxu0 %v6043_v43  ;;  %v446_v42 = vld [vmem:[%s9922_s3 + $0x170] sm:$0xff]  ;;  %v439_v43 = vld [vmem:[%s9922_s3 + $0x138] sm:$0xff] }
 0x125   : > { %1460 = vmatprep.subr.bf16.mxu1 %v6058_v44  ;;  %1511 = vmatprep.subr.bf16.mxu0 %v6060_v45  ;;  %v447_v44 = vld [vmem:[%s9922_s3 + $0x178] sm:$0xff]  ;;  %v6045_v45 = vcombine.low %v422_v33, %v430_v34  ;;  %v6062_v47 = vcombine.high %v438_v41, %v446_v42 }
 0x126   : > { %v6064_v48 = vcombine.high %v439_v43, %v447_v44  ;;  %v6063_v55 = vcombine.low %v439_v43, %v447_v44 }
 0x127   : > { %1397 = vmatmul.mubr.bf16.gmra.mrb[12].mxu1 %v7836_v49  ;;  %1448 = vmatmul.mubr.bf16.gmra.mrb[16].mxu0 %v7836_v49 }
 0x128   : > { %1461 = vmatpush1.bf16.msra.mxu1 %v6057_v51  ;;  %1512 = vmatpush1.bf16.msra.mxu0 %v6059_v52  ;;  %v462_v51 = vld [vmem:[%s9922_s3 + $0x1f0] sm:$0xff]  ;;  %v455_v52 = vld [vmem:[%s9922_s3 + $0x1b8] sm:$0xff] }
 0x129   : > { %1462 = vmatprep.subr.bf16.mxu1 %v6074_v53  ;;  %1513 = vmatprep.subr.bf16.mxu0 %v6076_v54  ;;  %v463_v53 = vld [vmem:[%s9922_s3 + $0x1f8] sm:$0xff]  ;;  %v6061_v54 = vcombine.low %v438_v41, %v446_v42  ;;  %v6078_v56 = vcombine.high %v454_v50, %v462_v51 }
 0x12a   : > { %1488 = vmatprep.mubr.bf16.mxu1 %v7589_v16  ;;  %1539 = vmatprep.mubr.bf16.mxu0 %v7589_v16  ;;  %v6080_v57 = vcombine.high %v455_v52, %v463_v53  ;;  %v6079_v63 = vcombine.low %v455_v52, %v463_v53 }
 0x12c   : > { %1463 = vmatpush1.bf16.msra.mxu1 %v6073_v59  ;;  %1514 = vmatpush1.bf16.msra.mxu0 %v6075_v60  ;;  %v478_v59 = vld [vmem:[%s9922_s3 + $0x270] sm:$0xff]  ;;  %v471_v60 = vld [vmem:[%s9922_s3 + $0x238] sm:$0xff] }
 0x12d   : > { %1464 = vmatprep.subr.bf16.mxu1 %v6090_v61  ;;  %1515 = vmatprep.subr.bf16.mxu0 %v6092_v62  ;;  %v479_v61 = vld [vmem:[%s9922_s3 + $0x278] sm:$0xff]  ;;  %v6077_v62 = vcombine.low %v454_v50, %v462_v51  ;;  %v6094_v0 = vcombine.high %v470_v58, %v478_v59 }
 0x12e   : > { %v6096_v1 = vcombine.high %v471_v60, %v479_v61  ;;  %v6095_v7 = vcombine.low %v471_v60, %v479_v61 }
 0x130   : > { %1465 = vmatpush1.bf16.msra.mxu1 %v6089_v3  ;;  %1516 = vmatpush1.bf16.msra.mxu0 %v6091_v4  ;;  %v494_v3 = vld [vmem:[%s9922_s3 + $0x2f0] sm:$0xff]  ;;  %v487_v4 = vld [vmem:[%s9922_s3 + $0x2b8] sm:$0xff] }
 0x131   : > { %1466 = vmatprep.subr.bf16.mxu1 %v6106_v5  ;;  %1517 = vmatprep.subr.bf16.mxu0 %v6108_v6  ;;  %v495_v5 = vld [vmem:[%s9922_s3 + $0x2f8] sm:$0xff]  ;;  %v6093_v6 = vcombine.low %v470_v58, %v478_v59  ;;  %v6110_v8 = vcombine.high %v486_v2, %v494_v3 }
 0x132   : > { %v6112_v9 = vcombine.high %v487_v4, %v495_v5  ;;  %v6111_v15 = vcombine.low %v487_v4, %v495_v5 }
 0x134   : > { %1467 = vmatpush1.bf16.msra.mxu1 %v6105_v11  ;;  %1518 = vmatpush1.bf16.msra.mxu0 %v6107_v12  ;;  %v510_v11 = vld [vmem:[%s9922_s3 + $0x370] sm:$0xff]  ;;  %v503_v12 = vld [vmem:[%s9922_s3 + $0x338] sm:$0xff] }
 0x135   : > { %1468 = vmatprep.subr.bf16.mxu1 %v6122_v13  ;;  %1519 = vmatprep.subr.bf16.mxu0 %v6124_v14  ;;  %v511_v13 = vld [vmem:[%s9922_s3 + $0x378] sm:$0xff]  ;;  %v6109_v14 = vcombine.low %v486_v2, %v494_v3  ;;  %v6126_v17 = vcombine.high %v502_v10, %v510_v11 }
 0x136   : > { %v6128_v18 = vcombine.high %v503_v12, %v511_v13  ;;  %v6127_v24 = vcombine.low %v503_v12, %v511_v13 }
 0x138   : > { %1469 = vmatpush1.bf16.msra.mxu1 %v6121_v20  ;;  %1520 = vmatpush1.bf16.msra.mxu0 %v6123_v21  ;;  %v526_v20 = vld [vmem:[%s9922_s3 + $0x3f0] sm:$0xff]  ;;  %v519_v21 = vld [vmem:[%s9922_s3 + $0x3b8] sm:$0xff] }
 0x139   : > { %1470 = vmatprep.subr.bf16.mxu1 %v6138_v22  ;;  %1521 = vmatprep.subr.bf16.mxu0 %v6140_v23  ;;  %v527_v22 = vld [vmem:[%s9922_s3 + $0x3f8] sm:$0xff]  ;;  %v6125_v23 = vcombine.low %v502_v10, %v510_v11  ;;  %v6142_v25 = vcombine.high %v518_v19, %v526_v20  ;;  %v6141_v27 = vcombine.low %v518_v19, %v526_v20 }
 0x13a   : > { %v6144_v26 = vcombine.high %v519_v21, %v527_v22 }
 0x13c   : > { %1471 = vmatpush1.bf16.msra.mxu1 %v6137_v28  ;;  %1522 = vmatpush1.bf16.msra.mxu0 %v6139_v29  ;;  %v6143_v28 = vcombine.low %v519_v21, %v527_v22  ;;  %v532_v29 = vlaneseq }
 0x13d   : > { %1558 = vmatprep.subr.bf16.mxu1 %v6030_v30  ;;  %1609 = vmatprep.subr.bf16.mxu0 %v6032_v32 }
 0x13e   : > { %v8105_v30 = vshrl.u32 %v532_v29, 7  ;;  %vm5931_vm5 = vcmp.lt.s32.totalorder (!%p6145_p8), %v532_v29, 512 }
 0x13f   : > { %1489 = vmatmul.mubr.bf16.vlgmr.msra.gmra.mrb[16].mxu1 %v7806_v31  ;;  %1540 = vmatmul.mubr.bf16.vlgmr.msra.gmra.mrb[20].mxu0 %v7806_v31 }
 0x140   : > { %1559 = vmatpush1.bf16.msra.mxu1 %v6029_v37  ;;  %1610 = vmatpush1.bf16.msra.mxu0 %v6031_v38  ;;  %v8109_v32 = vsub.s32 0, %v8105_v30  ;;  %v8112_v33 = vsub.s32 2, %v8105_v30  ;;  %v1711_v34 = vadd.s32 8, %v8105_v30  ;;  %v8131_v38 = vadd.s32 %v1713_v35, %v8105_v30 }
 0x141   : > { %1560 = vmatprep.subr.bf16.mxu1 %v6046_v39  ;;  %1611 = vmatprep.subr.bf16.mxu0 %v6048_v40 }
 0x142   : > { %1498 = vmatprep.mubr.bf16.mxu1 %v7589_v16  ;;  %1549 = vmatprep.mubr.bf16.mxu0 %v7589_v16  ;;  %v8137_v41 = vadd.s32 %v1713_v35, %v1711_v34  ;;  %vm1717_vm1 = vcmp.lt.s32.totalorder %v8131_v38, 64 }
 0x144   : > { %1561 = vmatpush1.bf16.msra.mxu1 %v6045_v45  ;;  %1612 = vmatpush1.bf16.msra.mxu0 %v6047_v46  ;;  %vm1718_vm2 = vcmp.lt.s32.totalorder %v8137_v41, 64 }
 0x145   : > { %1562 = vmatprep.subr.bf16.mxu1 %v6062_v47  ;;  %1613 = vmatprep.subr.bf16.mxu0 %v6064_v48  ;;  %v1712_v48 = vadd.s32 16, %v8105_v30 }
 0x147   : > { %1499 = vmatmul.mubr.bf16.gmra.mrb[20].mxu1 %v7836_v49  ;;  %1550 = vmatmul.mubr.bf16.gmra.mrb[24].mxu0 %v7836_v49  ;;  %v8142_v2 = vadd.s32 %v1713_v35, %v1712_v48 }
 0x148   : > { %1563 = vmatpush1.bf16.msra.mxu1 %v6061_v54  ;;  %1614 = vmatpush1.bf16.msra.mxu0 %v6063_v55 }
 0x149   : > { %1564 = vmatprep.subr.bf16.mxu1 %v6078_v56  ;;  %1615 = vmatprep.subr.bf16.mxu0 %v6080_v57  ;;  %vm1719_vm3 = vcmp.lt.s32.totalorder %v8142_v2, 64 }
 0x14a   : > { %1590 = vmatprep.mubr.bf16.mxu1 %v7589_v16  ;;  %1641 = vmatprep.mubr.bf16.mxu0 %v7589_v16 }
 0x14c   : > { %1565 = vmatpush1.bf16.msra.mxu1 %v6077_v62  ;;  %1616 = vmatpush1.bf16.msra.mxu0 %v6079_v63 }
 0x14d   : > { %1566 = vmatprep.subr.bf16.mxu1 %v6094_v0  ;;  %1617 = vmatprep.subr.bf16.mxu0 %v6096_v1 }
 0x150   : > { %1567 = vmatpush1.bf16.msra.mxu1 %v6093_v6  ;;  %1618 = vmatpush1.bf16.msra.mxu0 %v6095_v7 }
 0x151   : > { %1568 = vmatprep.subr.bf16.mxu1 %v6110_v8  ;;  %1619 = vmatprep.subr.bf16.mxu0 %v6112_v9 }
 0x154   : > { %1569 = vmatpush1.bf16.msra.mxu1 %v6109_v14  ;;  %1620 = vmatpush1.bf16.msra.mxu0 %v6111_v15 }
 0x155   : > { %1570 = vmatprep.subr.bf16.mxu1 %v6126_v17  ;;  %1621 = vmatprep.subr.bf16.mxu0 %v6128_v18 }
 0x158   : > { %1571 = vmatpush1.bf16.msra.mxu1 %v6125_v23  ;;  %1622 = vmatpush1.bf16.msra.mxu0 %v6127_v24 }
 0x159   : > { %1572 = vmatprep.subr.bf16.mxu1 %v6142_v25  ;;  %1623 = vmatprep.subr.bf16.mxu0 %v6144_v26 }
 0x15c   : > { %1573 = vmatpush1.bf16.msra.mxu1 %v6141_v27  ;;  %1624 = vmatpush1.bf16.msra.mxu0 %v6143_v28 }
 0x15f   : > { %1591 = vmatmul.mubr.bf16.vlgmr.msra.gmra.mrb[24].mxu1 %v7806_v31  ;;  %1642 = vmatmul.mubr.bf16.vlgmr.msra.gmra.mrb[28].mxu0 %v7806_v31  ;;  %v8117_v31 = vld [vmem:[%s9923_s4] sm:$0xff] }
 0x160   : > { %1600 = vmatprep.mubr.bf16.mxu1 %v7589_v16  ;;  %1651 = vmatprep.mubr.bf16.mxu0 %v7589_v16  ;;  %v8120_v16 = vsub.s32 1, %v8105_v30  ;;  %v535_v36 = vrot.slane %v8117_v31, %v8109_v32  ;;  %v543_v37 = vrot.slane %v8117_v31, %v8112_v33 }
 0x162   : > { %v539_v39 = vrot.slane %v8117_v31, %v8120_v16 }
 0x167   : > { %1601 = vmatmul.mubr.bf16.gmra.mrb[28].mxu1 %v7836_v49  ;;  %1652 = vmatmul.mubr.bf16.gmra.mrb[32].mxu0 %v7836_v49  ;;  %v8123_v49 = vsub.s32 3, %v8105_v30 }
 0x169   : > { %v547_v40 = vrot.slane %v8117_v31, %v8123_v49 }
 0x1d2   : > { %v1286_v42 = vpop.f32.mrb[0].mxu1  ;;  %v1337_v43 = vpop.f32.mrb[4].mxu0 }
 0x1d3   : > { %v1287_v44 = vadd.f32 %v1286_v42, %v535_v36  ;;  %v1338_v45 = vadd.f32 %v1337_v43, %v543_v37  ;;  %v1288_v46 = vpop.f32.mrb[1].mxu1  ;;  %v1339_v47 = vpop.f32.mrb[5].mxu0 }
 0x1d4   : > { %v1289_v50 = vadd.f32 %v1288_v46, %v539_v39  ;;  %v1340_v51 = vadd.f32 %v1339_v47, %v547_v40  ;;  %v1290_v52 = vpop.f32.mrb[2].mxu1  ;;  %v1341_v53 = vpop.f32.mrb[6].mxu0 }
 0x1d5   : > { %v1660_v54 = vmax.f32 %v1287_v44, 0.0  ;;  %v1662_v55 = vmax.f32 %v1338_v45, 0.0  ;;  %v1291_v56 = vadd.f32 %v1290_v52, %v535_v36  ;;  %v1342_v57 = vadd.f32 %v1341_v53, %v543_v37  ;;  %v1292_v58 = vpop.f32.mrb[3].mxu1  ;;  %v1343_v59 = vpop.f32.mrb[7].mxu0 }
 0x1d6   : > { %v1661_v60 = vmax.f32 %v1289_v50, 0.0  ;;  %v1663_v61 = vmax.f32 %v1340_v51, 0.0  ;;  %v1293_v62 = vadd.f32 %v1292_v58, %v539_v39  ;;  %v1344_v63 = vadd.f32 %v1343_v59, %v547_v40 }
 0x1d7   : > { %v1676_v0 = vmax.f32 %v1291_v56, 0.0  ;;  %v1678_v1 = vmax.f32 %v1342_v57, 0.0  ;;  %v1726_v3 = vsel %vm1717_vm1, %v1660_v54, 0.0  ;;  %v1728_v4 = vsel %vm1717_vm1, %v1662_v55, 0.0 }
 0x1d8   : > { %v1677_v5 = vmax.f32 %v1293_v62, 0.0  ;;  %v1679_v6 = vmax.f32 %v1344_v63, 0.0  ;;  %v1727_v7 = vsel %vm1717_vm1, %v1661_v60, 0.0  ;;  %v1729_v8 = vsel %vm1717_vm1, %v1663_v61, 0.0 }
 0x1d9   : > { %v1742_v9 = vsel %vm1718_vm2, %v1676_v0, 0.0  ;;  %v1744_v10 = vsel %vm1718_vm2, %v1678_v1, 0.0  ;;  %v7590_v57 = vmov 1966171168  }
 0x1da   : > { %v1776_v11 = vadd.f32 %v1742_v9, %v1726_v3  ;;  %v1792_v12 = vadd.f32 %v1744_v10, %v1728_v4  ;;  %v1743_v13 = vsel %vm1718_vm2, %v1677_v5, 0.0  ;;  %v1745_v14 = vsel %vm1718_vm2, %v1679_v6, 0.0  ;;  %v1296_v15 = vpop.f32.mrb[4].mxu1  ;;  %v1347_v17 = vpop.f32.mrb[8].mxu0 }
 0x1db   : > { %v1784_v18 = vadd.f32 %v1743_v13, %v1727_v7  ;;  %v1800_v19 = vadd.f32 %v1745_v14, %v1729_v8  ;;  %v1297_v20 = vadd.f32 %v1296_v15, %v535_v36  ;;  %v1348_v21 = vadd.f32 %v1347_v17, %v543_v37  ;;  %v1298_v22 = vpop.f32.mrb[5].mxu1  ;;  %v1349_v23 = vpop.f32.mrb[9].mxu0 }
 0x1dc   : > { %v1299_v24 = vadd.f32 %v1298_v22, %v539_v39  ;;  %v1350_v25 = vadd.f32 %v1349_v23, %v547_v40  ;;  %v1300_v26 = vpop.f32.mrb[6].mxu1  ;;  %v1351_v27 = vpop.f32.mrb[10].mxu0  ;;  %v1925_v58 = vunpack.c.l.s4 %v7590_v57  ;;  %v8170_v10 = vsub.s32 4, %v8105_v30 }
 0x1dd   : > { %v1692_v28 = vmax.f32 %v1297_v20, 0.0  ;;  %v1694_v34 = vmax.f32 %v1348_v21, 0.0  ;;  %v1301_v35 = vpop.f32.mrb[7].mxu1  ;;  %v1352_v42 = vpop.f32.mrb[11].mxu0  ;;  %v8176_v14 = vsub.s32 5, %v8105_v30  ;;  %v8179_v15 = vsub.s32 7, %v8105_v30 }
 0x1de   : > { %v1693_v43 = vmax.f32 %v1299_v24, 0.0  ;;  %v1695_v44 = vmax.f32 %v1350_v25, 0.0  ;;  %v1926_v4 = vunpack.c.0.s8 %v1925_v58  ;;  %v551_v22 = vrot.slane %v8117_v31, %v8170_v10 }
 0x1df   : > { %v1758_v45 = vsel %vm1719_vm3, %v1692_v28, 0.0  ;;  %v1760_v36 = vsel %vm1719_vm3, %v1694_v34, 0.0  ;;  %v555_v24 = vrot.slane %v8117_v31, %v8176_v14  ;;  %v563_v25 = vrot.slane %v8117_v31, %v8179_v15 }
 0x1e0   : > { %v1777_v37 = vadd.f32 %v1776_v11, %v1758_v45  ;;  %v1793_v46 = vadd.f32 %v1792_v12, %v1760_v36  ;;  %v1759_v39 = vsel %vm1719_vm3, %v1693_v43, 0.0  ;;  %v1761_v40 = vsel %vm1719_vm3, %v1695_v44, 0.0 }
 0x1e1   : > { %v1785_v47 = vadd.f32 %v1784_v18, %v1759_v39  ;;  %v1801_v48 = vadd.f32 %v1800_v19, %v1761_v40  ;;  %v8173_v11 = vsub.s32 6, %v8105_v30  ;;  %v8182_v18 = vsub.s32 %v1926_v4, %v8105_v30 }
 0x1e2   : > { %v1778_v50 = vrot.slane %v1777_v37, 4  ;;  %v1794_v51 = vrot.slane %v1793_v46, 4 }
 0x1e3   : > { %v1786_v52 = vrot.slane %v1785_v47, 4  ;;  %v1802_v53 = vrot.slane %v1801_v48, 4  ;;  %v559_v23 = vrot.slane %v8117_v31, %v8173_v11 }
 0x1e4   : > { %v1779_v54 = vadd.f32 %v1778_v50, %v1777_v37  ;;  %v1795_v55 = vadd.f32 %v1794_v51, %v1793_v46 }
 0x1e5   : > { %v1787_v56 = vadd.f32 %v1786_v52, %v1785_v47  ;;  %v1803_v59 = vadd.f32 %v1802_v53, %v1801_v48 }
 0x1e6   : > { %v1780_v60 = vrot.slane %v1779_v54, 2  ;;  %v1796_v61 = vrot.slane %v1795_v55, 2 }
 0x1e7   : > { %v1788_v62 = vrot.slane %v1787_v56, 2  ;;  %v1804_v63 = vrot.slane %v1803_v59, 2 }
 0x1e8   : > { %v1781_v0 = vadd.f32 %v1780_v60, %v1779_v54  ;;  %v1797_v1 = vadd.f32 %v1796_v61, %v1795_v55 }
 0x1e9   : > { %v1789_v3 = vadd.f32 %v1788_v62, %v1787_v56  ;;  %v1805_v5 = vadd.f32 %v1804_v63, %v1803_v59 }
 0x1ea   : > { %v1782_v6 = vrot.slane %v1781_v0, 1  ;;  %v1798_v7 = vrot.slane %v1797_v1, 1 }
 0x1eb   : > { %v1790_v8 = vrot.slane %v1789_v3, 1  ;;  %v1806_v9 = vrot.slane %v1805_v5, 1 }
 0x1ec   : > { %v1783_v12 = vadd.f32 %v1782_v6, %v1781_v0  ;;  %v1799_v13 = vadd.f32 %v1798_v7, %v1797_v1 }
 0x1ed   : > { %v1791_v17 = vadd.f32 %v1790_v8, %v1789_v3  ;;  %v1807_v19 = vadd.f32 %v1806_v9, %v1805_v5 }
 0x1ef   : > { %v1920_v20 = vcombine.low %v1783_v12, %v1791_v17  ;;  %v1921_v21 = vcombine.low %v1799_v13, %v1807_v19 }
 0x1f1   : > { %v8193_v26 = vrot.slane %v1920_v20, %v8182_v18  ;;  %v8196_v30 = vrot.slane %v1921_v21, %v8182_v18 }
 0x1f2   : > { %v1388_v27 = vpop.f32.mrb[8].mxu1  ;;  %v1439_v28 = vpop.f32.mrb[12].mxu0 }
 0x1f3   : > { %v1952_v34 = vcombine.low %v8193_v26, %v8196_v30  ;;  %v1389_v35 = vadd.f32 %v1388_v27, %v551_v22  ;;  %v1440_v42 = vadd.f32 %v1439_v28, %v559_v23  ;;  %v1390_v43 = vpop.f32.mrb[9].mxu1  ;;  %v1441_v44 = vpop.f32.mrb[13].mxu0 }
 0x1f4   : > { %v1391_v45 = vadd.f32 %v1390_v43, %v555_v24  ;;  %v1442_v36 = vadd.f32 %v1441_v44, %v563_v25  ;;  %v1392_v37 = vpop.f32.mrb[10].mxu1  ;;  %v1443_v46 = vpop.f32.mrb[14].mxu0 }
 0x1f5   : > { %v1664_v31 = vmax.f32 %v1389_v35, 0.0  ;;  %v1666_v39 = vmax.f32 %v1440_v42, 0.0  ;;  %v1393_v40 = vadd.f32 %v1392_v37, %v551_v22  ;;  %v1394_v47 = vpop.f32.mrb[11].mxu1  ;;  %v1445_v48 = vpop.f32.mrb[15].mxu0  ;;  %v1444_v52 = vadd.f32 %v1443_v46, %v559_v23 }
 0x1f6   : > { %v1665_v50 = vmax.f32 %v1391_v45, 0.0  ;;  %v1667_v51 = vmax.f32 %v1442_v36, 0.0  ;;  %v1395_v53 = vadd.f32 %v1394_v47, %v555_v24  ;;  %v1446_v55 = vadd.f32 %v1445_v48, %v563_v25 }
 0x1f7   : > { %v1680_v54 = vmax.f32 %v1393_v40, 0.0  ;;  %v1730_v56 = vsel %vm1717_vm1, %v1664_v31, 0.0  ;;  %v1682_v57 = vmax.f32 %v1444_v52, 0.0  ;;  %v1732_v59 = vsel %vm1717_vm1, %v1666_v39, 0.0 }
 0x1f8   : > { %v1681_v58 = vmax.f32 %v1395_v53, 0.0  ;;  %v1731_v60 = vsel %vm1717_vm1, %v1665_v50, 0.0  ;;  %v1683_v62 = vmax.f32 %v1446_v55, 0.0  ;;  %v1733_v63 = vsel %vm1717_vm1, %v1667_v51, 0.0 }
 0x1f9   : > { %v1746_v61 = vsel %vm1718_vm2, %v1680_v54, 0.0  ;;  %v1748_v1 = vsel %vm1718_vm2, %v1682_v57, 0.0 }
 0x1fa   : > { %v1808_v0 = vadd.f32 %v1746_v61, %v1730_v56  ;;  %v1747_v3 = vsel %vm1718_vm2, %v1681_v58, 0.0  ;;  %v1398_v4 = vpop.f32.mrb[12].mxu1  ;;  %v1449_v5 = vpop.f32.mrb[16].mxu0  ;;  %v1824_v6 = vadd.f32 %v1748_v1, %v1732_v59  ;;  %v1749_v8 = vsel %vm1718_vm2, %v1683_v62, 0.0 }
 0x1fb   : > { %v1816_v7 = vadd.f32 %v1747_v3, %v1731_v60  ;;  %v1399_v9 = vadd.f32 %v1398_v4, %v551_v22  ;;  %v1400_v12 = vpop.f32.mrb[13].mxu1  ;;  %v1451_v13 = vpop.f32.mrb[17].mxu0  ;;  %v1832_v17 = vadd.f32 %v1749_v8, %v1733_v63  ;;  %v1450_v19 = vadd.f32 %v1449_v5, %v559_v23  ;;  %v8227_v5 = vld [vmem:[%s9923_s4 + $0x8] sm:$0xff] }
 0x1fc   : > { %v1401_v20 = vadd.f32 %v1400_v12, %v555_v24  ;;  %v1452_v21 = vadd.f32 %v1451_v13, %v563_v25  ;;  %v1402_v27 = vpop.f32.mrb[14].mxu1  ;;  %v1453_v28 = vpop.f32.mrb[18].mxu0  ;;  %v567_v13 = vrot.slane %v8227_v5, %v8109_v32 }
 0x1fd   : > { %v1696_v35 = vmax.f32 %v1399_v9, 0.0  ;;  %v1403_v42 = vpop.f32.mrb[15].mxu1  ;;  %v1454_v43 = vpop.f32.mrb[19].mxu0  ;;  %v1698_v44 = vmax.f32 %v1450_v19, 0.0  ;;  %v571_v19 = vrot.slane %v8227_v5, %v8120_v16 }
 0x1fe   : > { %v1697_v45 = vmax.f32 %v1401_v20, 0.0  ;;  %v1699_v36 = vmax.f32 %v1452_v21, 0.0  ;;  %v579_v20 = vrot.slane %v8227_v5, %v8123_v49 }
 0x1ff   : > { %v1762_v37 = vsel %vm1719_vm3, %v1696_v35, 0.0  ;;  %v1764_v22 = vsel %vm1719_vm3, %v1698_v44, 0.0 }
 0x200   : > { %v1809_v46 = vadd.f32 %v1808_v0, %v1762_v37  ;;  %v1763_v23 = vsel %vm1719_vm3, %v1697_v45, 0.0  ;;  %v1765_v24 = vsel %vm1719_vm3, %v1699_v36, 0.0  ;;  %v1825_v25 = vadd.f32 %v1824_v6, %v1764_v22 }
 0x201   : > { %v1817_v31 = vadd.f32 %v1816_v7, %v1763_v23  ;;  %v1833_v39 = vadd.f32 %v1832_v17, %v1765_v24  ;;  %v575_v17 = vrot.slane %v8227_v5, %v8112_v33  ;;  %v1960_v37 = vrot.slane %v1952_v34, %v8182_v18 }
 0x202   : > { %v1810_v40 = vrot.slane %v1809_v46, 4  ;;  %v1826_v47 = vrot.slane %v1825_v25, 4 }
 0x203   : > { %v1818_v48 = vrot.slane %v1817_v31, 4  ;;  %v1834_v50 = vrot.slane %v1833_v39, 4 }
 0x204   : > { %v1811_v51 = vadd.f32 %v1810_v40, %v1809_v46  ;;  %v1827_v52 = vadd.f32 %v1826_v47, %v1825_v25 }
 0x205   : > { %v1819_v53 = vadd.f32 %v1818_v48, %v1817_v31  ;;  %v1835_v54 = vadd.f32 %v1834_v50, %v1833_v39  ;;  %v1774_v50 = vld [vmem:[#allocation2] sm:$0xff] }
 0x206   : > { %v1812_v55 = vrot.slane %v1811_v51, 2  ;;  %v1828_v56 = vrot.slane %v1827_v52, 2 }
 0x207   : > { %v1820_v57 = vrot.slane %v1819_v53, 2  ;;  %v1836_v58 = vrot.slane %v1835_v54, 2 }
 0x208   : > { %v1813_v59 = vadd.f32 %v1812_v55, %v1811_v51  ;;  %v1829_v60 = vadd.f32 %v1828_v56, %v1827_v52 }
 0x209   : > { %v1821_v61 = vadd.f32 %v1820_v57, %v1819_v53  ;;  %v1837_v62 = vadd.f32 %v1836_v58, %v1835_v54 }
 0x20a   : > { %v1814_v63 = vrot.slane %v1813_v59, 1  ;;  %v1830_v0 = vrot.slane %v1829_v60, 1 }
 0x20b   : > { %v1822_v1 = vrot.slane %v1821_v61, 1  ;;  %v1838_v3 = vrot.slane %v1837_v62, 1 }
 0x20c   : > { %v1815_v4 = vadd.f32 %v1814_v63, %v1813_v59  ;;  %v1831_v6 = vadd.f32 %v1830_v0, %v1829_v60 }
 0x20d   : > { %v1823_v7 = vadd.f32 %v1822_v1, %v1821_v61  ;;  %v1839_v8 = vadd.f32 %v1838_v3, %v1837_v62 }
 0x20f   : > { %v1922_v9 = vcombine.low %v1815_v4, %v1823_v7  ;;  %v1923_v12 = vcombine.low %v1831_v6, %v1839_v8 }
 0x211   : > { %v1944_v21 = vrot.slane %v1922_v9, %v8182_v18  ;;  %v1951_v27 = vrot.slane %v1923_v12, %v8182_v18 }
 0x212   : > { %v1490_v28 = vpop.f32.mrb[16].mxu1  ;;  %v1541_v35 = vpop.f32.mrb[20].mxu0 }
 0x213   : > { %v1953_v42 = vcombine.low %v1944_v21, %v1951_v27  ;;  %v1491_v43 = vadd.f32 %v1490_v28, %v567_v13  ;;  %v1542_v44 = vadd.f32 %v1541_v35, %v575_v17  ;;  %v1492_v45 = vpop.f32.mrb[17].mxu1  ;;  %v1543_v36 = vpop.f32.mrb[21].mxu0 }
 0x214   : > { %v1493_v46 = vadd.f32 %v1492_v45, %v571_v19  ;;  %v1544_v22 = vadd.f32 %v1543_v36, %v579_v20  ;;  %v1494_v23 = vpop.f32.mrb[18].mxu1  ;;  %v1545_v24 = vpop.f32.mrb[22].mxu0 }
 0x215   : > { %v1967_v25 = vrot.slane %v1953_v42, %v8182_v18  ;;  %v1668_v31 = vmax.f32 %v1491_v43, 0.0  ;;  %v1670_v39 = vmax.f32 %v1542_v44, 0.0  ;;  %v1495_v40 = vadd.f32 %v1494_v23, %v567_v13  ;;  %v1496_v47 = vpop.f32.mrb[19].mxu1  ;;  %v1547_v48 = vpop.f32.mrb[23].mxu0 }
 0x216   : > { %v1669_v51 = vmax.f32 %v1493_v46, 0.0  ;;  %v1671_v52 = vmax.f32 %v1544_v22, 0.0  ;;  %v1546_v53 = vadd.f32 %v1545_v24, %v575_v17  ;;  %v1497_v54 = vadd.f32 %v1496_v47, %v571_v19 }
 0x217   : > { %v1968_v55 = vcombine.low %v1960_v37, %v1967_v25  ;;  %v1734_v26 = vsel %vm1717_vm1, %v1668_v31, 0.0  ;;  %v1736_v30 = vsel %vm1717_vm1, %v1670_v39, 0.0  ;;  %v1684_v34 = vmax.f32 %v1495_v40, 0.0 }
 0x218   : > { %v1735_v56 = vsel %vm1717_vm1, %v1669_v51, 0.0  ;;  %v1737_v57 = vsel %vm1717_vm1, %v1671_v52, 0.0  ;;  %v1686_v58 = vmax.f32 %v1546_v53, 0.0  ;;  %v1685_v59 = vmax.f32 %v1497_v54, 0.0 }
 0x219   : > { %v2020_v60 = vadd.f32 %v1968_v55, %v1774_v50  ;;  %v1750_v61 = vsel %vm1718_vm2, %v1684_v34, 0.0  ;;  %v1548_v62 = vadd.f32 %v1547_v48, %v579_v20 }
 0x21a   : > { %v1840_v63 = vadd.f32 %v1750_v61, %v1734_v26  ;;  %v1752_v0 = vsel %vm1718_vm2, %v1686_v58, 0.0  ;;  %v1751_v1 = vsel %vm1718_vm2, %v1685_v59, 0.0  ;;  %v1500_v3 = vpop.f32.mrb[20].mxu1  ;;  %v1551_v4 = vpop.f32.mrb[24].mxu0 }
 0x21b   : > { %2022 = vst [vmem:[#allocation2] sm:$0xff] %v2020_v60  ;;  %v1856_v6 = vadd.f32 %v1752_v0, %v1736_v30  ;;  %v1848_v7 = vadd.f32 %v1751_v1, %v1735_v56  ;;  %v1687_v8 = vmax.f32 %v1548_v62, 0.0  ;;  %v1501_v9 = vadd.f32 %v1500_v3, %v567_v13  ;;  %v1502_v12 = vpop.f32.mrb[21].mxu1  ;;  %v1553_v21 = vpop.f32.mrb[25].mxu0 }
 0x21c   : > { %v1552_v27 = vadd.f32 %v1551_v4, %v575_v17  ;;  %v1503_v28 = vadd.f32 %v1502_v12, %v571_v19  ;;  %v1554_v35 = vadd.f32 %v1553_v21, %v579_v20  ;;  %v1504_v42 = vpop.f32.mrb[22].mxu1  ;;  %v1555_v43 = vpop.f32.mrb[26].mxu0  ;;  %v591_v12 = vrot.slane %v8227_v5, %v8173_v11 }
 0x21d   : > { %v1753_v44 = vsel %vm1718_vm2, %v1687_v8, 0.0  ;;  %v1700_v45 = vmax.f32 %v1501_v9, 0.0  ;;  %v1505_v36 = vpop.f32.mrb[23].mxu1  ;;  %v1556_v37 = vpop.f32.mrb[27].mxu0  ;;  %v583_v9 = vrot.slane %v8227_v5, %v8170_v10  ;;  %v587_v21 = vrot.slane %v8227_v5, %v8176_v14 }
 0x21e   : > { %v1864_v46 = vadd.f32 %v1753_v44, %v1737_v57  ;;  %v1702_v22 = vmax.f32 %v1552_v27, 0.0  ;;  %v1701_v23 = vmax.f32 %v1503_v28, 0.0  ;;  %v1703_v24 = vmax.f32 %v1554_v35, 0.0 }
 0x21f   : > { %v1766_v13 = vsel %vm1719_vm3, %v1700_v45, 0.0  ;;  %v595_v27 = vrot.slane %v8227_v5, %v8179_v15 }
 0x220   : > { %v1841_v25 = vadd.f32 %v1840_v63, %v1766_v13  ;;  %v1768_v17 = vsel %vm1719_vm3, %v1702_v22, 0.0  ;;  %v1767_v19 = vsel %vm1719_vm3, %v1701_v23, 0.0  ;;  %v1769_v20 = vsel %vm1719_vm3, %v1703_v24, 0.0 }
 0x221   : > { %v1857_v31 = vadd.f32 %v1856_v6, %v1768_v17  ;;  %v1849_v39 = vadd.f32 %v1848_v7, %v1767_v19  ;;  %v1865_v40 = vadd.f32 %v1864_v46, %v1769_v20 }
 0x222   : > { %v1842_v47 = vrot.slane %v1841_v25, 4 }
 0x223   : > { %v1858_v48 = vrot.slane %v1857_v31, 4  ;;  %v1850_v50 = vrot.slane %v1849_v39, 4  ;;  %v1866_v51 = vrot.slane %v1865_v40, 4 }
 0x224   : > { %v1843_v52 = vadd.f32 %v1842_v47, %v1841_v25 }
 0x225   : > { %v1859_v53 = vadd.f32 %v1858_v48, %v1857_v31  ;;  %v1851_v54 = vadd.f32 %v1850_v50, %v1849_v39  ;;  %v1867_v55 = vadd.f32 %v1866_v51, %v1865_v40 }
 0x226   : > { %v1844_v26 = vrot.slane %v1843_v52, 2 }
 0x227   : > { %v1860_v30 = vrot.slane %v1859_v53, 2  ;;  %v1852_v34 = vrot.slane %v1851_v54, 2  ;;  %v1868_v56 = vrot.slane %v1867_v55, 2 }
 0x228   : > { %v1845_v57 = vadd.f32 %v1844_v26, %v1843_v52 }
 0x229   : > { %v1861_v58 = vadd.f32 %v1860_v30, %v1859_v53  ;;  %v1853_v59 = vadd.f32 %v1852_v34, %v1851_v54  ;;  %v1869_v60 = vadd.f32 %v1868_v56, %v1867_v55 }
 0x22a   : > { %v1846_v61 = vrot.slane %v1845_v57, 1 }
 0x22b   : > { %v1862_v62 = vrot.slane %v1861_v58, 1  ;;  %v1854_v63 = vrot.slane %v1853_v59, 1  ;;  %v1870_v0 = vrot.slane %v1869_v60, 1 }
 0x22c   : > { %v1847_v1 = vadd.f32 %v1846_v61, %v1845_v57 }
 0x22d   : > { %v1863_v3 = vadd.f32 %v1862_v62, %v1861_v58  ;;  %v1855_v4 = vadd.f32 %v1854_v63, %v1853_v59  ;;  %v1871_v6 = vadd.f32 %v1870_v0, %v1869_v60 }
 0x22f   : > { %v1969_v7 = vcombine.low %v1847_v1, %v1855_v4  ;;  %v1970_v8 = vcombine.low %v1863_v3, %v1871_v6 }
 0x231   : > { %v8277_v28 = vrot.slane %v1969_v7, %v8182_v18  ;;  %v8280_v35 = vrot.slane %v1970_v8, %v8182_v18 }
 0x232   : > { %v1592_v42 = vpop.f32.mrb[24].mxu1  ;;  %v1643_v43 = vpop.f32.mrb[28].mxu0 }
 0x233   : > { %v2001_v44 = vcombine.low %v8277_v28, %v8280_v35  ;;  %v1593_v45 = vadd.f32 %v1592_v42, %v583_v9  ;;  %v1644_v36 = vadd.f32 %v1643_v43, %v591_v12  ;;  %v1594_v37 = vpop.f32.mrb[25].mxu1  ;;  %v1645_v46 = vpop.f32.mrb[29].mxu0  ;;  %v6782_v28 = vld [vmem:[%s9924_s5] ss:$16 sps:$4 sm:$0xff] (!%p6145_p8)   ;;  %v6783_v35 = vld [vmem:[%s9924_s5 + $0x8] ss:$16 sps:$4 sm:$0xff] (!%p6145_p8)  }
 0x234   : > { %v1595_v22 = vadd.f32 %v1594_v37, %v587_v21  ;;  %v1646_v23 = vadd.f32 %v1645_v46, %v595_v27  ;;  %v1596_v24 = vpop.f32.mrb[26].mxu1  ;;  %v1647_v13 = vpop.f32.mrb[30].mxu0 }
 0x235   : > { %v1672_v5 = vmax.f32 %v1593_v45, 0.0  ;;  %v1674_v25 = vmax.f32 %v1644_v36, 0.0  ;;  %v1597_v17 = vadd.f32 %v1596_v24, %v583_v9  ;;  %v1598_v19 = vpop.f32.mrb[27].mxu1  ;;  %v1649_v20 = vpop.f32.mrb[31].mxu0  ;;  %v1648_v40 = vadd.f32 %v1647_v13, %v591_v12 }
 0x236   : > { %v1673_v31 = vmax.f32 %v1595_v22, 0.0  ;;  %v1675_v39 = vmax.f32 %v1646_v23, 0.0  ;;  %v1599_v47 = vadd.f32 %v1598_v19, %v587_v21  ;;  %v1650_v52 = vadd.f32 %v1649_v20, %v595_v27 }
 0x237   : > { %v1738_v48 = vsel %vm1717_vm1, %v1672_v5, 0.0  ;;  %v1740_v50 = vsel %vm1717_vm1, %v1674_v25, 0.0  ;;  %v1688_v51 = vmax.f32 %v1597_v17, 0.0  ;;  %v1690_v55 = vmax.f32 %v1648_v40, 0.0 }
 0x238   : > { %v1739_v53 = vsel %vm1717_vm1, %v1673_v31, 0.0  ;;  %v1741_v54 = vsel %vm1717_vm1, %v1675_v39, 0.0  ;;  %v1689_v26 = vmax.f32 %v1599_v47, 0.0  ;;  %v1691_v34 = vmax.f32 %v1650_v52, 0.0 }
 0x239   : > { %v1754_v30 = vsel %vm1718_vm2, %v1688_v51, 0.0  ;;  %v1756_v57 = vsel %vm1718_vm2, %v1690_v55, 0.0 }
 0x23a   : > { %v1872_v56 = vadd.f32 %v1754_v30, %v1738_v48  ;;  %v1755_v58 = vsel %vm1718_vm2, %v1689_v26, 0.0  ;;  %v1602_v59 = vpop.f32.mrb[28].mxu1  ;;  %v1653_v60 = vpop.f32.mrb[32].mxu0  ;;  %v1888_v61 = vadd.f32 %v1756_v57, %v1740_v50  ;;  %v1757_v38 = vsel %vm1718_vm2, %v1691_v34, 0.0 }
 0x23b   : > { %v1880_v62 = vadd.f32 %v1755_v58, %v1739_v53  ;;  %v1603_v63 = vadd.f32 %v1602_v59, %v583_v9  ;;  %v1604_v0 = vpop.f32.mrb[29].mxu1  ;;  %v1655_v1 = vpop.f32.mrb[33].mxu0  ;;  %v1896_v3 = vadd.f32 %v1757_v38, %v1741_v54  ;;  %v1654_v4 = vadd.f32 %v1653_v60, %v591_v12 }
 0x23c   : > { %v1605_v6 = vadd.f32 %v1604_v0, %v587_v21  ;;  %v1656_v7 = vadd.f32 %v1655_v1, %v595_v27  ;;  %v1606_v8 = vpop.f32.mrb[30].mxu1  ;;  %v1657_v42 = vpop.f32.mrb[34].mxu0  ;;  %v2009_v0 = vrot.slane %v2001_v44, %v8182_v18  ;;  %v6784_v44 = vld [vmem:[%s9924_s5 + $0x24] ss:$16 sps:$4 sm:$0xff] (!%p6145_p8)  }
 0x23d   : > { %v1704_v43 = vmax.f32 %v1603_v63, 0.0  ;;  %v1607_v45 = vpop.f32.mrb[31].mxu1  ;;  %v1658_v36 = vpop.f32.mrb[35].mxu0  ;;  %v1706_v37 = vmax.f32 %v1654_v4, 0.0  ;;  %v6780_v8 = vld [vmem:[%s9924_s5 + $0xc] ss:$16 sps:$4 sm:$0xff] (!%p6145_p8)  }
 0x23e   : > { %v1705_v46 = vmax.f32 %v1605_v6, 0.0  ;;  %v1707_v22 = vmax.f32 %v1656_v7, 0.0  ;;  %v6778_v7 = vld [vmem:[%s9924_s5 + $0x4] ss:$16 sps:$4 sm:$0xff] (!%p6145_p8)   ;;  %5552 = vmatprep.subr.bf16.mxu1 (!%p6145_p8), %v6780_v8  ;;  %v6786_v42 = vld [vmem:[%s9924_s5 + $0x2c] ss:$16 sps:$4 sm:$0xff] (!%p6145_p8)  }
 0x23f   : > { %v1770_v23 = vsel %vm1719_vm3, %v1704_v43, 0.0  ;;  %v1772_v9 = vsel %vm1719_vm3, %v1706_v37, 0.0  ;;  %5224 = vmatprep.subr.bf16.mxu0 (!%p6145_p8), %v6778_v7  ;;  %5553 = vmatpush1.bf16.msra.mxu1 (!%p6145_p8), %v6783_v35  ;;  %v6788_v43 = vld [vmem:[%s9924_s5 + $0x20] ss:$16 sps:$4 sm:$0xff] (!%p6145_p8)   ;;  %v6789_v45 = vld [vmem:[%s9924_s5 + $0x28] ss:$16 sps:$4 sm:$0xff] (!%p6145_p8)  }
 0x240   : > { %v1873_v41 = vadd.f32 %v1872_v56, %v1770_v23  ;;  %v1771_v12 = vsel %vm1719_vm3, %v1705_v46, 0.0  ;;  %v1773_v21 = vsel %vm1719_vm3, %v1707_v22, 0.0  ;;  %v1889_v27 = vadd.f32 %v1888_v61, %v1772_v9  ;;  %5225 = vmatpush1.bf16.msra.mxu0 (!%p6145_p8), %v6782_v28  ;;  %5554 = vmatprep.subr.bf16.mxu1 (!%p6145_p8), %v6786_v42  ;;  %v6790_v36 = vld [vmem:[%s9924_s5 + $0x44] ss:$16 sps:$4 sm:$0xff] (!%p6145_p8)   ;;  %v6792_v37 = vld [vmem:[%s9924_s5 + $0x4c] ss:$16 sps:$4 sm:$0xff] (!%p6145_p8)  }
 0x241   : > { %v1881_v24 = vadd.f32 %v1880_v62, %v1771_v12  ;;  %v1897_v13 = vadd.f32 %v1896_v3, %v1773_v21  ;;  %v1775_v3 = vld [vmem:[#allocation2 + $0x8] sm:$0xff]  ;;  %5226 = vmatprep.subr.bf16.mxu0 (!%p6145_p8), %v6784_v44  ;;  %v6794_v46 = vld [vmem:[%s9924_s5 + $0x40] ss:$16 sps:$4 sm:$0xff] (!%p6145_p8)   ;;  %v6796_v23 = vld [vmem:[%s9924_s5 + $0x64] ss:$16 sps:$4 sm:$0xff] (!%p6145_p8)  }
 0x242   : > { %v1874_v5 = vrot.slane %v1873_v41, 4  ;;  %v1890_v25 = vrot.slane %v1889_v27, 4  ;;  %v6795_v22 = vld [vmem:[%s9924_s5 + $0x48] ss:$16 sps:$4 sm:$0xff] (!%p6145_p8)   ;;  %v6800_v9 = vld [vmem:[%s9924_s5 + $0x60] ss:$16 sps:$4 sm:$0xff] (!%p6145_p8)  }
 0x243   : > { %v1882_v17 = vrot.slane %v1881_v24, 4  ;;  %v1898_v19 = vrot.slane %v1897_v13, 4  ;;  %5555 = vmatpush1.bf16.msra.mxu1 (!%p6145_p8), %v6789_v45  ;;  %v6801_v12 = vld [vmem:[%s9924_s5 + $0x68] ss:$16 sps:$4 sm:$0xff] (!%p6145_p8)   ;;  %v6802_v21 = vld [vmem:[%s9924_s5 + $0x84] ss:$16 sps:$4 sm:$0xff] (!%p6145_p8)  }
 0x244   : > { %v1875_v20 = vadd.f32 %v1874_v5, %v1873_v41  ;;  %v1891_v31 = vadd.f32 %v1890_v25, %v1889_v27  ;;  %5227 = vmatpush1.bf16.msra.mxu0 (!%p6145_p8), %v6788_v43  ;;  %5556 = vmatprep.subr.bf16.mxu1 (!%p6145_p8), %v6792_v37  ;;  %v6798_v41 = vld [vmem:[%s9924_s5 + $0x6c] ss:$16 sps:$4 sm:$0xff] (!%p6145_p8)   ;;  %v6808_v5 = vld [vmem:[%s9924_s5 + $0xa4] ss:$16 sps:$4 sm:$0xff] (!%p6145_p8)   ;;  %v6855_v8 = vld [vmem:[%s9924_s5 + $0x188] ss:$16 sps:$4 sm:$0xff] (!%p6145_p8)  }
 0x245   : > { %v1883_v39 = vadd.f32 %v1882_v17, %v1881_v24  ;;  %v1899_v40 = vadd.f32 %v1898_v19, %v1897_v13  ;;  %5228 = vmatprep.subr.bf16.mxu0 (!%p6145_p8), %v6790_v36  ;;  %v6804_v27 = vld [vmem:[%s9924_s5 + $0x8c] ss:$16 sps:$4 sm:$0xff] (!%p6145_p8)   ;;  %v6806_v24 = vld [vmem:[%s9924_s5 + $0x80] ss:$16 sps:$4 sm:$0xff] (!%p6145_p8)   ;;  %v6807_v13 = vld [vmem:[%s9924_s5 + $0x88] ss:$16 sps:$4 sm:$0xff] (!%p6145_p8)  }
 0x246   : > { %v1876_v47 = vrot.slane %v1875_v20, 2  ;;  %v1892_v48 = vrot.slane %v1891_v31, 2  ;;  %v6810_v25 = vld [vmem:[%s9924_s5 + $0xac] ss:$16 sps:$4 sm:$0xff] (!%p6145_p8)   ;;  %v6812_v17 = vld [vmem:[%s9924_s5 + $0xa0] ss:$16 sps:$4 sm:$0xff] (!%p6145_p8)  }
 0x247   : > { %v1884_v50 = vrot.slane %v1883_v39, 2  ;;  %v1900_v51 = vrot.slane %v1899_v40, 2  ;;  %5557 = vmatpush1.bf16.msra.mxu1 (!%p6145_p8), %v6795_v22  ;;  %v6813_v19 = vld [vmem:[%s9924_s5 + $0xa8] ss:$16 sps:$4 sm:$0xff] (!%p6145_p8)   ;;  %v6856_v28 = vld [vmem:[%s9924_s5 + $0x1a4] ss:$16 sps:$4 sm:$0xff] (!%p6145_p8)  }
 0x248   : > { %v1877_v52 = vadd.f32 %v1876_v47, %v1875_v20  ;;  %v1893_v53 = vadd.f32 %v1892_v48, %v1891_v31  ;;  %5229 = vmatpush1.bf16.msra.mxu0 (!%p6145_p8), %v6794_v46  ;;  %5558 = vmatprep.subr.bf16.mxu1 (!%p6145_p8), %v6798_v41  ;;  %v6814_v20 = vld [vmem:[%s9924_s5 + $0xc4] ss:$16 sps:$4 sm:$0xff] (!%p6145_p8)   ;;  %v6816_v31 = vld [vmem:[%s9924_s5 + $0xcc] ss:$16 sps:$4 sm:$0xff] (!%p6145_p8)   ;;  %v6860_v44 = vld [vmem:[%s9924_s5 + $0x1a0] ss:$16 sps:$4 sm:$0xff] (!%p6145_p8)  }
 0x249   : > { %v1885_v54 = vadd.f32 %v1884_v50, %v1883_v39  ;;  %v1901_v2 = vadd.f32 %v1900_v51, %v1899_v40  ;;  %5230 = vmatprep.subr.bf16.mxu0 (!%p6145_p8), %v6796_v23  ;;  %v6818_v39 = vld [vmem:[%s9924_s5 + $0xc0] ss:$16 sps:$4 sm:$0xff] (!%p6145_p8)   ;;  %v6819_v40 = vld [vmem:[%s9924_s5 + $0xc8] ss:$16 sps:$4 sm:$0xff] (!%p6145_p8)   ;;  %v6820_v47 = vld [vmem:[%s9924_s5 + $0xe4] ss:$16 sps:$4 sm:$0xff] (!%p6145_p8)  }
 0x24a   : > { %v1878_v55 = vrot.slane %v1877_v52, 1  ;;  %v1894_v26 = vrot.slane %v1893_v53, 1  ;;  %v6822_v48 = vld [vmem:[%s9924_s5 + $0xec] ss:$16 sps:$4 sm:$0xff] (!%p6145_p8)   ;;  %v6824_v50 = vld [vmem:[%s9924_s5 + $0xe0] ss:$16 sps:$4 sm:$0xff] (!%p6145_p8)  }
 0x24b   : > { %v1886_v30 = vrot.slane %v1885_v54, 1  ;;  %v1902_v34 = vrot.slane %v1901_v2, 1  ;;  %5559 = vmatpush1.bf16.msra.mxu1 (!%p6145_p8), %v6801_v12  ;;  %v6825_v51 = vld [vmem:[%s9924_s5 + $0xe8] ss:$16 sps:$4 sm:$0xff] (!%p6145_p8)   ;;  %v6858_v35 = vld [vmem:[%s9924_s5 + $0x1ac] ss:$16 sps:$4 sm:$0xff] (!%p6145_p8)  }
 0x24c   : > { %v1879_v56 = vadd.f32 %v1878_v55, %v1877_v52  ;;  %v1895_v57 = vadd.f32 %v1894_v26, %v1893_v53  ;;  %5231 = vmatpush1.bf16.msra.mxu0 (!%p6145_p8), %v6800_v9  ;;  %5560 = vmatprep.subr.bf16.mxu1 (!%p6145_p8), %v6804_v27  ;;  %v6826_v52 = vld [vmem:[%s9924_s5 + $0x104] ss:$16 sps:$4 sm:$0xff] (!%p6145_p8)   ;;  %v6828_v53 = vld [vmem:[%s9924_s5 + $0x10c] ss:$16 sps:$4 sm:$0xff] (!%p6145_p8)   ;;  %v6861_v42 = vld [vmem:[%s9924_s5 + $0x1a8] ss:$16 sps:$4 sm:$0xff] (!%p6145_p8)  }
 0x24d   : > { %v1887_v58 = vadd.f32 %v1886_v30, %v1885_v54  ;;  %v1903_v59 = vadd.f32 %v1902_v34, %v1901_v2  ;;  %5232 = vmatprep.subr.bf16.mxu0 (!%p6145_p8), %v6802_v21  ;;  %v6830_v54 = vld [vmem:[%s9924_s5 + $0x100] ss:$16 sps:$4 sm:$0xff] (!%p6145_p8)   ;;  %v6831_v2 = vld [vmem:[%s9924_s5 + $0x108] ss:$16 sps:$4 sm:$0xff] (!%p6145_p8)   ;;  %v6832_v55 = vld [vmem:[%s9924_s5 + $0x124] ss:$16 sps:$4 sm:$0xff] (!%p6145_p8)  }
 0x24e   : > { %v6834_v26 = vld [vmem:[%s9924_s5 + $0x12c] ss:$16 sps:$4 sm:$0xff] (!%p6145_p8)   ;;  %v6836_v30 = vld [vmem:[%s9924_s5 + $0x120] ss:$16 sps:$4 sm:$0xff] (!%p6145_p8)   ;;  %v6837_v34 = vld [vmem:[%s9924_s5 + $0x128] ss:$16 sps:$4 sm:$0xff] (!%p6145_p8)  }
 0x24f   : > { %v1971_v60 = vcombine.low %v1879_v56, %v1887_v58  ;;  %v1972_v61 = vcombine.low %v1895_v57, %v1903_v59  ;;  %5561 = vmatpush1.bf16.msra.mxu1 (!%p6145_p8), %v6807_v13  ;;  %v6838_v56 = vld [vmem:[%s9924_s5 + $0x144] ss:$16 sps:$4 sm:$0xff] (!%p6145_p8)   ;;  %v6840_v57 = vld [vmem:[%s9924_s5 + $0x14c] ss:$16 sps:$4 sm:$0xff] (!%p6145_p8)   ;;  %v6842_v58 = vld [vmem:[%s9924_s5 + $0x140] ss:$16 sps:$4 sm:$0xff] (!%p6145_p8)  }
 0x250   : > { %5233 = vmatpush1.bf16.msra.mxu0 (!%p6145_p8), %v6806_v24  ;;  %5562 = vmatprep.subr.bf16.mxu1 (!%p6145_p8), %v6810_v25  ;;  %v6843_v59 = vld [vmem:[%s9924_s5 + $0x148] ss:$16 sps:$4 sm:$0xff] (!%p6145_p8)   ;;  %v6862_v43 = vld [vmem:[%s9924_s5 + $0x1c4] ss:$16 sps:$4 sm:$0xff] (!%p6145_p8)   ;;  %v6864_v45 = vld [vmem:[%s9924_s5 + $0x1cc] ss:$16 sps:$4 sm:$0xff] (!%p6145_p8)  }
 0x251   : > { %v1993_v62 = vrot.slane %v1971_v60, %v8182_v18  ;;  %v2000_v38 = vrot.slane %v1972_v61, %v8182_v18  ;;  %5234 = vmatprep.subr.bf16.mxu0 (!%p6145_p8), %v6808_v5  ;;  %v6844_v60 = vld [vmem:[%s9924_s5 + $0x164] ss:$16 sps:$4 sm:$0xff] (!%p6145_p8)   ;;  %v6846_v61 = vld [vmem:[%s9924_s5 + $0x16c] ss:$16 sps:$4 sm:$0xff] (!%p6145_p8)   ;;  %v6866_v36 = vld [vmem:[%s9924_s5 + $0x1c0] ss:$16 sps:$4 sm:$0xff] (!%p6145_p8)  }
 0x252   : > { %v6867_v37 = vld [vmem:[%s9924_s5 + $0x1c8] ss:$16 sps:$4 sm:$0xff] (!%p6145_p8)   ;;  %v6868_v46 = vld [vmem:[%s9924_s5 + $0x1e4] ss:$16 sps:$4 sm:$0xff] (!%p6145_p8)   ;;  %v6870_v22 = vld [vmem:[%s9924_s5 + $0x1ec] ss:$16 sps:$4 sm:$0xff] (!%p6145_p8)  }
 0x253   : > { %v2002_v63 = vcombine.low %v1993_v62, %v2000_v38  ;;  %5563 = vmatpush1.bf16.msra.mxu1 (!%p6145_p8), %v6813_v19  ;;  %v2028_v62 = vld [vmem:[#allocation2] sm:$0xff] (!%p6145_p8)  ;;  %v6873_v9 = vld [vmem:[%s9924_s5 + $0x1e8] ss:$16 sps:$4 sm:$0xff] (!%p6145_p8)   ;;  %v6879_v21 = vld [vmem:[%s9924_s5 + $0x20c] ss:$16 sps:$4 sm:$0xff] (!%p6145_p8)  }
 0x254   : > { %5235 = vmatpush1.bf16.msra.mxu0 (!%p6145_p8), %v6812_v17  ;;  %5564 = vmatprep.subr.bf16.mxu1 (!%p6145_p8), %v6816_v31  ;;  %v6848_v38 = vld [vmem:[%s9924_s5 + $0x160] ss:$16 sps:$4 sm:$0xff] (!%p6145_p8)   ;;  %v6876_v12 = vld [vmem:[%s9924_s5 + $0x204] ss:$16 sps:$4 sm:$0xff] (!%p6145_p8)   ;;  %v6877_v5 = vld [vmem:[%s9924_s5 + $0x208] ss:$16 sps:$4 sm:$0xff] (!%p6145_p8)  }
 0x255   : > { %v2016_v1 = vrot.slane %v2002_v63, %v8182_v18  ;;  %2027 = sbr.rel (%p6145_p8) target bundleno = 1477 (0x5c5), region = 56  ;;  %5236 = vmatprep.subr.bf16.mxu0 (!%p6145_p8), %v6814_v20  ;;  %v8457_v63 = vmul.f32 (!%p6145_p8), 0.015625, %v2028_v62  ;;  %v6872_v23 = vld [vmem:[%s9924_s5 + $0x1e0] ss:$16 sps:$4 sm:$0xff] (!%p6145_p8)   ;;  %v6882_v25 = vld [vmem:[%s9924_s5 + $0x224] ss:$16 sps:$4 sm:$0xff] (!%p6145_p8)  }
 0x256   : > { %v6874_v24 = vld [vmem:[%s9924_s5 + $0x200] ss:$16 sps:$4 sm:$0xff] (!%p6145_p8)   ;;  %v6885_v17 = vld [vmem:[%s9924_s5 + $0x22c] ss:$16 sps:$4 sm:$0xff] (!%p6145_p8)   ;;  %v6883_v31 = vld [vmem:[%s9924_s5 + $0x228] ss:$16 sps:$4 sm:$0xff] (!%p6145_p8)  }
 0x257   : > { %v2017_v4 = vcombine.low %v2009_v0, %v2016_v1  ;;  %5565 = vmatpush1.bf16.msra.mxu1 (!%p6145_p8), %v6819_v40  ;;  %v6849_v0 = vld [vmem:[%s9924_s5 + $0x168] ss:$16 sps:$4 sm:$0xff] (!%p6145_p8)   ;;  %v6850_v1 = vld [vmem:[%s9924_s5 + $0x184] ss:$16 sps:$4 sm:$0xff] (!%p6145_p8)   ;;  %v2037_v41 = vrot.slane (!%p6145_p8), %v8457_v63, %v8109_v32  ;;  %v2049_v27 = vrot.slane (!%p6145_p8), %v8457_v63, %v8123_v49  ;;  %v6880_v20 = vld [vmem:[%s9924_s5 + $0x220] ss:$16 sps:$4 sm:$0xff] (!%p6145_p8)  }
 0x258   : > { %5237 = vmatpush1.bf16.msra.mxu0 (!%p6145_p8), %v6818_v39  ;;  %5566 = vmatprep.subr.bf16.mxu1 (!%p6145_p8), %v6822_v48  ;;  %v6888_v39 = vld [vmem:[%s9924_s5 + $0x244] ss:$16 sps:$4 sm:$0xff] (!%p6145_p8)   ;;  %v6891_v40 = vld [vmem:[%s9924_s5 + $0x24c] ss:$16 sps:$4 sm:$0xff] (!%p6145_p8)   ;;  %v6889_v48 = vld [vmem:[%s9924_s5 + $0x248] ss:$16 sps:$4 sm:$0xff] (!%p6145_p8)  }
 0x259   : > { %v2021_v6 = vadd.f32 %v2017_v4, %v1775_v3  ;;  %5238 = vmatprep.subr.bf16.mxu0 (!%p6145_p8), %v6820_v47  ;;  %v6852_v3 = vld [vmem:[%s9924_s5 + $0x18c] ss:$16 sps:$4 sm:$0xff] (!%p6145_p8)   ;;  %v2041_v4 = vrot.slane (!%p6145_p8), %v8457_v63, %v8120_v16  ;;  %v2114_v13 = vpack.c.bf16 (!%p6145_p8), %v2037_v41, %v2037_v41  ;;  %v2117_v19 = vpack.c.bf16 (!%p6145_p8), %v2049_v27, %v2049_v27  ;;  %v6886_v47 = vld [vmem:[%s9924_s5 + $0x240] ss:$16 sps:$4 sm:$0xff] (!%p6145_p8)   ;;  %v6918_v62 = vld [vmem:[%s9924_s5 + $0x2e4] ss:$16 sps:$4 sm:$0xff] (!%p6145_p8)  }
 0x25a   : > { %v6948_v41 = vld [vmem:[%s9924_s5 + $0x384] ss:$16 sps:$4 sm:$0xff] (!%p6145_p8)  }
 0x25b   : > { %2023 = vst [vmem:[#allocation2 + $0x8] sm:$0xff] %v2021_v6  ;;  %5567 = vmatpush1.bf16.msra.mxu1 (!%p6145_p8), %v6825_v51  ;;  %v6854_v6 = vld [vmem:[%s9924_s5 + $0x180] ss:$16 sps:$4 sm:$0xff] (!%p6145_p8)   ;;  %v2115_v7 = vpack.c.bf16 (!%p6145_p8), %v2041_v4, %v2041_v4  ;;  %v6897_v51 = vld [vmem:[%s9924_s5 + $0x26c] ss:$16 sps:$4 sm:$0xff] (!%p6145_p8)  }
 0x25c   : > { %5239 = vmatpush1.bf16.msra.mxu0 %v6824_v50  ;;  %5568 = vmatprep.subr.bf16.mxu1 %v6828_v53  ;;  %v6894_v50 = vld [vmem:[%s9924_s5 + $0x264] ss:$16 sps:$4 sm:$0xff]   ;;  %v6895_v53 = vld [vmem:[%s9924_s5 + $0x268] ss:$16 sps:$4 sm:$0xff]   ;;  %v6927_v4 = vld [vmem:[%s9924_s5 + $0x30c] ss:$16 sps:$4 sm:$0xff]  }
 0x25d   : > { %5240 = vmatprep.subr.bf16.mxu0 %v6826_v52  ;;  %5256 = vmatprep.mubr.bf16.mxu0 %v2115_v7  ;;  %v6892_v52 = vld [vmem:[%s9924_s5 + $0x260] ss:$16 sps:$4 sm:$0xff]   ;;  %v6954_v27 = vld [vmem:[%s9924_s5 + $0x3a4] ss:$16 sps:$4 sm:$0xff]  }
 0x25e   : > { %5584 = vmatprep.mubr.bf16.mxu1 %v2115_v7  ;;  %v6925_v7 = vld [vmem:[%s9924_s5 + $0x308] ss:$16 sps:$4 sm:$0xff]  }
 0x25f   : > { %5569 = vmatpush1.bf16.msra.mxu1 %v6831_v2  ;;  %v6903_v2 = vld [vmem:[%s9924_s5 + $0x28c] ss:$16 sps:$4 sm:$0xff]  }
 0x260   : > { %5241 = vmatpush1.bf16.msra.mxu0 %v6830_v54  ;;  %5570 = vmatprep.subr.bf16.mxu1 %v6834_v26  ;;  %v6900_v54 = vld [vmem:[%s9924_s5 + $0x284] ss:$16 sps:$4 sm:$0xff]   ;;  %v6901_v26 = vld [vmem:[%s9924_s5 + $0x288] ss:$16 sps:$4 sm:$0xff]  }
 0x261   : > { %5242 = vmatprep.subr.bf16.mxu0 %v6832_v55  ;;  %v6898_v55 = vld [vmem:[%s9924_s5 + $0x280] ss:$16 sps:$4 sm:$0xff]  }
 0x263   : > { %5571 = vmatpush1.bf16.msra.mxu1 %v6837_v34  ;;  %v6909_v34 = vld [vmem:[%s9924_s5 + $0x2ac] ss:$16 sps:$4 sm:$0xff]  }
 0x264   : > { %5243 = vmatpush1.bf16.msra.mxu0 %v6836_v30  ;;  %5572 = vmatprep.subr.bf16.mxu1 %v6840_v57  ;;  %v6906_v30 = vld [vmem:[%s9924_s5 + $0x2a4] ss:$16 sps:$4 sm:$0xff]   ;;  %v6907_v57 = vld [vmem:[%s9924_s5 + $0x2a8] ss:$16 sps:$4 sm:$0xff]  }
 0x265   : > { %5244 = vmatprep.subr.bf16.mxu0 %v6838_v56  ;;  %v6904_v56 = vld [vmem:[%s9924_s5 + $0x2a0] ss:$16 sps:$4 sm:$0xff]  }
 0x267   : > { %5573 = vmatpush1.bf16.msra.mxu1 %v6843_v59  ;;  %v6915_v59 = vld [vmem:[%s9924_s5 + $0x2cc] ss:$16 sps:$4 sm:$0xff]  }
 0x268   : > { %5245 = vmatpush1.bf16.msra.mxu0 %v6842_v58  ;;  %5574 = vmatprep.subr.bf16.mxu1 %v6846_v61  ;;  %v6912_v58 = vld [vmem:[%s9924_s5 + $0x2c4] ss:$16 sps:$4 sm:$0xff]   ;;  %v6913_v61 = vld [vmem:[%s9924_s5 + $0x2c8] ss:$16 sps:$4 sm:$0xff]  }
 0x269   : > { %5246 = vmatprep.subr.bf16.mxu0 %v6844_v60  ;;  %v6910_v60 = vld [vmem:[%s9924_s5 + $0x2c0] ss:$16 sps:$4 sm:$0xff]  }
 0x26b   : > { %5575 = vmatpush1.bf16.msra.mxu1 %v6849_v0  ;;  %v6916_v0 = vld [vmem:[%s9924_s5 + $0x2e0] ss:$16 sps:$4 sm:$0xff]  }
 0x26c   : > { %5247 = vmatpush1.bf16.msra.mxu0 %v6848_v38  ;;  %5576 = vmatprep.subr.bf16.mxu1 %v6852_v3  ;;  %v6921_v38 = vld [vmem:[%s9924_s5 + $0x2ec] ss:$16 sps:$4 sm:$0xff]   ;;  %v6924_v3 = vld [vmem:[%s9924_s5 + $0x304] ss:$16 sps:$4 sm:$0xff]  }
 0x26d   : > { %5248 = vmatprep.subr.bf16.mxu0 %v6850_v1  ;;  %v6919_v1 = vld [vmem:[%s9924_s5 + $0x2e8] ss:$16 sps:$4 sm:$0xff]  }
 0x26f   : > { %5577 = vmatpush1.bf16.msra.mxu1 %v6855_v8  ;;  %v6930_v8 = vld [vmem:[%s9924_s5 + $0x324] ss:$16 sps:$4 sm:$0xff]  }
 0x270   : > { %5249 = vmatpush1.bf16.msra.mxu0 %v6854_v6  ;;  %5578 = vmatprep.subr.bf16.mxu1 %v6858_v35  ;;  %v6922_v6 = vld [vmem:[%s9924_s5 + $0x300] ss:$16 sps:$4 sm:$0xff]  }
 0x271   : > { %5250 = vmatprep.subr.bf16.mxu0 %v6856_v28  ;;  %v6933_v28 = vld [vmem:[%s9924_s5 + $0x32c] ss:$16 sps:$4 sm:$0xff]   ;;  %v6928_v35 = vld [vmem:[%s9924_s5 + $0x320] ss:$16 sps:$4 sm:$0xff]  }
 0x273   : > { %5579 = vmatpush1.bf16.msra.mxu1 %v6861_v42  ;;  %v6936_v42 = vld [vmem:[%s9924_s5 + $0x344] ss:$16 sps:$4 sm:$0xff]  }
 0x274   : > { %5251 = vmatpush1.bf16.msra.mxu0 %v6860_v44  ;;  %5580 = vmatprep.subr.bf16.mxu1 %v6864_v45  ;;  %v6931_v44 = vld [vmem:[%s9924_s5 + $0x328] ss:$16 sps:$4 sm:$0xff]   ;;  %v6934_v45 = vld [vmem:[%s9924_s5 + $0x340] ss:$16 sps:$4 sm:$0xff]  }
 0x275   : > { %5252 = vmatprep.subr.bf16.mxu0 %v6862_v43  ;;  %v6939_v43 = vld [vmem:[%s9924_s5 + $0x34c] ss:$16 sps:$4 sm:$0xff]  }
 0x277   : > { %5581 = vmatpush1.bf16.msra.mxu1 %v6867_v37  ;;  %v6942_v37 = vld [vmem:[%s9924_s5 + $0x364] ss:$16 sps:$4 sm:$0xff]  }
 0x278   : > { %5253 = vmatpush1.bf16.msra.mxu0 %v6866_v36  ;;  %5582 = vmatprep.subr.bf16.mxu1 %v6870_v22  ;;  %v6937_v36 = vld [vmem:[%s9924_s5 + $0x348] ss:$16 sps:$4 sm:$0xff]   ;;  %v6940_v22 = vld [vmem:[%s9924_s5 + $0x360] ss:$16 sps:$4 sm:$0xff]  }
 0x279   : > { %5254 = vmatprep.subr.bf16.mxu0 %v6868_v46  ;;  %v6945_v46 = vld [vmem:[%s9924_s5 + $0x36c] ss:$16 sps:$4 sm:$0xff]  }
 0x27b   : > { %5583 = vmatpush1.bf16.msra.mxu1 %v6873_v9  ;;  %v6951_v9 = vld [vmem:[%s9924_s5 + $0x38c] ss:$16 sps:$4 sm:$0xff]  }
 0x27c   : > { %5255 = vmatpush1.bf16.msra.mxu0 %v6872_v23  ;;  %5593 = vmatprep.subr.bf16.mxu1 %v6879_v21  ;;  %v6943_v23 = vld [vmem:[%s9924_s5 + $0x368] ss:$16 sps:$4 sm:$0xff]  }
 0x27d   : > { %5265 = vmatprep.subr.bf16.mxu0 %v6876_v12  ;;  %v6946_v12 = vld [vmem:[%s9924_s5 + $0x380] ss:$16 sps:$4 sm:$0xff]   ;;  %v6949_v21 = vld [vmem:[%s9924_s5 + $0x388] ss:$16 sps:$4 sm:$0xff]  }
 0x27e   : > { %5585 = vmatmul.mubr.bf16.vlgmr.msra.gmra.mrb[0].mxu1 %v2114_v13 }
 0x27f   : > { %5257 = vmatmul.mubr.bf16.vlgmr.msra.gmra.mrb[0].mxu0 %v2114_v13  ;;  %5594 = vmatpush1.bf16.msra.mxu1 %v6877_v5  ;;  %v6952_v13 = vld [vmem:[%s9924_s5 + $0x3a0] ss:$16 sps:$4 sm:$0xff]   ;;  %v6955_v5 = vld [vmem:[%s9924_s5 + $0x3a8] ss:$16 sps:$4 sm:$0xff]  }
 0x280   : > { %5266 = vmatpush1.bf16.msra.mxu0 %v6874_v24  ;;  %5595 = vmatprep.subr.bf16.mxu1 %v6885_v17  ;;  %v6957_v24 = vld [vmem:[%s9924_s5 + $0x3ac] ss:$16 sps:$4 sm:$0xff]  }
 0x281   : > { %5267 = vmatprep.subr.bf16.mxu0 %v6882_v25  ;;  %5297 = vmatprep.mubr.bf16.mxu0 %v2117_v19  ;;  %v6960_v25 = vld [vmem:[%s9924_s5 + $0x3c4] ss:$16 sps:$4 sm:$0xff]   ;;  %v6963_v17 = vld [vmem:[%s9924_s5 + $0x3cc] ss:$16 sps:$4 sm:$0xff]  }
 0x282   : > { %5625 = vmatprep.mubr.bf16.mxu1 %v2117_v19  ;;  %v6958_v19 = vld [vmem:[%s9924_s5 + $0x3c0] ss:$16 sps:$4 sm:$0xff]  }
 0x283   : > { %5596 = vmatpush1.bf16.msra.mxu1 %v6883_v31  ;;  %v6966_v31 = vld [vmem:[%s9924_s5 + $0x3e4] ss:$16 sps:$4 sm:$0xff]  }
 0x284   : > { %5268 = vmatpush1.bf16.msra.mxu0 %v6880_v20  ;;  %5597 = vmatprep.subr.bf16.mxu1 %v6891_v40  ;;  %v6961_v20 = vld [vmem:[%s9924_s5 + $0x3c8] ss:$16 sps:$4 sm:$0xff]   ;;  %v6964_v40 = vld [vmem:[%s9924_s5 + $0x3e0] ss:$16 sps:$4 sm:$0xff]  }
 0x285   : > { %5269 = vmatprep.subr.bf16.mxu0 %v6888_v39  ;;  %v6969_v39 = vld [vmem:[%s9924_s5 + $0x3ec] ss:$16 sps:$4 sm:$0xff]  }
 0x287   : > { %5598 = vmatpush1.bf16.msra.mxu1 %v6889_v48  ;;  %v6967_v48 = vld [vmem:[%s9924_s5 + $0x3e8] ss:$16 sps:$4 sm:$0xff]  }
 0x288   : > { %5270 = vmatpush1.bf16.msra.mxu0 %v6886_v47  ;;  %5599 = vmatprep.subr.bf16.mxu1 %v6897_v51  ;;  %v2045_v47 = vrot.slane %v8457_v63, %v8112_v33  ;;  %v6975_v51 = vld [vmem:[%s9924_s5 + $0x40c] ss:$16 sps:$4 sm:$0xff]  }
 0x289   : > { %5271 = vmatprep.subr.bf16.mxu0 %v6894_v50  ;;  %v6972_v50 = vld [vmem:[%s9924_s5 + $0x404] ss:$16 sps:$4 sm:$0xff]  }
 0x28b   : > { %5600 = vmatpush1.bf16.msra.mxu1 %v6895_v53  ;;  %v6970_v53 = vld [vmem:[%s9924_s5 + $0x400] ss:$16 sps:$4 sm:$0xff]  }
 0x28c   : > { %5272 = vmatpush1.bf16.msra.mxu0 %v6892_v52  ;;  %5601 = vmatprep.subr.bf16.mxu1 %v6903_v2  ;;  %v2057_v52 = vrot.slane %v8457_v63, %v8176_v14  ;;  %v6973_v2 = vld [vmem:[%s9924_s5 + $0x408] ss:$16 sps:$4 sm:$0xff]  }
 0x28d   : > { %5273 = vmatprep.subr.bf16.mxu0 %v6900_v54  ;;  %v2116_v54 = vpack.c.bf16 %v2045_v47, %v2045_v47  ;;  %v7044_v47 = vld [vmem:[%s9924_s5 + $0x584] ss:$16 sps:$4 sm:$0xff]  }
 0x28f   : > { %5602 = vmatpush1.bf16.msra.mxu1 %v6901_v26  ;;  %v6981_v26 = vld [vmem:[%s9924_s5 + $0x42c] ss:$16 sps:$4 sm:$0xff]  }
 0x290   : > { %5274 = vmatpush1.bf16.msra.mxu0 %v6898_v55  ;;  %5603 = vmatprep.subr.bf16.mxu1 %v6909_v34  ;;  %v6978_v55 = vld [vmem:[%s9924_s5 + $0x424] ss:$16 sps:$4 sm:$0xff]   ;;  %v6976_v34 = vld [vmem:[%s9924_s5 + $0x420] ss:$16 sps:$4 sm:$0xff]  }
 0x291   : > { %5275 = vmatprep.subr.bf16.mxu0 %v6906_v30  ;;  %v2119_v30 = vpack.c.bf16 %v2057_v52, %v2057_v52  ;;  %v7050_v52 = vld [vmem:[%s9924_s5 + $0x5a4] ss:$16 sps:$4 sm:$0xff]  }
 0x293   : > { %5604 = vmatpush1.bf16.msra.mxu1 %v6907_v57  ;;  %v6984_v57 = vld [vmem:[%s9924_s5 + $0x444] ss:$16 sps:$4 sm:$0xff]  }
 0x294   : > { %5276 = vmatpush1.bf16.msra.mxu0 %v6904_v56  ;;  %5605 = vmatprep.subr.bf16.mxu1 %v6915_v59  ;;  %v6979_v56 = vld [vmem:[%s9924_s5 + $0x428] ss:$16 sps:$4 sm:$0xff]   ;;  %v6982_v59 = vld [vmem:[%s9924_s5 + $0x440] ss:$16 sps:$4 sm:$0xff]  }
 0x295   : > { %5277 = vmatprep.subr.bf16.mxu0 %v6912_v58  ;;  %v6987_v58 = vld [vmem:[%s9924_s5 + $0x44c] ss:$16 sps:$4 sm:$0xff]  }
 0x297   : > { %5606 = vmatpush1.bf16.msra.mxu1 %v6913_v61  ;;  %v6990_v61 = vld [vmem:[%s9924_s5 + $0x464] ss:$16 sps:$4 sm:$0xff]  }
 0x298   : > { %5278 = vmatpush1.bf16.msra.mxu0 %v6910_v60  ;;  %5607 = vmatprep.subr.bf16.mxu1 %v6921_v38  ;;  %v6985_v60 = vld [vmem:[%s9924_s5 + $0x448] ss:$16 sps:$4 sm:$0xff]   ;;  %v6988_v38 = vld [vmem:[%s9924_s5 + $0x460] ss:$16 sps:$4 sm:$0xff]  }
 0x299   : > { %5279 = vmatprep.subr.bf16.mxu0 %v6918_v62  ;;  %v6993_v62 = vld [vmem:[%s9924_s5 + $0x46c] ss:$16 sps:$4 sm:$0xff]  }
 0x29b   : > { %5608 = vmatpush1.bf16.msra.mxu1 %v6919_v1  ;;  %v6996_v1 = vld [vmem:[%s9924_s5 + $0x484] ss:$16 sps:$4 sm:$0xff]  }
 0x29c   : > { %5280 = vmatpush1.bf16.msra.mxu0 %v6916_v0  ;;  %5609 = vmatprep.subr.bf16.mxu1 %v6927_v4  ;;  %v6991_v0 = vld [vmem:[%s9924_s5 + $0x468] ss:$16 sps:$4 sm:$0xff]   ;;  %v6994_v4 = vld [vmem:[%s9924_s5 + $0x480] ss:$16 sps:$4 sm:$0xff]  }
 0x29d   : > { %5281 = vmatprep.subr.bf16.mxu0 %v6924_v3  ;;  %v6999_v3 = vld [vmem:[%s9924_s5 + $0x48c] ss:$16 sps:$4 sm:$0xff]  }
 0x29f   : > { %5610 = vmatpush1.bf16.msra.mxu1 %v6925_v7  ;;  %v7002_v7 = vld [vmem:[%s9924_s5 + $0x4a4] ss:$16 sps:$4 sm:$0xff]  }
 0x2a0   : > { %5282 = vmatpush1.bf16.msra.mxu0 %v6922_v6  ;;  %5611 = vmatprep.subr.bf16.mxu1 %v6933_v28  ;;  %v6997_v6 = vld [vmem:[%s9924_s5 + $0x488] ss:$16 sps:$4 sm:$0xff]   ;;  %v7000_v28 = vld [vmem:[%s9924_s5 + $0x4a0] ss:$16 sps:$4 sm:$0xff]  }
 0x2a1   : > { %5283 = vmatprep.subr.bf16.mxu0 %v6930_v8  ;;  %v7005_v8 = vld [vmem:[%s9924_s5 + $0x4ac] ss:$16 sps:$4 sm:$0xff]  }
 0x2a3   : > { %5612 = vmatpush1.bf16.msra.mxu1 %v6931_v44  ;;  %v7008_v44 = vld [vmem:[%s9924_s5 + $0x4c4] ss:$16 sps:$4 sm:$0xff]  }
 0x2a4   : > { %5284 = vmatpush1.bf16.msra.mxu0 %v6928_v35  ;;  %5613 = vmatprep.subr.bf16.mxu1 %v6939_v43  ;;  %v7003_v35 = vld [vmem:[%s9924_s5 + $0x4a8] ss:$16 sps:$4 sm:$0xff]   ;;  %v7006_v43 = vld [vmem:[%s9924_s5 + $0x4c0] ss:$16 sps:$4 sm:$0xff]  }
 0x2a5   : > { %5285 = vmatprep.subr.bf16.mxu0 %v6936_v42  ;;  %v7011_v42 = vld [vmem:[%s9924_s5 + $0x4cc] ss:$16 sps:$4 sm:$0xff]  }
 0x2a7   : > { %5614 = vmatpush1.bf16.msra.mxu1 %v6937_v36  ;;  %v7014_v36 = vld [vmem:[%s9924_s5 + $0x4e4] ss:$16 sps:$4 sm:$0xff]  }
 0x2a8   : > { %5286 = vmatpush1.bf16.msra.mxu0 %v6934_v45  ;;  %5615 = vmatprep.subr.bf16.mxu1 %v6945_v46  ;;  %v7009_v45 = vld [vmem:[%s9924_s5 + $0x4c8] ss:$16 sps:$4 sm:$0xff]   ;;  %v7012_v46 = vld [vmem:[%s9924_s5 + $0x4e0] ss:$16 sps:$4 sm:$0xff]  }
 0x2a9   : > { %5287 = vmatprep.subr.bf16.mxu0 %v6942_v37  ;;  %v7017_v37 = vld [vmem:[%s9924_s5 + $0x4ec] ss:$16 sps:$4 sm:$0xff]  }
 0x2ab   : > { %5616 = vmatpush1.bf16.msra.mxu1 %v6943_v23  ;;  %v7020_v23 = vld [vmem:[%s9924_s5 + $0x504] ss:$16 sps:$4 sm:$0xff]  }
 0x2ac   : > { %5288 = vmatpush1.bf16.msra.mxu0 %v6940_v22  ;;  %5617 = vmatprep.subr.bf16.mxu1 %v6951_v9  ;;  %v7015_v22 = vld [vmem:[%s9924_s5 + $0x4e8] ss:$16 sps:$4 sm:$0xff]   ;;  %v7018_v9 = vld [vmem:[%s9924_s5 + $0x500] ss:$16 sps:$4 sm:$0xff]  }
 0x2ad   : > { %5289 = vmatprep.subr.bf16.mxu0 %v6948_v41  ;;  %v7023_v41 = vld [vmem:[%s9924_s5 + $0x50c] ss:$16 sps:$4 sm:$0xff]  }
 0x2af   : > { %5618 = vmatpush1.bf16.msra.mxu1 %v6949_v21  ;;  %v7026_v21 = vld [vmem:[%s9924_s5 + $0x524] ss:$16 sps:$4 sm:$0xff]  }
 0x2b0   : > { %5290 = vmatpush1.bf16.msra.mxu0 %v6946_v12  ;;  %5619 = vmatprep.subr.bf16.mxu1 %v6957_v24  ;;  %v7021_v12 = vld [vmem:[%s9924_s5 + $0x508] ss:$16 sps:$4 sm:$0xff]   ;;  %v7024_v24 = vld [vmem:[%s9924_s5 + $0x520] ss:$16 sps:$4 sm:$0xff]  }
 0x2b1   : > { %5291 = vmatprep.subr.bf16.mxu0 %v6954_v27  ;;  %v7029_v27 = vld [vmem:[%s9924_s5 + $0x52c] ss:$16 sps:$4 sm:$0xff]  }
 0x2b3   : > { %5620 = vmatpush1.bf16.msra.mxu1 %v6955_v5  ;;  %v7032_v5 = vld [vmem:[%s9924_s5 + $0x544] ss:$16 sps:$4 sm:$0xff]  }
 0x2b4   : > { %5292 = vmatpush1.bf16.msra.mxu0 %v6952_v13  ;;  %5621 = vmatprep.subr.bf16.mxu1 %v6963_v17  ;;  %v7027_v13 = vld [vmem:[%s9924_s5 + $0x528] ss:$16 sps:$4 sm:$0xff]   ;;  %v7030_v17 = vld [vmem:[%s9924_s5 + $0x540] ss:$16 sps:$4 sm:$0xff]  }
 0x2b5   : > { %5293 = vmatprep.subr.bf16.mxu0 %v6960_v25  ;;  %v7035_v25 = vld [vmem:[%s9924_s5 + $0x54c] ss:$16 sps:$4 sm:$0xff]  }
 0x2b7   : > { %5622 = vmatpush1.bf16.msra.mxu1 %v6961_v20  ;;  %v7038_v20 = vld [vmem:[%s9924_s5 + $0x564] ss:$16 sps:$4 sm:$0xff]  }
 0x2b8   : > { %5294 = vmatpush1.bf16.msra.mxu0 %v6958_v19  ;;  %5623 = vmatprep.subr.bf16.mxu1 %v6969_v39  ;;  %v7033_v19 = vld [vmem:[%s9924_s5 + $0x548] ss:$16 sps:$4 sm:$0xff]   ;;  %v7036_v39 = vld [vmem:[%s9924_s5 + $0x560] ss:$16 sps:$4 sm:$0xff]  }
 0x2b9   : > { %5295 = vmatprep.subr.bf16.mxu0 %v6966_v31  ;;  %v7041_v31 = vld [vmem:[%s9924_s5 + $0x56c] ss:$16 sps:$4 sm:$0xff]  }
 0x2bb   : > { %5624 = vmatpush1.bf16.msra.mxu1 %v6967_v48  ;;  %v7047_v48 = vld [vmem:[%s9924_s5 + $0x58c] ss:$16 sps:$4 sm:$0xff]  }
 0x2bc   : > { %5296 = vmatpush1.bf16.msra.mxu0 %v6964_v40  ;;  %5634 = vmatprep.subr.bf16.mxu1 %v6975_v51  ;;  %v7039_v40 = vld [vmem:[%s9924_s5 + $0x568] ss:$16 sps:$4 sm:$0xff]  }
 0x2bd   : > { %5306 = vmatprep.subr.bf16.mxu0 %v6972_v50  ;;  %v7042_v50 = vld [vmem:[%s9924_s5 + $0x580] ss:$16 sps:$4 sm:$0xff]   ;;  %v7045_v51 = vld [vmem:[%s9924_s5 + $0x588] ss:$16 sps:$4 sm:$0xff]  }
 0x2be   : > { %5626 = vmatmul.mubr.bf16.vlgmr.msra.gmra.mrb[0].mxu1 %v2116_v54 }
 0x2bf   : > { %5298 = vmatmul.mubr.bf16.vlgmr.msra.gmra.mrb[0].mxu0 %v2116_v54  ;;  %5635 = vmatpush1.bf16.msra.mxu1 %v6973_v2  ;;  %v7048_v54 = vld [vmem:[%s9924_s5 + $0x5a0] ss:$16 sps:$4 sm:$0xff]   ;;  %v7051_v2 = vld [vmem:[%s9924_s5 + $0x5a8] ss:$16 sps:$4 sm:$0xff]  }
 0x2c0   : > { %5307 = vmatpush1.bf16.msra.mxu0 %v6970_v53  ;;  %5636 = vmatprep.subr.bf16.mxu1 %v6981_v26  ;;  %v7053_v53 = vld [vmem:[%s9924_s5 + $0x5ac] ss:$16 sps:$4 sm:$0xff]  }
 0x2c1   : > { %5308 = vmatprep.subr.bf16.mxu0 %v6978_v55  ;;  %5338 = vmatprep.mubr.bf16.mxu0 %v2119_v30  ;;  %v7056_v55 = vld [vmem:[%s9924_s5 + $0x5c4] ss:$16 sps:$4 sm:$0xff]   ;;  %v7059_v26 = vld [vmem:[%s9924_s5 + $0x5cc] ss:$16 sps:$4 sm:$0xff]  }
 0x2c2   : > { %5666 = vmatprep.mubr.bf16.mxu1 %v2119_v30  ;;  %v7054_v30 = vld [vmem:[%s9924_s5 + $0x5c0] ss:$16 sps:$4 sm:$0xff]  }
 0x2c3   : > { %5637 = vmatpush1.bf16.msra.mxu1 %v6979_v56  ;;  %v7062_v56 = vld [vmem:[%s9924_s5 + $0x5e4] ss:$16 sps:$4 sm:$0xff]  }
 0x2c4   : > { %5309 = vmatpush1.bf16.msra.mxu0 %v6976_v34  ;;  %5638 = vmatprep.subr.bf16.mxu1 %v6987_v58  ;;  %v7057_v34 = vld [vmem:[%s9924_s5 + $0x5c8] ss:$16 sps:$4 sm:$0xff]   ;;  %v7060_v58 = vld [vmem:[%s9924_s5 + $0x5e0] ss:$16 sps:$4 sm:$0xff]  }
 0x2c5   : > { %5310 = vmatprep.subr.bf16.mxu0 %v6984_v57  ;;  %v7065_v57 = vld [vmem:[%s9924_s5 + $0x5ec] ss:$16 sps:$4 sm:$0xff]  }
 0x2c7   : > { %5639 = vmatpush1.bf16.msra.mxu1 %v6985_v60  ;;  %v7063_v60 = vld [vmem:[%s9924_s5 + $0x5e8] ss:$16 sps:$4 sm:$0xff]  }
 0x2c8   : > { %5311 = vmatpush1.bf16.msra.mxu0 %v6982_v59  ;;  %5640 = vmatprep.subr.bf16.mxu1 %v6993_v62  ;;  %v2053_v59 = vrot.slane %v8457_v63, %v8170_v10  ;;  %v7071_v62 = vld [vmem:[%s9924_s5 + $0x60c] ss:$16 sps:$4 sm:$0xff]  }
 0x2c9   : > { %5312 = vmatprep.subr.bf16.mxu0 %v6990_v61  ;;  %v7068_v61 = vld [vmem:[%s9924_s5 + $0x604] ss:$16 sps:$4 sm:$0xff]  }
 0x2cb   : > { %5641 = vmatpush1.bf16.msra.mxu1 %v6991_v0  ;;  %v7066_v0 = vld [vmem:[%s9924_s5 + $0x600] ss:$16 sps:$4 sm:$0xff]  }
 0x2cc   : > { %5313 = vmatpush1.bf16.msra.mxu0 %v6988_v38  ;;  %5642 = vmatprep.subr.bf16.mxu1 %v6999_v3  ;;  %v2065_v38 = vrot.slane %v8457_v63, %v8179_v15  ;;  %v7069_v3 = vld [vmem:[%s9924_s5 + $0x608] ss:$16 sps:$4 sm:$0xff]  }
 0x2cd   : > { %5314 = vmatprep.subr.bf16.mxu0 %v6996_v1  ;;  %v2118_v1 = vpack.c.bf16 %v2053_v59, %v2053_v59  ;;  %v7140_v59 = vld [vmem:[%s9924_s5 + $0x784] ss:$16 sps:$4 sm:$0xff]  }
 0x2cf   : > { %5643 = vmatpush1.bf16.msra.mxu1 %v6997_v6  ;;  %v7077_v6 = vld [vmem:[%s9924_s5 + $0x62c] ss:$16 sps:$4 sm:$0xff]  }
 0x2d0   : > { %5315 = vmatpush1.bf16.msra.mxu0 %v6994_v4  ;;  %5644 = vmatprep.subr.bf16.mxu1 %v7005_v8  ;;  %v7074_v4 = vld [vmem:[%s9924_s5 + $0x624] ss:$16 sps:$4 sm:$0xff]   ;;  %v7072_v8 = vld [vmem:[%s9924_s5 + $0x620] ss:$16 sps:$4 sm:$0xff]  }
 0x2d1   : > { %5316 = vmatprep.subr.bf16.mxu0 %v7002_v7  ;;  %v2121_v7 = vpack.c.bf16 %v2065_v38, %v2065_v38  ;;  %v7146_v38 = vld [vmem:[%s9924_s5 + $0x7a4] ss:$16 sps:$4 sm:$0xff]  }
 0x2d3   : > { %5645 = vmatpush1.bf16.msra.mxu1 %v7003_v35  ;;  %v7080_v35 = vld [vmem:[%s9924_s5 + $0x644] ss:$16 sps:$4 sm:$0xff]  }
 0x2d4   : > { %5317 = vmatpush1.bf16.msra.mxu0 %v7000_v28  ;;  %5646 = vmatprep.subr.bf16.mxu1 %v7011_v42  ;;  %v7075_v28 = vld [vmem:[%s9924_s5 + $0x628] ss:$16 sps:$4 sm:$0xff]   ;;  %v7078_v42 = vld [vmem:[%s9924_s5 + $0x640] ss:$16 sps:$4 sm:$0xff]  }
 0x2d5   : > { %5318 = vmatprep.subr.bf16.mxu0 %v7008_v44  ;;  %v7083_v44 = vld [vmem:[%s9924_s5 + $0x64c] ss:$16 sps:$4 sm:$0xff]  }
 0x2d7   : > { %5647 = vmatpush1.bf16.msra.mxu1 %v7009_v45  ;;  %v7086_v45 = vld [vmem:[%s9924_s5 + $0x664] ss:$16 sps:$4 sm:$0xff]  }
 0x2d8   : > { %5319 = vmatpush1.bf16.msra.mxu0 %v7006_v43  ;;  %5648 = vmatprep.subr.bf16.mxu1 %v7017_v37  ;;  %v7081_v43 = vld [vmem:[%s9924_s5 + $0x648] ss:$16 sps:$4 sm:$0xff]   ;;  %v7084_v37 = vld [vmem:[%s9924_s5 + $0x660] ss:$16 sps:$4 sm:$0xff]  }
 0x2d9   : > { %5320 = vmatprep.subr.bf16.mxu0 %v7014_v36  ;;  %v7089_v36 = vld [vmem:[%s9924_s5 + $0x66c] ss:$16 sps:$4 sm:$0xff]  }
 0x2db   : > { %5649 = vmatpush1.bf16.msra.mxu1 %v7015_v22  ;;  %v7092_v22 = vld [vmem:[%s9924_s5 + $0x684] ss:$16 sps:$4 sm:$0xff]  }
 0x2dc   : > { %5321 = vmatpush1.bf16.msra.mxu0 %v7012_v46  ;;  %5650 = vmatprep.subr.bf16.mxu1 %v7023_v41  ;;  %v7087_v46 = vld [vmem:[%s9924_s5 + $0x668] ss:$16 sps:$4 sm:$0xff]   ;;  %v7090_v41 = vld [vmem:[%s9924_s5 + $0x680] ss:$16 sps:$4 sm:$0xff]  }
 0x2dd   : > { %5322 = vmatprep.subr.bf16.mxu0 %v7020_v23  ;;  %v7095_v23 = vld [vmem:[%s9924_s5 + $0x68c] ss:$16 sps:$4 sm:$0xff]  }
 0x2df   : > { %5651 = vmatpush1.bf16.msra.mxu1 %v7021_v12  ;;  %v7098_v12 = vld [vmem:[%s9924_s5 + $0x6a4] ss:$16 sps:$4 sm:$0xff]  }
 0x2e0   : > { %5323 = vmatpush1.bf16.msra.mxu0 %v7018_v9  ;;  %5652 = vmatprep.subr.bf16.mxu1 %v7029_v27  ;;  %v7093_v9 = vld [vmem:[%s9924_s5 + $0x688] ss:$16 sps:$4 sm:$0xff]   ;;  %v7096_v27 = vld [vmem:[%s9924_s5 + $0x6a0] ss:$16 sps:$4 sm:$0xff]  }
 0x2e1   : > { %5324 = vmatprep.subr.bf16.mxu0 %v7026_v21  ;;  %v7101_v21 = vld [vmem:[%s9924_s5 + $0x6ac] ss:$16 sps:$4 sm:$0xff]  }
 0x2e3   : > { %5653 = vmatpush1.bf16.msra.mxu1 %v7027_v13  ;;  %v7104_v13 = vld [vmem:[%s9924_s5 + $0x6c4] ss:$16 sps:$4 sm:$0xff]  }
 0x2e4   : > { %5325 = vmatpush1.bf16.msra.mxu0 %v7024_v24  ;;  %5654 = vmatprep.subr.bf16.mxu1 %v7035_v25  ;;  %v7099_v24 = vld [vmem:[%s9924_s5 + $0x6a8] ss:$16 sps:$4 sm:$0xff]   ;;  %v7102_v25 = vld [vmem:[%s9924_s5 + $0x6c0] ss:$16 sps:$4 sm:$0xff]  }
 0x2e5   : > { %5326 = vmatprep.subr.bf16.mxu0 %v7032_v5  ;;  %v7107_v5 = vld [vmem:[%s9924_s5 + $0x6cc] ss:$16 sps:$4 sm:$0xff]  }
 0x2e7   : > { %5655 = vmatpush1.bf16.msra.mxu1 %v7033_v19  ;;  %v7110_v19 = vld [vmem:[%s9924_s5 + $0x6e4] ss:$16 sps:$4 sm:$0xff]  }
 0x2e8   : > { %5327 = vmatpush1.bf16.msra.mxu0 %v7030_v17  ;;  %5656 = vmatprep.subr.bf16.mxu1 %v7041_v31  ;;  %v7105_v17 = vld [vmem:[%s9924_s5 + $0x6c8] ss:$16 sps:$4 sm:$0xff]   ;;  %v7108_v31 = vld [vmem:[%s9924_s5 + $0x6e0] ss:$16 sps:$4 sm:$0xff]  }
 0x2e9   : > { %5328 = vmatprep.subr.bf16.mxu0 %v7038_v20  ;;  %v7113_v20 = vld [vmem:[%s9924_s5 + $0x6ec] ss:$16 sps:$4 sm:$0xff]  }
 0x2eb   : > { %5657 = vmatpush1.bf16.msra.mxu1 %v7039_v40  ;;  %v7116_v40 = vld [vmem:[%s9924_s5 + $0x704] ss:$16 sps:$4 sm:$0xff]  }
 0x2ec   : > { %5329 = vmatpush1.bf16.msra.mxu0 %v7036_v39  ;;  %5658 = vmatprep.subr.bf16.mxu1 %v7047_v48  ;;  %v7111_v39 = vld [vmem:[%s9924_s5 + $0x6e8] ss:$16 sps:$4 sm:$0xff]   ;;  %v7114_v48 = vld [vmem:[%s9924_s5 + $0x700] ss:$16 sps:$4 sm:$0xff]  }
 0x2ed   : > { %5330 = vmatprep.subr.bf16.mxu0 %v7044_v47  ;;  %v7119_v47 = vld [vmem:[%s9924_s5 + $0x70c] ss:$16 sps:$4 sm:$0xff]  }
 0x2ef   : > { %5659 = vmatpush1.bf16.msra.mxu1 %v7045_v51  ;;  %v7122_v51 = vld [vmem:[%s9924_s5 + $0x724] ss:$16 sps:$4 sm:$0xff]  }
 0x2f0   : > { %5331 = vmatpush1.bf16.msra.mxu0 %v7042_v50  ;;  %5660 = vmatprep.subr.bf16.mxu1 %v7053_v53  ;;  %v7117_v50 = vld [vmem:[%s9924_s5 + $0x708] ss:$16 sps:$4 sm:$0xff]   ;;  %v7120_v53 = vld [vmem:[%s9924_s5 + $0x720] ss:$16 sps:$4 sm:$0xff]  }
 0x2f1   : > { %5332 = vmatprep.subr.bf16.mxu0 %v7050_v52  ;;  %v7125_v52 = vld [vmem:[%s9924_s5 + $0x72c] ss:$16 sps:$4 sm:$0xff]  }
 0x2f3   : > { %5661 = vmatpush1.bf16.msra.mxu1 %v7051_v2  ;;  %v7128_v2 = vld [vmem:[%s9924_s5 + $0x744] ss:$16 sps:$4 sm:$0xff]  }
 0x2f4   : > { %5333 = vmatpush1.bf16.msra.mxu0 %v7048_v54  ;;  %5662 = vmatprep.subr.bf16.mxu1 %v7059_v26  ;;  %v7123_v54 = vld [vmem:[%s9924_s5 + $0x728] ss:$16 sps:$4 sm:$0xff]   ;;  %v7126_v26 = vld [vmem:[%s9924_s5 + $0x740] ss:$16 sps:$4 sm:$0xff]  }
 0x2f5   : > { %5334 = vmatprep.subr.bf16.mxu0 %v7056_v55  ;;  %v7131_v55 = vld [vmem:[%s9924_s5 + $0x74c] ss:$16 sps:$4 sm:$0xff]  }
 0x2f7   : > { %5663 = vmatpush1.bf16.msra.mxu1 %v7057_v34  ;;  %v7134_v34 = vld [vmem:[%s9924_s5 + $0x764] ss:$16 sps:$4 sm:$0xff]  }
 0x2f8   : > { %5335 = vmatpush1.bf16.msra.mxu0 %v7054_v30  ;;  %5664 = vmatprep.subr.bf16.mxu1 %v7065_v57  ;;  %v7129_v30 = vld [vmem:[%s9924_s5 + $0x748] ss:$16 sps:$4 sm:$0xff]   ;;  %v7132_v57 = vld [vmem:[%s9924_s5 + $0x760] ss:$16 sps:$4 sm:$0xff]  }
 0x2f9   : > { %5336 = vmatprep.subr.bf16.mxu0 %v7062_v56  ;;  %v7137_v56 = vld [vmem:[%s9924_s5 + $0x76c] ss:$16 sps:$4 sm:$0xff]  }
 0x2fb   : > { %5665 = vmatpush1.bf16.msra.mxu1 %v7063_v60  ;;  %v7143_v60 = vld [vmem:[%s9924_s5 + $0x78c] ss:$16 sps:$4 sm:$0xff]  }
 0x2fc   : > { %5337 = vmatpush1.bf16.msra.mxu0 %v7060_v58  ;;  %5675 = vmatprep.subr.bf16.mxu1 %v7071_v62  ;;  %v7135_v58 = vld [vmem:[%s9924_s5 + $0x768] ss:$16 sps:$4 sm:$0xff]  }
 0x2fd   : > { %5347 = vmatprep.subr.bf16.mxu0 %v7068_v61  ;;  %v7138_v61 = vld [vmem:[%s9924_s5 + $0x780] ss:$16 sps:$4 sm:$0xff]   ;;  %v7141_v62 = vld [vmem:[%s9924_s5 + $0x788] ss:$16 sps:$4 sm:$0xff]  }
 0x2fe   : > { %5667 = vmatmul.mubr.bf16.vlgmr.msra.gmra.mrb[0].mxu1 %v2118_v1 }
 0x2ff   : > { %5339 = vmatmul.mubr.bf16.vlgmr.msra.gmra.mrb[0].mxu0 %v2118_v1  ;;  %5676 = vmatpush1.bf16.msra.mxu1 %v7069_v3  ;;  %v7144_v1 = vld [vmem:[%s9924_s5 + $0x7a0] ss:$16 sps:$4 sm:$0xff]   ;;  %v7147_v3 = vld [vmem:[%s9924_s5 + $0x7a8] ss:$16 sps:$4 sm:$0xff]  }
 0x300   : > { %5348 = vmatpush1.bf16.msra.mxu0 %v7066_v0  ;;  %5677 = vmatprep.subr.bf16.mxu1 %v7077_v6  ;;  %v7149_v0 = vld [vmem:[%s9924_s5 + $0x7ac] ss:$16 sps:$4 sm:$0xff]  }
 0x301   : > { %5349 = vmatprep.subr.bf16.mxu0 %v7074_v4  ;;  %5379 = vmatprep.mubr.bf16.mxu0 %v2121_v7  ;;  %v7152_v4 = vld [vmem:[%s9924_s5 + $0x7c4] ss:$16 sps:$4 sm:$0xff]   ;;  %v7155_v6 = vld [vmem:[%s9924_s5 + $0x7cc] ss:$16 sps:$4 sm:$0xff]  }
 0x302   : > { %5707 = vmatprep.mubr.bf16.mxu1 %v2121_v7  ;;  %v2029_v7 = vld [vmem:[#allocation2 + $0x8] sm:$0xff] }
 0x303   : > { %5678 = vmatpush1.bf16.msra.mxu1 %v7075_v28  ;;  %v7153_v28 = vld [vmem:[%s9924_s5 + $0x7c8] ss:$16 sps:$4 sm:$0xff]  }
 0x304   : > { %5350 = vmatpush1.bf16.msra.mxu0 %v7072_v8  ;;  %5679 = vmatprep.subr.bf16.mxu1 %v7083_v44  ;;  %v7150_v8 = vld [vmem:[%s9924_s5 + $0x7c0] ss:$16 sps:$4 sm:$0xff]   ;;  %v7161_v44 = vld [vmem:[%s9924_s5 + $0x7ec] ss:$16 sps:$4 sm:$0xff]  }
 0x305   : > { %5351 = vmatprep.subr.bf16.mxu0 %v7080_v35  ;;  %v7158_v35 = vld [vmem:[%s9924_s5 + $0x7e4] ss:$16 sps:$4 sm:$0xff]  }
 0x307   : > { %5680 = vmatpush1.bf16.msra.mxu1 %v7081_v43  ;;  %v2061_v43 = vrot.slane %v8457_v63, %v8173_v11  ;;  %v7167_v63 = vld [vmem:[%s9924_s5 + $0x80c] ss:$16 sps:$4 sm:$0xff]  }
 0x308   : > { %5352 = vmatpush1.bf16.msra.mxu0 %v7078_v42  ;;  %5681 = vmatprep.subr.bf16.mxu1 %v7089_v36  ;;  %v9094_v42 = vmul.f32 0.015625, %v2029_v7  ;;  %v7159_v36 = vld [vmem:[%s9924_s5 + $0x7e8] ss:$16 sps:$4 sm:$0xff]   ;;  %v7222_v7 = vld [vmem:[%s9924_s5 + $0x940] ss:$16 sps:$4 sm:$0xff]  }
 0x309   : > { %5353 = vmatprep.subr.bf16.mxu0 %v7086_v45  ;;  %v7156_v45 = vld [vmem:[%s9924_s5 + $0x7e0] ss:$16 sps:$4 sm:$0xff]  }
 0x30b   : > { %5682 = vmatpush1.bf16.msra.mxu1 %v7087_v46  ;;  %v2073_v46 = vrot.slane %v9094_v42, %v8120_v16 }
 0x30c   : > { %5354 = vmatpush1.bf16.msra.mxu0 %v7084_v37  ;;  %5683 = vmatprep.subr.bf16.mxu1 %v7095_v23  ;;  %v7164_v37 = vld [vmem:[%s9924_s5 + $0x804] ss:$16 sps:$4 sm:$0xff]   ;;  %v7162_v23 = vld [vmem:[%s9924_s5 + $0x800] ss:$16 sps:$4 sm:$0xff]  }
 0x30d   : > { %5355 = vmatprep.subr.bf16.mxu0 %v7092_v22  ;;  %v2120_v22 = vpack.c.bf16 %v2061_v43, %v2061_v43  ;;  %v7231_v43 = vld [vmem:[%s9924_s5 + $0x968] ss:$16 sps:$4 sm:$0xff]  }
 0x30f   : > { %5684 = vmatpush1.bf16.msra.mxu1 %v7093_v9  ;;  %v7170_v9 = vld [vmem:[%s9924_s5 + $0x824] ss:$16 sps:$4 sm:$0xff]  }
 0x310   : > { %5356 = vmatpush1.bf16.msra.mxu0 %v7090_v41  ;;  %5685 = vmatprep.subr.bf16.mxu1 %v7101_v21  ;;  %v7165_v41 = vld [vmem:[%s9924_s5 + $0x808] ss:$16 sps:$4 sm:$0xff]   ;;  %v2123_v21 = vpack.c.bf16 %v2073_v46, %v2073_v46  ;;  %v7242_v46 = vld [vmem:[%s9924_s5 + $0x9a4] ss:$16 sps:$4 sm:$0xff]  }
 0x311   : > { %5357 = vmatprep.subr.bf16.mxu0 %v7098_v12  ;;  %v7173_v12 = vld [vmem:[%s9924_s5 + $0x82c] ss:$16 sps:$4 sm:$0xff]  }
 0x313   : > { %5686 = vmatpush1.bf16.msra.mxu1 %v7099_v24  ;;  %v7171_v24 = vld [vmem:[%s9924_s5 + $0x828] ss:$16 sps:$4 sm:$0xff]  }
 0x314   : > { %5358 = vmatpush1.bf16.msra.mxu0 %v7096_v27  ;;  %5687 = vmatprep.subr.bf16.mxu1 %v7107_v5  ;;  %v7168_v27 = vld [vmem:[%s9924_s5 + $0x820] ss:$16 sps:$4 sm:$0xff]   ;;  %v7179_v5 = vld [vmem:[%s9924_s5 + $0x84c] ss:$16 sps:$4 sm:$0xff]  }
 0x315   : > { %5359 = vmatprep.subr.bf16.mxu0 %v7104_v13  ;;  %v7176_v13 = vld [vmem:[%s9924_s5 + $0x844] ss:$16 sps:$4 sm:$0xff]  }
 0x317   : > { %5688 = vmatpush1.bf16.msra.mxu1 %v7105_v17  ;;  %v7177_v17 = vld [vmem:[%s9924_s5 + $0x848] ss:$16 sps:$4 sm:$0xff]  }
 0x318   : > { %5360 = vmatpush1.bf16.msra.mxu0 %v7102_v25  ;;  %5689 = vmatprep.subr.bf16.mxu1 %v7113_v20  ;;  %v7174_v25 = vld [vmem:[%s9924_s5 + $0x840] ss:$16 sps:$4 sm:$0xff]   ;;  %v7185_v20 = vld [vmem:[%s9924_s5 + $0x86c] ss:$16 sps:$4 sm:$0xff]  }
 0x319   : > { %5361 = vmatprep.subr.bf16.mxu0 %v7110_v19  ;;  %v7182_v19 = vld [vmem:[%s9924_s5 + $0x864] ss:$16 sps:$4 sm:$0xff]  }
 0x31b   : > { %5690 = vmatpush1.bf16.msra.mxu1 %v7111_v39  ;;  %v7183_v39 = vld [vmem:[%s9924_s5 + $0x868] ss:$16 sps:$4 sm:$0xff]  }
 0x31c   : > { %5362 = vmatpush1.bf16.msra.mxu0 %v7108_v31  ;;  %5691 = vmatprep.subr.bf16.mxu1 %v7119_v47  ;;  %v7180_v31 = vld [vmem:[%s9924_s5 + $0x860] ss:$16 sps:$4 sm:$0xff]   ;;  %v7191_v47 = vld [vmem:[%s9924_s5 + $0x88c] ss:$16 sps:$4 sm:$0xff]  }
 0x31d   : > { %5363 = vmatprep.subr.bf16.mxu0 %v7116_v40  ;;  %v7188_v40 = vld [vmem:[%s9924_s5 + $0x884] ss:$16 sps:$4 sm:$0xff]  }
 0x31f   : > { %5692 = vmatpush1.bf16.msra.mxu1 %v7117_v50  ;;  %v7189_v50 = vld [vmem:[%s9924_s5 + $0x888] ss:$16 sps:$4 sm:$0xff]  }
 0x320   : > { %5364 = vmatpush1.bf16.msra.mxu0 %v7114_v48  ;;  %5693 = vmatprep.subr.bf16.mxu1 %v7125_v52  ;;  %v7186_v48 = vld [vmem:[%s9924_s5 + $0x880] ss:$16 sps:$4 sm:$0xff]   ;;  %v7197_v52 = vld [vmem:[%s9924_s5 + $0x8ac] ss:$16 sps:$4 sm:$0xff]  }
 0x321   : > { %5365 = vmatprep.subr.bf16.mxu0 %v7122_v51  ;;  %v7194_v51 = vld [vmem:[%s9924_s5 + $0x8a4] ss:$16 sps:$4 sm:$0xff]  }
 0x323   : > { %5694 = vmatpush1.bf16.msra.mxu1 %v7123_v54  ;;  %v7195_v54 = vld [vmem:[%s9924_s5 + $0x8a8] ss:$16 sps:$4 sm:$0xff]  }
 0x324   : > { %5366 = vmatpush1.bf16.msra.mxu0 %v7120_v53  ;;  %5695 = vmatprep.subr.bf16.mxu1 %v7131_v55  ;;  %v7192_v53 = vld [vmem:[%s9924_s5 + $0x8a0] ss:$16 sps:$4 sm:$0xff]   ;;  %v7203_v55 = vld [vmem:[%s9924_s5 + $0x8cc] ss:$16 sps:$4 sm:$0xff]  }
 0x325   : > { %5367 = vmatprep.subr.bf16.mxu0 %v7128_v2  ;;  %v7200_v2 = vld [vmem:[%s9924_s5 + $0x8c4] ss:$16 sps:$4 sm:$0xff]  }
 0x327   : > { %5696 = vmatpush1.bf16.msra.mxu1 %v7129_v30  ;;  %v7201_v30 = vld [vmem:[%s9924_s5 + $0x8c8] ss:$16 sps:$4 sm:$0xff]  }
 0x328   : > { %5368 = vmatpush1.bf16.msra.mxu0 %v7126_v26  ;;  %5697 = vmatprep.subr.bf16.mxu1 %v7137_v56  ;;  %v7198_v26 = vld [vmem:[%s9924_s5 + $0x8c0] ss:$16 sps:$4 sm:$0xff]   ;;  %v7209_v56 = vld [vmem:[%s9924_s5 + $0x8ec] ss:$16 sps:$4 sm:$0xff]  }
 0x329   : > { %5369 = vmatprep.subr.bf16.mxu0 %v7134_v34  ;;  %v7206_v34 = vld [vmem:[%s9924_s5 + $0x8e4] ss:$16 sps:$4 sm:$0xff]  }
 0x32b   : > { %5698 = vmatpush1.bf16.msra.mxu1 %v7135_v58  ;;  %v7207_v58 = vld [vmem:[%s9924_s5 + $0x8e8] ss:$16 sps:$4 sm:$0xff]  }
 0x32c   : > { %5370 = vmatpush1.bf16.msra.mxu0 %v7132_v57  ;;  %5699 = vmatprep.subr.bf16.mxu1 %v7143_v60  ;;  %v7204_v57 = vld [vmem:[%s9924_s5 + $0x8e0] ss:$16 sps:$4 sm:$0xff]   ;;  %v7215_v60 = vld [vmem:[%s9924_s5 + $0x90c] ss:$16 sps:$4 sm:$0xff]  }
 0x32d   : > { %5371 = vmatprep.subr.bf16.mxu0 %v7140_v59  ;;  %v7212_v59 = vld [vmem:[%s9924_s5 + $0x904] ss:$16 sps:$4 sm:$0xff]  }
 0x32f   : > { %5700 = vmatpush1.bf16.msra.mxu1 %v7141_v62  ;;  %v7213_v62 = vld [vmem:[%s9924_s5 + $0x908] ss:$16 sps:$4 sm:$0xff]  }
 0x330   : > { %5372 = vmatpush1.bf16.msra.mxu0 %v7138_v61  ;;  %5701 = vmatprep.subr.bf16.mxu1 %v7149_v0  ;;  %v7210_v61 = vld [vmem:[%s9924_s5 + $0x900] ss:$16 sps:$4 sm:$0xff]   ;;  %v7221_v0 = vld [vmem:[%s9924_s5 + $0x92c] ss:$16 sps:$4 sm:$0xff]  }
 0x331   : > { %5373 = vmatprep.subr.bf16.mxu0 %v7146_v38  ;;  %v7218_v38 = vld [vmem:[%s9924_s5 + $0x924] ss:$16 sps:$4 sm:$0xff]  }
 0x333   : > { %5702 = vmatpush1.bf16.msra.mxu1 %v7147_v3  ;;  %v7219_v3 = vld [vmem:[%s9924_s5 + $0x928] ss:$16 sps:$4 sm:$0xff]  }
 0x334   : > { %5374 = vmatpush1.bf16.msra.mxu0 %v7144_v1  ;;  %5703 = vmatprep.subr.bf16.mxu1 %v7155_v6  ;;  %v7216_v1 = vld [vmem:[%s9924_s5 + $0x920] ss:$16 sps:$4 sm:$0xff]   ;;  %v7227_v6 = vld [vmem:[%s9924_s5 + $0x94c] ss:$16 sps:$4 sm:$0xff]  }
 0x335   : > { %5375 = vmatprep.subr.bf16.mxu0 %v7152_v4  ;;  %v7224_v4 = vld [vmem:[%s9924_s5 + $0x944] ss:$16 sps:$4 sm:$0xff]  }
 0x337   : > { %5704 = vmatpush1.bf16.msra.mxu1 %v7153_v28  ;;  %v7230_v28 = vld [vmem:[%s9924_s5 + $0x964] ss:$16 sps:$4 sm:$0xff]  }
 0x338   : > { %5376 = vmatpush1.bf16.msra.mxu0 %v7150_v8  ;;  %5705 = vmatprep.subr.bf16.mxu1 %v7161_v44  ;;  %v7225_v8 = vld [vmem:[%s9924_s5 + $0x948] ss:$16 sps:$4 sm:$0xff]   ;;  %v7228_v44 = vld [vmem:[%s9924_s5 + $0x960] ss:$16 sps:$4 sm:$0xff]  }
 0x339   : > { %5377 = vmatprep.subr.bf16.mxu0 %v7158_v35  ;;  %v7233_v35 = vld [vmem:[%s9924_s5 + $0x96c] ss:$16 sps:$4 sm:$0xff]  }
 0x33b   : > { %5706 = vmatpush1.bf16.msra.mxu1 %v7159_v36  ;;  %v7239_v36 = vld [vmem:[%s9924_s5 + $0x98c] ss:$16 sps:$4 sm:$0xff]  }
 0x33c   : > { %5378 = vmatpush1.bf16.msra.mxu0 %v7156_v45  ;;  %5716 = vmatprep.subr.bf16.mxu1 %v7167_v63  ;;  %v7236_v45 = vld [vmem:[%s9924_s5 + $0x984] ss:$16 sps:$4 sm:$0xff]   ;;  %v7237_v63 = vld [vmem:[%s9924_s5 + $0x988] ss:$16 sps:$4 sm:$0xff]  }
 0x33d   : > { %5388 = vmatprep.subr.bf16.mxu0 %v7164_v37  ;;  %v7234_v37 = vld [vmem:[%s9924_s5 + $0x980] ss:$16 sps:$4 sm:$0xff]  }
 0x33e   : > { %5708 = vmatmul.mubr.bf16.vlgmr.msra.gmra.mrb[0].mxu1 %v2120_v22 }
 0x33f   : > { %5380 = vmatmul.mubr.bf16.vlgmr.msra.gmra.mrb[0].mxu0 %v2120_v22  ;;  %5717 = vmatpush1.bf16.msra.mxu1 %v7165_v41  ;;  %v7245_v22 = vld [vmem:[%s9924_s5 + $0x9ac] ss:$16 sps:$4 sm:$0xff]   ;;  %v7243_v41 = vld [vmem:[%s9924_s5 + $0x9a8] ss:$16 sps:$4 sm:$0xff]  }
 0x340   : > { %5389 = vmatpush1.bf16.msra.mxu0 %v7162_v23  ;;  %5718 = vmatprep.subr.bf16.mxu1 %v7173_v12  ;;  %v7240_v23 = vld [vmem:[%s9924_s5 + $0x9a0] ss:$16 sps:$4 sm:$0xff]   ;;  %v7251_v12 = vld [vmem:[%s9924_s5 + $0x9cc] ss:$16 sps:$4 sm:$0xff]  }
 0x341   : > { %5390 = vmatprep.subr.bf16.mxu0 %v7170_v9  ;;  %5420 = vmatprep.mubr.bf16.mxu0 %v2123_v21  ;;  %v7248_v9 = vld [vmem:[%s9924_s5 + $0x9c4] ss:$16 sps:$4 sm:$0xff]  }
 0x342   : > { %5748 = vmatprep.mubr.bf16.mxu1 %v2123_v21  ;;  %v7246_v21 = vld [vmem:[%s9924_s5 + $0x9c0] ss:$16 sps:$4 sm:$0xff]  }
 0x343   : > { %5719 = vmatpush1.bf16.msra.mxu1 %v7171_v24  ;;  %v7254_v24 = vld [vmem:[%s9924_s5 + $0x9e4] ss:$16 sps:$4 sm:$0xff]  }
 0x344   : > { %5391 = vmatpush1.bf16.msra.mxu0 %v7168_v27  ;;  %5720 = vmatprep.subr.bf16.mxu1 %v7179_v5  ;;  %v7249_v27 = vld [vmem:[%s9924_s5 + $0x9c8] ss:$16 sps:$4 sm:$0xff]   ;;  %v2069_v5 = vrot.slane %v9094_v42, %v8109_v32 }
 0x345   : > { %5392 = vmatprep.subr.bf16.mxu0 %v7176_v13  ;;  %v7257_v13 = vld [vmem:[%s9924_s5 + $0x9ec] ss:$16 sps:$4 sm:$0xff]  }
 0x347   : > { %5721 = vmatpush1.bf16.msra.mxu1 %v7177_v17  ;;  %v7255_v17 = vld [vmem:[%s9924_s5 + $0x9e8] ss:$16 sps:$4 sm:$0xff]  }
 0x348   : > { %5393 = vmatpush1.bf16.msra.mxu0 %v7174_v25  ;;  %5722 = vmatprep.subr.bf16.mxu1 %v7185_v20  ;;  %v7252_v25 = vld [vmem:[%s9924_s5 + $0x9e0] ss:$16 sps:$4 sm:$0xff]   ;;  %v7263_v20 = vld [vmem:[%s9924_s5 + $0xa0c] ss:$16 sps:$4 sm:$0xff]  }
 0x349   : > { %5394 = vmatprep.subr.bf16.mxu0 %v7182_v19  ;;  %v7260_v19 = vld [vmem:[%s9924_s5 + $0xa04] ss:$16 sps:$4 sm:$0xff]  }
 0x34b   : > { %5723 = vmatpush1.bf16.msra.mxu1 %v7183_v39  ;;  %v2122_v39 = vpack.c.bf16 %v2069_v5, %v2069_v5  ;;  %v7327_v5 = vld [vmem:[%s9924_s5 + $0xb68] ss:$16 sps:$4 sm:$0xff]  }
 0x34c   : > { %5395 = vmatpush1.bf16.msra.mxu0 %v7180_v31  ;;  %5724 = vmatprep.subr.bf16.mxu1 %v7191_v47  ;;  %v2081_v31 = vrot.slane %v9094_v42, %v8123_v49  ;;  %v7261_v47 = vld [vmem:[%s9924_s5 + $0xa08] ss:$16 sps:$4 sm:$0xff]  }
 0x34d   : > { %5396 = vmatprep.subr.bf16.mxu0 %v7188_v40  ;;  %v7258_v40 = vld [vmem:[%s9924_s5 + $0xa00] ss:$16 sps:$4 sm:$0xff]  }
 0x34f   : > { %5725 = vmatpush1.bf16.msra.mxu1 %v7189_v50  ;;  %v7269_v50 = vld [vmem:[%s9924_s5 + $0xa2c] ss:$16 sps:$4 sm:$0xff]  }
 0x350   : > { %5397 = vmatpush1.bf16.msra.mxu0 %v7186_v48  ;;  %5726 = vmatprep.subr.bf16.mxu1 %v7197_v52  ;;  %v7266_v48 = vld [vmem:[%s9924_s5 + $0xa24] ss:$16 sps:$4 sm:$0xff]   ;;  %v7264_v52 = vld [vmem:[%s9924_s5 + $0xa20] ss:$16 sps:$4 sm:$0xff]  }
 0x351   : > { %5398 = vmatprep.subr.bf16.mxu0 %v7194_v51  ;;  %v2125_v51 = vpack.c.bf16 %v2081_v31, %v2081_v31  ;;  %v7338_v31 = vld [vmem:[%s9924_s5 + $0xba4] ss:$16 sps:$4 sm:$0xff]  }
 0x353   : > { %5727 = vmatpush1.bf16.msra.mxu1 %v7195_v54  ;;  %v7272_v54 = vld [vmem:[%s9924_s5 + $0xa44] ss:$16 sps:$4 sm:$0xff]  }
 0x354   : > { %5399 = vmatpush1.bf16.msra.mxu0 %v7192_v53  ;;  %5728 = vmatprep.subr.bf16.mxu1 %v7203_v55  ;;  %v7267_v53 = vld [vmem:[%s9924_s5 + $0xa28] ss:$16 sps:$4 sm:$0xff]   ;;  %v7270_v55 = vld [vmem:[%s9924_s5 + $0xa40] ss:$16 sps:$4 sm:$0xff]  }
 0x355   : > { %5400 = vmatprep.subr.bf16.mxu0 %v7200_v2  ;;  %v7275_v2 = vld [vmem:[%s9924_s5 + $0xa4c] ss:$16 sps:$4 sm:$0xff]  }
 0x357   : > { %5729 = vmatpush1.bf16.msra.mxu1 %v7201_v30  ;;  %v7278_v30 = vld [vmem:[%s9924_s5 + $0xa64] ss:$16 sps:$4 sm:$0xff]  }
 0x358   : > { %5401 = vmatpush1.bf16.msra.mxu0 %v7198_v26  ;;  %5730 = vmatprep.subr.bf16.mxu1 %v7209_v56  ;;  %v7273_v26 = vld [vmem:[%s9924_s5 + $0xa48] ss:$16 sps:$4 sm:$0xff]   ;;  %v7276_v56 = vld [vmem:[%s9924_s5 + $0xa60] ss:$16 sps:$4 sm:$0xff]  }
 0x359   : > { %5402 = vmatprep.subr.bf16.mxu0 %v7206_v34  ;;  %v7281_v34 = vld [vmem:[%s9924_s5 + $0xa6c] ss:$16 sps:$4 sm:$0xff]  }
 0x35b   : > { %5731 = vmatpush1.bf16.msra.mxu1 %v7207_v58  ;;  %v7284_v58 = vld [vmem:[%s9924_s5 + $0xa84] ss:$16 sps:$4 sm:$0xff]  }
 0x35c   : > { %5403 = vmatpush1.bf16.msra.mxu0 %v7204_v57  ;;  %5732 = vmatprep.subr.bf16.mxu1 %v7215_v60  ;;  %v7279_v57 = vld [vmem:[%s9924_s5 + $0xa68] ss:$16 sps:$4 sm:$0xff]   ;;  %v7282_v60 = vld [vmem:[%s9924_s5 + $0xa80] ss:$16 sps:$4 sm:$0xff]  }
 0x35d   : > { %5404 = vmatprep.subr.bf16.mxu0 %v7212_v59  ;;  %v7287_v59 = vld [vmem:[%s9924_s5 + $0xa8c] ss:$16 sps:$4 sm:$0xff]  }
 0x35f   : > { %5733 = vmatpush1.bf16.msra.mxu1 %v7213_v62  ;;  %v7290_v62 = vld [vmem:[%s9924_s5 + $0xaa4] ss:$16 sps:$4 sm:$0xff]  }
 0x360   : > { %5405 = vmatpush1.bf16.msra.mxu0 %v7210_v61  ;;  %5734 = vmatprep.subr.bf16.mxu1 %v7221_v0  ;;  %v7285_v61 = vld [vmem:[%s9924_s5 + $0xa88] ss:$16 sps:$4 sm:$0xff]   ;;  %v7288_v0 = vld [vmem:[%s9924_s5 + $0xaa0] ss:$16 sps:$4 sm:$0xff]  }
 0x361   : > { %5406 = vmatprep.subr.bf16.mxu0 %v7218_v38  ;;  %v7293_v38 = vld [vmem:[%s9924_s5 + $0xaac] ss:$16 sps:$4 sm:$0xff]  }
 0x363   : > { %5735 = vmatpush1.bf16.msra.mxu1 %v7219_v3  ;;  %v7296_v3 = vld [vmem:[%s9924_s5 + $0xac4] ss:$16 sps:$4 sm:$0xff]  }
 0x364   : > { %5407 = vmatpush1.bf16.msra.mxu0 %v7216_v1  ;;  %5736 = vmatprep.subr.bf16.mxu1 %v7227_v6  ;;  %v7291_v1 = vld [vmem:[%s9924_s5 + $0xaa8] ss:$16 sps:$4 sm:$0xff]   ;;  %v7294_v6 = vld [vmem:[%s9924_s5 + $0xac0] ss:$16 sps:$4 sm:$0xff]  }
 0x365   : > { %5408 = vmatprep.subr.bf16.mxu0 %v7224_v4  ;;  %v7299_v4 = vld [vmem:[%s9924_s5 + $0xacc] ss:$16 sps:$4 sm:$0xff]  }
 0x367   : > { %5737 = vmatpush1.bf16.msra.mxu1 %v7225_v8  ;;  %v7302_v8 = vld [vmem:[%s9924_s5 + $0xae4] ss:$16 sps:$4 sm:$0xff]  }
 0x368   : > { %5409 = vmatpush1.bf16.msra.mxu0 %v7222_v7  ;;  %5738 = vmatprep.subr.bf16.mxu1 %v7233_v35  ;;  %v7297_v7 = vld [vmem:[%s9924_s5 + $0xac8] ss:$16 sps:$4 sm:$0xff]   ;;  %v7300_v35 = vld [vmem:[%s9924_s5 + $0xae0] ss:$16 sps:$4 sm:$0xff]  }
 0x369   : > { %5410 = vmatprep.subr.bf16.mxu0 %v7230_v28  ;;  %v7305_v28 = vld [vmem:[%s9924_s5 + $0xaec] ss:$16 sps:$4 sm:$0xff]  }
 0x36b   : > { %5739 = vmatpush1.bf16.msra.mxu1 %v7231_v43  ;;  %v7308_v43 = vld [vmem:[%s9924_s5 + $0xb04] ss:$16 sps:$4 sm:$0xff]  }
 0x36c   : > { %5411 = vmatpush1.bf16.msra.mxu0 %v7228_v44  ;;  %5740 = vmatprep.subr.bf16.mxu1 %v7239_v36  ;;  %v7303_v44 = vld [vmem:[%s9924_s5 + $0xae8] ss:$16 sps:$4 sm:$0xff]   ;;  %v7306_v36 = vld [vmem:[%s9924_s5 + $0xb00] ss:$16 sps:$4 sm:$0xff]  }
 0x36d   : > { %5412 = vmatprep.subr.bf16.mxu0 %v7236_v45  ;;  %v7311_v45 = vld [vmem:[%s9924_s5 + $0xb0c] ss:$16 sps:$4 sm:$0xff]  }
 0x36f   : > { %5741 = vmatpush1.bf16.msra.mxu1 %v7237_v63  ;;  %v7314_v63 = vld [vmem:[%s9924_s5 + $0xb24] ss:$16 sps:$4 sm:$0xff]  }
 0x370   : > { %5413 = vmatpush1.bf16.msra.mxu0 %v7234_v37  ;;  %5742 = vmatprep.subr.bf16.mxu1 %v7245_v22  ;;  %v7309_v37 = vld [vmem:[%s9924_s5 + $0xb08] ss:$16 sps:$4 sm:$0xff]   ;;  %v7312_v22 = vld [vmem:[%s9924_s5 + $0xb20] ss:$16 sps:$4 sm:$0xff]  }
 0x371   : > { %5414 = vmatprep.subr.bf16.mxu0 %v7242_v46  ;;  %v7317_v46 = vld [vmem:[%s9924_s5 + $0xb2c] ss:$16 sps:$4 sm:$0xff]  }
 0x373   : > { %5743 = vmatpush1.bf16.msra.mxu1 %v7243_v41  ;;  %v7320_v41 = vld [vmem:[%s9924_s5 + $0xb44] ss:$16 sps:$4 sm:$0xff]  }
 0x374   : > { %5415 = vmatpush1.bf16.msra.mxu0 %v7240_v23  ;;  %5744 = vmatprep.subr.bf16.mxu1 %v7251_v12  ;;  %v7315_v23 = vld [vmem:[%s9924_s5 + $0xb28] ss:$16 sps:$4 sm:$0xff]   ;;  %v7318_v12 = vld [vmem:[%s9924_s5 + $0xb40] ss:$16 sps:$4 sm:$0xff]  }
 0x375   : > { %5416 = vmatprep.subr.bf16.mxu0 %v7248_v9  ;;  %v7323_v9 = vld [vmem:[%s9924_s5 + $0xb4c] ss:$16 sps:$4 sm:$0xff]  }
 0x377   : > { %5745 = vmatpush1.bf16.msra.mxu1 %v7249_v27  ;;  %v7326_v27 = vld [vmem:[%s9924_s5 + $0xb64] ss:$16 sps:$4 sm:$0xff]  }
 0x378   : > { %5417 = vmatpush1.bf16.msra.mxu0 %v7246_v21  ;;  %5746 = vmatprep.subr.bf16.mxu1 %v7257_v13  ;;  %v7321_v21 = vld [vmem:[%s9924_s5 + $0xb48] ss:$16 sps:$4 sm:$0xff]   ;;  %v7324_v13 = vld [vmem:[%s9924_s5 + $0xb60] ss:$16 sps:$4 sm:$0xff]  }
 0x379   : > { %5418 = vmatprep.subr.bf16.mxu0 %v7254_v24  ;;  %v7329_v24 = vld [vmem:[%s9924_s5 + $0xb6c] ss:$16 sps:$4 sm:$0xff]  }
 0x37b   : > { %5747 = vmatpush1.bf16.msra.mxu1 %v7255_v17  ;;  %v7335_v17 = vld [vmem:[%s9924_s5 + $0xb8c] ss:$16 sps:$4 sm:$0xff]  }
 0x37c   : > { %5419 = vmatpush1.bf16.msra.mxu0 %v7252_v25  ;;  %5757 = vmatprep.subr.bf16.mxu1 %v7263_v20  ;;  %v7332_v25 = vld [vmem:[%s9924_s5 + $0xb84] ss:$16 sps:$4 sm:$0xff]   ;;  %v7333_v20 = vld [vmem:[%s9924_s5 + $0xb88] ss:$16 sps:$4 sm:$0xff]  }
 0x37d   : > { %5429 = vmatprep.subr.bf16.mxu0 %v7260_v19  ;;  %v7330_v19 = vld [vmem:[%s9924_s5 + $0xb80] ss:$16 sps:$4 sm:$0xff]  }
 0x37e   : > { %5749 = vmatmul.mubr.bf16.vlgmr.msra.gmra.mrb[0].mxu1 %v2122_v39 }
 0x37f   : > { %5421 = vmatmul.mubr.bf16.vlgmr.msra.gmra.mrb[0].mxu0 %v2122_v39  ;;  %5758 = vmatpush1.bf16.msra.mxu1 %v7261_v47  ;;  %v7341_v39 = vld [vmem:[%s9924_s5 + $0xbac] ss:$16 sps:$4 sm:$0xff]   ;;  %v7339_v47 = vld [vmem:[%s9924_s5 + $0xba8] ss:$16 sps:$4 sm:$0xff]  }
 0x380   : > { %5430 = vmatpush1.bf16.msra.mxu0 %v7258_v40  ;;  %5759 = vmatprep.subr.bf16.mxu1 %v7269_v50  ;;  %v7336_v40 = vld [vmem:[%s9924_s5 + $0xba0] ss:$16 sps:$4 sm:$0xff]   ;;  %v7347_v50 = vld [vmem:[%s9924_s5 + $0xbcc] ss:$16 sps:$4 sm:$0xff]  }
 0x381   : > { %5431 = vmatprep.subr.bf16.mxu0 %v7266_v48  ;;  %5461 = vmatprep.mubr.bf16.mxu0 %v2125_v51  ;;  %v7344_v48 = vld [vmem:[%s9924_s5 + $0xbc4] ss:$16 sps:$4 sm:$0xff]  }
 0x382   : > { %5789 = vmatprep.mubr.bf16.mxu1 %v2125_v51  ;;  %v7342_v51 = vld [vmem:[%s9924_s5 + $0xbc0] ss:$16 sps:$4 sm:$0xff]  }
 0x383   : > { %5760 = vmatpush1.bf16.msra.mxu1 %v7267_v53  ;;  %v7350_v53 = vld [vmem:[%s9924_s5 + $0xbe4] ss:$16 sps:$4 sm:$0xff]  }
 0x384   : > { %5432 = vmatpush1.bf16.msra.mxu0 %v7264_v52  ;;  %5761 = vmatprep.subr.bf16.mxu1 %v7275_v2  ;;  %v7345_v52 = vld [vmem:[%s9924_s5 + $0xbc8] ss:$16 sps:$4 sm:$0xff]   ;;  %v2077_v2 = vrot.slane %v9094_v42, %v8112_v33 }
 0x385   : > { %5433 = vmatprep.subr.bf16.mxu0 %v7272_v54  ;;  %v7353_v54 = vld [vmem:[%s9924_s5 + $0xbec] ss:$16 sps:$4 sm:$0xff]  }
 0x387   : > { %5762 = vmatpush1.bf16.msra.mxu1 %v7273_v26  ;;  %v7351_v26 = vld [vmem:[%s9924_s5 + $0xbe8] ss:$16 sps:$4 sm:$0xff]  }
 0x388   : > { %5434 = vmatpush1.bf16.msra.mxu0 %v7270_v55  ;;  %5763 = vmatprep.subr.bf16.mxu1 %v7281_v34  ;;  %v7348_v55 = vld [vmem:[%s9924_s5 + $0xbe0] ss:$16 sps:$4 sm:$0xff]   ;;  %v7359_v34 = vld [vmem:[%s9924_s5 + $0xc0c] ss:$16 sps:$4 sm:$0xff]  }
 0x389   : > { %5435 = vmatprep.subr.bf16.mxu0 %v7278_v30  ;;  %v7356_v30 = vld [vmem:[%s9924_s5 + $0xc04] ss:$16 sps:$4 sm:$0xff]  }
 0x38b   : > { %5764 = vmatpush1.bf16.msra.mxu1 %v7279_v57  ;;  %v2124_v57 = vpack.c.bf16 %v2077_v2, %v2077_v2  ;;  %v7428_v2 = vld [vmem:[%s9924_s5 + $0xd84] ss:$16 sps:$4 sm:$0xff]  }
 0x38c   : > { %5436 = vmatpush1.bf16.msra.mxu0 %v7276_v56  ;;  %5765 = vmatprep.subr.bf16.mxu1 %v7287_v59  ;;  %v2089_v56 = vrot.slane %v9094_v42, %v8176_v14  ;;  %v7357_v59 = vld [vmem:[%s9924_s5 + $0xc08] ss:$16 sps:$4 sm:$0xff]   ;;  %v7365_v14 = vld [vmem:[%s9924_s5 + $0xc2c] ss:$16 sps:$4 sm:$0xff]  }
 0x38d   : > { %5437 = vmatprep.subr.bf16.mxu0 %v7284_v58  ;;  %v7354_v58 = vld [vmem:[%s9924_s5 + $0xc00] ss:$16 sps:$4 sm:$0xff]  }
 0x38f   : > { %5766 = vmatpush1.bf16.msra.mxu1 %v7285_v61  ;;  %v2127_v61 = vpack.c.bf16 %v2089_v56, %v2089_v56  ;;  %v7437_v56 = vld [vmem:[%s9924_s5 + $0xdac] ss:$16 sps:$4 sm:$0xff]  }
 0x390   : > { %5438 = vmatpush1.bf16.msra.mxu0 %v7282_v60  ;;  %5767 = vmatprep.subr.bf16.mxu1 %v7293_v38  ;;  %v7362_v60 = vld [vmem:[%s9924_s5 + $0xc24] ss:$16 sps:$4 sm:$0xff]   ;;  %v7363_v38 = vld [vmem:[%s9924_s5 + $0xc28] ss:$16 sps:$4 sm:$0xff]  }
 0x391   : > { %5439 = vmatprep.subr.bf16.mxu0 %v7290_v62  ;;  %v7360_v62 = vld [vmem:[%s9924_s5 + $0xc20] ss:$16 sps:$4 sm:$0xff]  }
 0x393   : > { %5768 = vmatpush1.bf16.msra.mxu1 %v7291_v1  ;;  %v7371_v1 = vld [vmem:[%s9924_s5 + $0xc4c] ss:$16 sps:$4 sm:$0xff]  }
 0x394   : > { %5440 = vmatpush1.bf16.msra.mxu0 %v7288_v0  ;;  %5769 = vmatprep.subr.bf16.mxu1 %v7299_v4  ;;  %v7368_v0 = vld [vmem:[%s9924_s5 + $0xc44] ss:$16 sps:$4 sm:$0xff]   ;;  %v7369_v4 = vld [vmem:[%s9924_s5 + $0xc48] ss:$16 sps:$4 sm:$0xff]  }
 0x395   : > { %5441 = vmatprep.subr.bf16.mxu0 %v7296_v3  ;;  %v7366_v3 = vld [vmem:[%s9924_s5 + $0xc40] ss:$16 sps:$4 sm:$0xff]  }
 0x397   : > { %5770 = vmatpush1.bf16.msra.mxu1 %v7297_v7  ;;  %v7377_v7 = vld [vmem:[%s9924_s5 + $0xc6c] ss:$16 sps:$4 sm:$0xff]  }
 0x398   : > { %5442 = vmatpush1.bf16.msra.mxu0 %v7294_v6  ;;  %5771 = vmatprep.subr.bf16.mxu1 %v7305_v28  ;;  %v7374_v6 = vld [vmem:[%s9924_s5 + $0xc64] ss:$16 sps:$4 sm:$0xff]   ;;  %v7375_v28 = vld [vmem:[%s9924_s5 + $0xc68] ss:$16 sps:$4 sm:$0xff]  }
 0x399   : > { %5443 = vmatprep.subr.bf16.mxu0 %v7302_v8  ;;  %v7372_v8 = vld [vmem:[%s9924_s5 + $0xc60] ss:$16 sps:$4 sm:$0xff]  }
 0x39b   : > { %5772 = vmatpush1.bf16.msra.mxu1 %v7303_v44  ;;  %v7383_v44 = vld [vmem:[%s9924_s5 + $0xc8c] ss:$16 sps:$4 sm:$0xff]  }
 0x39c   : > { %5444 = vmatpush1.bf16.msra.mxu0 %v7300_v35  ;;  %5773 = vmatprep.subr.bf16.mxu1 %v7311_v45  ;;  %v7380_v35 = vld [vmem:[%s9924_s5 + $0xc84] ss:$16 sps:$4 sm:$0xff]   ;;  %v7381_v45 = vld [vmem:[%s9924_s5 + $0xc88] ss:$16 sps:$4 sm:$0xff]  }
 0x39d   : > { %5445 = vmatprep.subr.bf16.mxu0 %v7308_v43  ;;  %v7378_v43 = vld [vmem:[%s9924_s5 + $0xc80] ss:$16 sps:$4 sm:$0xff]  }
 0x39f   : > { %5774 = vmatpush1.bf16.msra.mxu1 %v7309_v37  ;;  %v7389_v37 = vld [vmem:[%s9924_s5 + $0xcac] ss:$16 sps:$4 sm:$0xff]  }
 0x3a0   : > { %5446 = vmatpush1.bf16.msra.mxu0 %v7306_v36  ;;  %5775 = vmatprep.subr.bf16.mxu1 %v7317_v46  ;;  %v7386_v36 = vld [vmem:[%s9924_s5 + $0xca4] ss:$16 sps:$4 sm:$0xff]   ;;  %v7387_v46 = vld [vmem:[%s9924_s5 + $0xca8] ss:$16 sps:$4 sm:$0xff]  }
 0x3a1   : > { %5447 = vmatprep.subr.bf16.mxu0 %v7314_v63  ;;  %v7384_v63 = vld [vmem:[%s9924_s5 + $0xca0] ss:$16 sps:$4 sm:$0xff]  }
 0x3a3   : > { %5776 = vmatpush1.bf16.msra.mxu1 %v7315_v23  ;;  %v7395_v23 = vld [vmem:[%s9924_s5 + $0xccc] ss:$16 sps:$4 sm:$0xff]  }
 0x3a4   : > { %5448 = vmatpush1.bf16.msra.mxu0 %v7312_v22  ;;  %5777 = vmatprep.subr.bf16.mxu1 %v7323_v9  ;;  %v7392_v22 = vld [vmem:[%s9924_s5 + $0xcc4] ss:$16 sps:$4 sm:$0xff]   ;;  %v7393_v9 = vld [vmem:[%s9924_s5 + $0xcc8] ss:$16 sps:$4 sm:$0xff]  }
 0x3a5   : > { %5449 = vmatprep.subr.bf16.mxu0 %v7320_v41  ;;  %v7390_v41 = vld [vmem:[%s9924_s5 + $0xcc0] ss:$16 sps:$4 sm:$0xff]  }
 0x3a7   : > { %5778 = vmatpush1.bf16.msra.mxu1 %v7321_v21  ;;  %v7401_v21 = vld [vmem:[%s9924_s5 + $0xcec] ss:$16 sps:$4 sm:$0xff]  }
 0x3a8   : > { %5450 = vmatpush1.bf16.msra.mxu0 %v7318_v12  ;;  %5779 = vmatprep.subr.bf16.mxu1 %v7329_v24  ;;  %v7398_v12 = vld [vmem:[%s9924_s5 + $0xce4] ss:$16 sps:$4 sm:$0xff]   ;;  %v7399_v24 = vld [vmem:[%s9924_s5 + $0xce8] ss:$16 sps:$4 sm:$0xff]  }
 0x3a9   : > { %5451 = vmatprep.subr.bf16.mxu0 %v7326_v27  ;;  %v7396_v27 = vld [vmem:[%s9924_s5 + $0xce0] ss:$16 sps:$4 sm:$0xff]  }
 0x3ab   : > { %5780 = vmatpush1.bf16.msra.mxu1 %v7327_v5  ;;  %v7407_v5 = vld [vmem:[%s9924_s5 + $0xd0c] ss:$16 sps:$4 sm:$0xff]  }
 0x3ac   : > { %5452 = vmatpush1.bf16.msra.mxu0 %v7324_v13  ;;  %5781 = vmatprep.subr.bf16.mxu1 %v7335_v17  ;;  %v7404_v13 = vld [vmem:[%s9924_s5 + $0xd04] ss:$16 sps:$4 sm:$0xff]   ;;  %v7405_v17 = vld [vmem:[%s9924_s5 + $0xd08] ss:$16 sps:$4 sm:$0xff]  }
 0x3ad   : > { %5453 = vmatprep.subr.bf16.mxu0 %v7332_v25  ;;  %v7402_v25 = vld [vmem:[%s9924_s5 + $0xd00] ss:$16 sps:$4 sm:$0xff]  }
 0x3af   : > { %5782 = vmatpush1.bf16.msra.mxu1 %v7333_v20  ;;  %v7413_v20 = vld [vmem:[%s9924_s5 + $0xd2c] ss:$16 sps:$4 sm:$0xff]  }
 0x3b0   : > { %5454 = vmatpush1.bf16.msra.mxu0 %v7330_v19  ;;  %5783 = vmatprep.subr.bf16.mxu1 %v7341_v39  ;;  %v7410_v19 = vld [vmem:[%s9924_s5 + $0xd24] ss:$16 sps:$4 sm:$0xff]   ;;  %v7411_v39 = vld [vmem:[%s9924_s5 + $0xd28] ss:$16 sps:$4 sm:$0xff]  }
 0x3b1   : > { %5455 = vmatprep.subr.bf16.mxu0 %v7338_v31  ;;  %v7408_v31 = vld [vmem:[%s9924_s5 + $0xd20] ss:$16 sps:$4 sm:$0xff]  }
 0x3b3   : > { %5784 = vmatpush1.bf16.msra.mxu1 %v7339_v47  ;;  %v7419_v47 = vld [vmem:[%s9924_s5 + $0xd4c] ss:$16 sps:$4 sm:$0xff]  }
 0x3b4   : > { %5456 = vmatpush1.bf16.msra.mxu0 %v7336_v40  ;;  %5785 = vmatprep.subr.bf16.mxu1 %v7347_v50  ;;  %v7416_v40 = vld [vmem:[%s9924_s5 + $0xd44] ss:$16 sps:$4 sm:$0xff]   ;;  %v7417_v50 = vld [vmem:[%s9924_s5 + $0xd48] ss:$16 sps:$4 sm:$0xff]  }
 0x3b5   : > { %5457 = vmatprep.subr.bf16.mxu0 %v7344_v48  ;;  %v7414_v48 = vld [vmem:[%s9924_s5 + $0xd40] ss:$16 sps:$4 sm:$0xff]  }
 0x3b7   : > { %5786 = vmatpush1.bf16.msra.mxu1 %v7345_v52  ;;  %v7425_v52 = vld [vmem:[%s9924_s5 + $0xd6c] ss:$16 sps:$4 sm:$0xff]  }
 0x3b8   : > { %5458 = vmatpush1.bf16.msra.mxu0 %v7342_v51  ;;  %5787 = vmatprep.subr.bf16.mxu1 %v7353_v54  ;;  %v7422_v51 = vld [vmem:[%s9924_s5 + $0xd64] ss:$16 sps:$4 sm:$0xff]   ;;  %v7423_v54 = vld [vmem:[%s9924_s5 + $0xd68] ss:$16 sps:$4 sm:$0xff]  }
 0x3b9   : > { %5459 = vmatprep.subr.bf16.mxu0 %v7350_v53  ;;  %v7420_v53 = vld [vmem:[%s9924_s5 + $0xd60] ss:$16 sps:$4 sm:$0xff]  }
 0x3bb   : > { %5788 = vmatpush1.bf16.msra.mxu1 %v7351_v26  ;;  %v7426_v26 = vld [vmem:[%s9924_s5 + $0xd80] ss:$16 sps:$4 sm:$0xff]  }
 0x3bc   : > { %5460 = vmatpush1.bf16.msra.mxu0 %v7348_v55  ;;  %5798 = vmatprep.subr.bf16.mxu1 %v7359_v34  ;;  %v7431_v55 = vld [vmem:[%s9924_s5 + $0xd8c] ss:$16 sps:$4 sm:$0xff]   ;;  %v7434_v34 = vld [vmem:[%s9924_s5 + $0xda4] ss:$16 sps:$4 sm:$0xff]  }
 0x3bd   : > { %5470 = vmatprep.subr.bf16.mxu0 %v7356_v30  ;;  %v7429_v30 = vld [vmem:[%s9924_s5 + $0xd88] ss:$16 sps:$4 sm:$0xff]  }
 0x3be   : > { %5790 = vmatmul.mubr.bf16.vlgmr.msra.gmra.mrb[0].mxu1 %v2124_v57 }
 0x3bf   : > { %5462 = vmatmul.mubr.bf16.vlgmr.msra.gmra.mrb[0].mxu0 %v2124_v57  ;;  %5799 = vmatpush1.bf16.msra.mxu1 %v7357_v59  ;;  %v7432_v57 = vld [vmem:[%s9924_s5 + $0xda0] ss:$16 sps:$4 sm:$0xff]   ;;  %v7440_v59 = vld [vmem:[%s9924_s5 + $0xdc4] ss:$16 sps:$4 sm:$0xff]  }
 0x3c0   : > { %5471 = vmatpush1.bf16.msra.mxu0 %v7354_v58  ;;  %5800 = vmatprep.subr.bf16.mxu1 %v7365_v14  ;;  %v7435_v58 = vld [vmem:[%s9924_s5 + $0xda8] ss:$16 sps:$4 sm:$0xff]   ;;  %v7438_v14 = vld [vmem:[%s9924_s5 + $0xdc0] ss:$16 sps:$4 sm:$0xff]  }
 0x3c1   : > { %5472 = vmatprep.subr.bf16.mxu0 %v7362_v60  ;;  %5502 = vmatprep.mubr.bf16.mxu0 %v2127_v61  ;;  %v7443_v60 = vld [vmem:[%s9924_s5 + $0xdcc] ss:$16 sps:$4 sm:$0xff]  }
 0x3c2   : > { %5830 = vmatprep.mubr.bf16.mxu1 %v2127_v61  ;;  %v7441_v61 = vld [vmem:[%s9924_s5 + $0xdc8] ss:$16 sps:$4 sm:$0xff]  }
 0x3c3   : > { %5801 = vmatpush1.bf16.msra.mxu1 %v7363_v38  ;;  %v7449_v38 = vld [vmem:[%s9924_s5 + $0xdec] ss:$16 sps:$4 sm:$0xff]  }
 0x3c4   : > { %5473 = vmatpush1.bf16.msra.mxu0 %v7360_v62  ;;  %5802 = vmatprep.subr.bf16.mxu1 %v7371_v1  ;;  %v7446_v62 = vld [vmem:[%s9924_s5 + $0xde4] ss:$16 sps:$4 sm:$0xff]   ;;  %v7444_v1 = vld [vmem:[%s9924_s5 + $0xde0] ss:$16 sps:$4 sm:$0xff]  }
 0x3c5   : > { %5474 = vmatprep.subr.bf16.mxu0 %v7368_v0  ;;  %v2085_v0 = vrot.slane %v9094_v42, %v8170_v10  ;;  %v7455_v10 = vld [vmem:[%s9924_s5 + $0xe0c] ss:$16 sps:$4 sm:$0xff]  }
 0x3c7   : > { %5803 = vmatpush1.bf16.msra.mxu1 %v7369_v4  ;;  %v7452_v4 = vld [vmem:[%s9924_s5 + $0xe04] ss:$16 sps:$4 sm:$0xff]  }
 0x3c8   : > { %5475 = vmatpush1.bf16.msra.mxu0 %v7366_v3  ;;  %5804 = vmatprep.subr.bf16.mxu1 %v7377_v7  ;;  %v7447_v3 = vld [vmem:[%s9924_s5 + $0xde8] ss:$16 sps:$4 sm:$0xff]   ;;  %v2126_v7 = vpack.c.bf16 %v2085_v0, %v2085_v0  ;;  %v7522_v0 = vld [vmem:[%s9924_s5 + $0xf80] ss:$16 sps:$4 sm:$0xff]  }
 0x3c9   : > { %5476 = vmatprep.subr.bf16.mxu0 %v7374_v6  ;;  %v2097_v6 = vrot.slane %v9094_v42, %v8179_v15  ;;  %v7461_v15 = vld [vmem:[%s9924_s5 + $0xe2c] ss:$16 sps:$4 sm:$0xff]  }
 0x3cb   : > { %5805 = vmatpush1.bf16.msra.mxu1 %v7375_v28  ;;  %v7453_v28 = vld [vmem:[%s9924_s5 + $0xe08] ss:$16 sps:$4 sm:$0xff]  }
 0x3cc   : > { %5477 = vmatpush1.bf16.msra.mxu0 %v7372_v8  ;;  %5806 = vmatprep.subr.bf16.mxu1 %v7383_v44  ;;  %v7450_v8 = vld [vmem:[%s9924_s5 + $0xe00] ss:$16 sps:$4 sm:$0xff]   ;;  %v2129_v44 = vpack.c.bf16 %v2097_v6, %v2097_v6  ;;  %v7531_v6 = vld [vmem:[%s9924_s5 + $0xfa8] ss:$16 sps:$4 sm:$0xff]  }
 0x3cd   : > { %5478 = vmatprep.subr.bf16.mxu0 %v7380_v35  ;;  %v7458_v35 = vld [vmem:[%s9924_s5 + $0xe24] ss:$16 sps:$4 sm:$0xff]  }
 0x3cf   : > { %5807 = vmatpush1.bf16.msra.mxu1 %v7381_v45  ;;  %v7459_v45 = vld [vmem:[%s9924_s5 + $0xe28] ss:$16 sps:$4 sm:$0xff]  }
 0x3d0   : > { %5479 = vmatpush1.bf16.msra.mxu0 %v7378_v43  ;;  %5808 = vmatprep.subr.bf16.mxu1 %v7389_v37  ;;  %v7456_v43 = vld [vmem:[%s9924_s5 + $0xe20] ss:$16 sps:$4 sm:$0xff]   ;;  %v7467_v37 = vld [vmem:[%s9924_s5 + $0xe4c] ss:$16 sps:$4 sm:$0xff]  }
 0x3d1   : > { %5480 = vmatprep.subr.bf16.mxu0 %v7386_v36  ;;  %v7464_v36 = vld [vmem:[%s9924_s5 + $0xe44] ss:$16 sps:$4 sm:$0xff]  }
 0x3d3   : > { %5809 = vmatpush1.bf16.msra.mxu1 %v7387_v46  ;;  %v7465_v46 = vld [vmem:[%s9924_s5 + $0xe48] ss:$16 sps:$4 sm:$0xff]  }
 0x3d4   : > { %5481 = vmatpush1.bf16.msra.mxu0 %v7384_v63  ;;  %5810 = vmatprep.subr.bf16.mxu1 %v7395_v23  ;;  %v7462_v63 = vld [vmem:[%s9924_s5 + $0xe40] ss:$16 sps:$4 sm:$0xff]   ;;  %v7473_v23 = vld [vmem:[%s9924_s5 + $0xe6c] ss:$16 sps:$4 sm:$0xff]  }
 0x3d5   : > { %5482 = vmatprep.subr.bf16.mxu0 %v7392_v22  ;;  %v7470_v22 = vld [vmem:[%s9924_s5 + $0xe64] ss:$16 sps:$4 sm:$0xff]  }
 0x3d7   : > { %5811 = vmatpush1.bf16.msra.mxu1 %v7393_v9  ;;  %v7471_v9 = vld [vmem:[%s9924_s5 + $0xe68] ss:$16 sps:$4 sm:$0xff]  }
 0x3d8   : > { %5483 = vmatpush1.bf16.msra.mxu0 %v7390_v41  ;;  %5812 = vmatprep.subr.bf16.mxu1 %v7401_v21  ;;  %v7468_v41 = vld [vmem:[%s9924_s5 + $0xe60] ss:$16 sps:$4 sm:$0xff]   ;;  %v7479_v21 = vld [vmem:[%s9924_s5 + $0xe8c] ss:$16 sps:$4 sm:$0xff]  }
 0x3d9   : > { %5484 = vmatprep.subr.bf16.mxu0 %v7398_v12  ;;  %v7476_v12 = vld [vmem:[%s9924_s5 + $0xe84] ss:$16 sps:$4 sm:$0xff]  }
 0x3db   : > { %5813 = vmatpush1.bf16.msra.mxu1 %v7399_v24  ;;  %v7477_v24 = vld [vmem:[%s9924_s5 + $0xe88] ss:$16 sps:$4 sm:$0xff]  }
 0x3dc   : > { %5485 = vmatpush1.bf16.msra.mxu0 %v7396_v27  ;;  %5814 = vmatprep.subr.bf16.mxu1 %v7407_v5  ;;  %v7474_v27 = vld [vmem:[%s9924_s5 + $0xe80] ss:$16 sps:$4 sm:$0xff]   ;;  %v7485_v5 = vld [vmem:[%s9924_s5 + $0xeac] ss:$16 sps:$4 sm:$0xff]  }
 0x3dd   : > { %5486 = vmatprep.subr.bf16.mxu0 %v7404_v13  ;;  %v7482_v13 = vld [vmem:[%s9924_s5 + $0xea4] ss:$16 sps:$4 sm:$0xff]  }
 0x3df   : > { %5815 = vmatpush1.bf16.msra.mxu1 %v7405_v17  ;;  %v7483_v17 = vld [vmem:[%s9924_s5 + $0xea8] ss:$16 sps:$4 sm:$0xff]  }
 0x3e0   : > { %5487 = vmatpush1.bf16.msra.mxu0 %v7402_v25  ;;  %5816 = vmatprep.subr.bf16.mxu1 %v7413_v20  ;;  %v7480_v25 = vld [vmem:[%s9924_s5 + $0xea0] ss:$16 sps:$4 sm:$0xff]   ;;  %v7491_v20 = vld [vmem:[%s9924_s5 + $0xecc] ss:$16 sps:$4 sm:$0xff]  }
 0x3e1   : > { %5488 = vmatprep.subr.bf16.mxu0 %v7410_v19  ;;  %v7488_v19 = vld [vmem:[%s9924_s5 + $0xec4] ss:$16 sps:$4 sm:$0xff]  }
 0x3e3   : > { %5817 = vmatpush1.bf16.msra.mxu1 %v7411_v39  ;;  %v7489_v39 = vld [vmem:[%s9924_s5 + $0xec8] ss:$16 sps:$4 sm:$0xff]  }
 0x3e4   : > { %5489 = vmatpush1.bf16.msra.mxu0 %v7408_v31  ;;  %5818 = vmatprep.subr.bf16.mxu1 %v7419_v47  ;;  %v7486_v31 = vld [vmem:[%s9924_s5 + $0xec0] ss:$16 sps:$4 sm:$0xff]   ;;  %v7497_v47 = vld [vmem:[%s9924_s5 + $0xeec] ss:$16 sps:$4 sm:$0xff]  }
 0x3e5   : > { %5490 = vmatprep.subr.bf16.mxu0 %v7416_v40  ;;  %v7494_v40 = vld [vmem:[%s9924_s5 + $0xee4] ss:$16 sps:$4 sm:$0xff]  }
 0x3e7   : > { %5819 = vmatpush1.bf16.msra.mxu1 %v7417_v50  ;;  %v7495_v50 = vld [vmem:[%s9924_s5 + $0xee8] ss:$16 sps:$4 sm:$0xff]  }
 0x3e8   : > { %5491 = vmatpush1.bf16.msra.mxu0 %v7414_v48  ;;  %5820 = vmatprep.subr.bf16.mxu1 %v7425_v52  ;;  %v7492_v48 = vld [vmem:[%s9924_s5 + $0xee0] ss:$16 sps:$4 sm:$0xff]   ;;  %v7503_v52 = vld [vmem:[%s9924_s5 + $0xf0c] ss:$16 sps:$4 sm:$0xff]  }
 0x3e9   : > { %5492 = vmatprep.subr.bf16.mxu0 %v7422_v51  ;;  %v7500_v51 = vld [vmem:[%s9924_s5 + $0xf04] ss:$16 sps:$4 sm:$0xff]  }
 0x3eb   : > { %5821 = vmatpush1.bf16.msra.mxu1 %v7423_v54  ;;  %v7501_v54 = vld [vmem:[%s9924_s5 + $0xf08] ss:$16 sps:$4 sm:$0xff]  }
 0x3ec   : > { %5493 = vmatpush1.bf16.msra.mxu0 %v7420_v53  ;;  %5822 = vmatprep.subr.bf16.mxu1 %v7431_v55  ;;  %v7498_v53 = vld [vmem:[%s9924_s5 + $0xf00] ss:$16 sps:$4 sm:$0xff]   ;;  %v7509_v55 = vld [vmem:[%s9924_s5 + $0xf2c] ss:$16 sps:$4 sm:$0xff]  }
 0x3ed   : > { %5494 = vmatprep.subr.bf16.mxu0 %v7428_v2  ;;  %v7506_v2 = vld [vmem:[%s9924_s5 + $0xf24] ss:$16 sps:$4 sm:$0xff]  }
 0x3ef   : > { %5823 = vmatpush1.bf16.msra.mxu1 %v7429_v30  ;;  %v7507_v30 = vld [vmem:[%s9924_s5 + $0xf28] ss:$16 sps:$4 sm:$0xff]  }
 0x3f0   : > { %5495 = vmatpush1.bf16.msra.mxu0 %v7426_v26  ;;  %5824 = vmatprep.subr.bf16.mxu1 %v7437_v56  ;;  %v7504_v26 = vld [vmem:[%s9924_s5 + $0xf20] ss:$16 sps:$4 sm:$0xff]   ;;  %v7515_v56 = vld [vmem:[%s9924_s5 + $0xf4c] ss:$16 sps:$4 sm:$0xff]  }
 0x3f1   : > { %5496 = vmatprep.subr.bf16.mxu0 %v7434_v34  ;;  %v7512_v34 = vld [vmem:[%s9924_s5 + $0xf44] ss:$16 sps:$4 sm:$0xff]  }
 0x3f3   : > { %5825 = vmatpush1.bf16.msra.mxu1 %v7435_v58  ;;  %v7513_v58 = vld [vmem:[%s9924_s5 + $0xf48] ss:$16 sps:$4 sm:$0xff]  }
 0x3f4   : > { %5497 = vmatpush1.bf16.msra.mxu0 %v7432_v57  ;;  %5826 = vmatprep.subr.bf16.mxu1 %v7443_v60  ;;  %v7510_v57 = vld [vmem:[%s9924_s5 + $0xf40] ss:$16 sps:$4 sm:$0xff]   ;;  %v7521_v60 = vld [vmem:[%s9924_s5 + $0xf6c] ss:$16 sps:$4 sm:$0xff]  }
 0x3f5   : > { %5498 = vmatprep.subr.bf16.mxu0 %v7440_v59  ;;  %v7518_v59 = vld [vmem:[%s9924_s5 + $0xf64] ss:$16 sps:$4 sm:$0xff]  }
 0x3f7   : > { %5827 = vmatpush1.bf16.msra.mxu1 %v7441_v61  ;;  %v7519_v61 = vld [vmem:[%s9924_s5 + $0xf68] ss:$16 sps:$4 sm:$0xff]  }
 0x3f8   : > { %5499 = vmatpush1.bf16.msra.mxu0 %v7438_v14  ;;  %5828 = vmatprep.subr.bf16.mxu1 %v7449_v38  ;;  %v7516_v14 = vld [vmem:[%s9924_s5 + $0xf60] ss:$16 sps:$4 sm:$0xff]   ;;  %v7527_v38 = vld [vmem:[%s9924_s5 + $0xf8c] ss:$16 sps:$4 sm:$0xff]  }
 0x3f9   : > { %5500 = vmatprep.subr.bf16.mxu0 %v7446_v62  ;;  %v7524_v62 = vld [vmem:[%s9924_s5 + $0xf84] ss:$16 sps:$4 sm:$0xff]  }
 0x3fb   : > { %5829 = vmatpush1.bf16.msra.mxu1 %v7447_v3  ;;  %v7530_v3 = vld [vmem:[%s9924_s5 + $0xfa4] ss:$16 sps:$4 sm:$0xff]  }
 0x3fc   : > { %5501 = vmatpush1.bf16.msra.mxu0 %v7444_v1  ;;  %5839 = vmatprep.subr.bf16.mxu1 %v7455_v10  ;;  %v7525_v1 = vld [vmem:[%s9924_s5 + $0xf88] ss:$16 sps:$4 sm:$0xff]   ;;  %v7528_v10 = vld [vmem:[%s9924_s5 + $0xfa0] ss:$16 sps:$4 sm:$0xff]  }
 0x3fd   : > { %5511 = vmatprep.subr.bf16.mxu0 %v7452_v4  ;;  %v7533_v4 = vld [vmem:[%s9924_s5 + $0xfac] ss:$16 sps:$4 sm:$0xff]  }
 0x3fe   : > { %5831 = vmatmul.mubr.bf16.vlgmr.msra.gmra.mrb[0].mxu1 %v2126_v7 }
 0x3ff   : > { %5503 = vmatmul.mubr.bf16.vlgmr.msra.gmra.mrb[0].mxu0 %v2126_v7  ;;  %5840 = vmatpush1.bf16.msra.mxu1 %v7453_v28  ;;  %v7536_v7 = vld [vmem:[%s9924_s5 + $0xfc4] ss:$16 sps:$4 sm:$0xff]   ;;  %v7534_v28 = vld [vmem:[%s9924_s5 + $0xfc0] ss:$16 sps:$4 sm:$0xff]  }
 0x400   : > { %5512 = vmatpush1.bf16.msra.mxu0 %v7450_v8  ;;  %5841 = vmatprep.subr.bf16.mxu1 %v7461_v15  ;;  %v7539_v8 = vld [vmem:[%s9924_s5 + $0xfcc] ss:$16 sps:$4 sm:$0xff]   ;;  %v7542_v15 = vld [vmem:[%s9924_s5 + $0xfe4] ss:$16 sps:$4 sm:$0xff]  }
 0x401   : > { %5513 = vmatprep.subr.bf16.mxu0 %v7458_v35  ;;  %5543 = vmatprep.mubr.bf16.mxu0 %v2129_v44  ;;  %v7537_v35 = vld [vmem:[%s9924_s5 + $0xfc8] ss:$16 sps:$4 sm:$0xff]  }
 0x402   : > { %5871 = vmatprep.mubr.bf16.mxu1 %v2129_v44  ;;  %v7545_v44 = vld [vmem:[%s9924_s5 + $0xfec] ss:$16 sps:$4 sm:$0xff]  }
 0x403   : > { %5842 = vmatpush1.bf16.msra.mxu1 %v7459_v45  ;;  %v7540_v45 = vld [vmem:[%s9924_s5 + $0xfe0] ss:$16 sps:$4 sm:$0xff]  }
 0x404   : > { %5514 = vmatpush1.bf16.msra.mxu0 %v7456_v43  ;;  %5843 = vmatprep.subr.bf16.mxu1 %v7467_v37  ;;  %v2093_v43 = vrot.slane %v9094_v42, %v8173_v11  ;;  %v2642_v11 = vld [vmem:[%s9925_s6] sm:$0xf] }
 0x405   : > { %5515 = vmatprep.subr.bf16.mxu0 %v7464_v36  ;;  %v7543_v36 = vld [vmem:[%s9924_s5 + $0xfe8] ss:$16 sps:$4 sm:$0xff]   ;;  %v5207_v42 = vrot.slane %v2642_v11, %v8109_v32 }
 0x406   : > { %v2128_v37 = vpack.c.bf16 %v2093_v43, %v2093_v43 }
 0x407   : > { %5844 = vmatpush1.bf16.msra.mxu1 %v7465_v46  ;;  %v5211_v46 = vrot.slane %v2642_v11, %v8120_v16 }
 0x408   : > { %5516 = vmatpush1.bf16.msra.mxu0 %v7462_v63  ;;  %5845 = vmatprep.subr.bf16.mxu1 %v7473_v23  ;;  %v5215_v63 = vrot.slane %v2642_v11, %v8112_v33 }
 0x409   : > { %5517 = vmatprep.subr.bf16.mxu0 %v7470_v22  ;;  %v5219_v22 = vrot.slane %v2642_v11, %v8123_v49 }
 0x40b   : > { %5846 = vmatpush1.bf16.msra.mxu1 %v7471_v9 }
 0x40c   : > { %5518 = vmatpush1.bf16.msra.mxu0 %v7468_v41  ;;  %5847 = vmatprep.subr.bf16.mxu1 %v7479_v21 }
 0x40d   : > { %5519 = vmatprep.subr.bf16.mxu0 %v7476_v12 }
 0x40f   : > { %5848 = vmatpush1.bf16.msra.mxu1 %v7477_v24 }
 0x410   : > { %5520 = vmatpush1.bf16.msra.mxu0 %v7474_v27  ;;  %5849 = vmatprep.subr.bf16.mxu1 %v7485_v5 }
 0x411   : > { %5521 = vmatprep.subr.bf16.mxu0 %v7482_v13 }
 0x413   : > { %5850 = vmatpush1.bf16.msra.mxu1 %v7483_v17 }
 0x414   : > { %5522 = vmatpush1.bf16.msra.mxu0 %v7480_v25  ;;  %5851 = vmatprep.subr.bf16.mxu1 %v7491_v20 }
 0x415   : > { %5523 = vmatprep.subr.bf16.mxu0 %v7488_v19 }
 0x417   : > { %5852 = vmatpush1.bf16.msra.mxu1 %v7489_v39 }
 0x418   : > { %5524 = vmatpush1.bf16.msra.mxu0 %v7486_v31  ;;  %5853 = vmatprep.subr.bf16.mxu1 %v7497_v47 }
 0x419   : > { %5525 = vmatprep.subr.bf16.mxu0 %v7494_v40 }
 0x41b   : > { %5854 = vmatpush1.bf16.msra.mxu1 %v7495_v50 }
 0x41c   : > { %5526 = vmatpush1.bf16.msra.mxu0 %v7492_v48  ;;  %5855 = vmatprep.subr.bf16.mxu1 %v7503_v52 }
 0x41d   : > { %5527 = vmatprep.subr.bf16.mxu0 %v7500_v51 }
 0x41f   : > { %5856 = vmatpush1.bf16.msra.mxu1 %v7501_v54 }
 0x420   : > { %5528 = vmatpush1.bf16.msra.mxu0 %v7498_v53  ;;  %5857 = vmatprep.subr.bf16.mxu1 %v7509_v55 }
 0x421   : > { %5529 = vmatprep.subr.bf16.mxu0 %v7506_v2 }
 0x423   : > { %5858 = vmatpush1.bf16.msra.mxu1 %v7507_v30 }
 0x424   : > { %5530 = vmatpush1.bf16.msra.mxu0 %v7504_v26  ;;  %5859 = vmatprep.subr.bf16.mxu1 %v7515_v56 }
 0x425   : > { %5531 = vmatprep.subr.bf16.mxu0 %v7512_v34 }
 0x427   : > { %5860 = vmatpush1.bf16.msra.mxu1 %v7513_v58 }
 0x428   : > { %5532 = vmatpush1.bf16.msra.mxu0 %v7510_v57  ;;  %5861 = vmatprep.subr.bf16.mxu1 %v7521_v60 }
 0x429   : > { %5533 = vmatprep.subr.bf16.mxu0 %v7518_v59 }
 0x42b   : > { %5862 = vmatpush1.bf16.msra.mxu1 %v7519_v61 }
 0x42c   : > { %5534 = vmatpush1.bf16.msra.mxu0 %v7516_v14  ;;  %5863 = vmatprep.subr.bf16.mxu1 %v7527_v38 }
 0x42d   : > { %5535 = vmatprep.subr.bf16.mxu0 %v7524_v62 }
 0x42f   : > { %5864 = vmatpush1.bf16.msra.mxu1 %v7525_v1 }
 0x430   : > { %5536 = vmatpush1.bf16.msra.mxu0 %v7522_v0  ;;  %5865 = vmatprep.subr.bf16.mxu1 %v7533_v4 }
 0x431   : > { %5537 = vmatprep.subr.bf16.mxu0 %v7530_v3 }
 0x433   : > { %5866 = vmatpush1.bf16.msra.mxu1 %v7531_v6 }
 0x434   : > { %5538 = vmatpush1.bf16.msra.mxu0 %v7528_v10  ;;  %5867 = vmatprep.subr.bf16.mxu1 %v7539_v8 }
 0x435   : > { %5539 = vmatprep.subr.bf16.mxu0 %v7536_v7 }
 0x437   : > { %5868 = vmatpush1.bf16.msra.mxu1 %v7537_v35 }
 0x438   : > { %5540 = vmatpush1.bf16.msra.mxu0 %v7534_v28  ;;  %5869 = vmatprep.subr.bf16.mxu1 %v7545_v44 }
 0x439   : > { %5541 = vmatprep.subr.bf16.mxu0 %v7542_v15 }
 0x43b   : > { %5870 = vmatpush1.bf16.msra.mxu1 %v7543_v36 }
 0x43c   : > { %5542 = vmatpush1.bf16.msra.mxu0 %v7540_v45 }
 0x43e   : > { %5872 = vmatmul.mubr.bf16.vlgmr.msra.gmra.mrb[0].mxu1 %v2128_v37 }
 0x43f   : > { %5544 = vmatmul.mubr.bf16.vlgmr.msra.gmra.mrb[0].mxu0 %v2128_v37 }
 0x511   : > { %v5873_v41 = vpop.f32.mrb[0].mxu1 }
 0x512   : > { %v5545_v23 = vpop.f32.mrb[0].mxu0  ;;  %v6674_v12 = vadd.f32 %v5873_v41, %v5215_v63  ;;  %v5875_v27 = vpop.f32.mrb[1].mxu1 }
 0x513   : > { %v6672_v9 = vadd.f32 %v5545_v23, %v5207_v42  ;;  %v5547_v21 = vpop.f32.mrb[1].mxu0  ;;  %v6675_v13 = vadd.f32 %v5875_v27, %v5219_v22  ;;  %v5877_v25 = vpop.f32.mrb[2].mxu1 }
 0x514   : > { %v6673_v24 = vadd.f32 %v5547_v21, %v5211_v46  ;;  %v5549_v5 = vpop.f32.mrb[2].mxu0  ;;  %v5878_v32 = vpop.f32.mrb[3].mxu1  ;;  %v5882_v20 = vmul.f32 %v6674_v12, %v6674_v12 }
 0x515   : > { %v5880_v17 = vmul.f32 %v6672_v9, %v6672_v9  ;;  %v5550_v19 = vpop.f32.mrb[3].mxu0  ;;  %v5883_v31 = vmul.f32 %v6675_v13, %v6675_v13 }
 0x516   : > { %v5881_v33 = vmul.f32 %v6673_v24, %v6673_v24  ;;  %v5888_v40 = vsel %vm5884_vm4, %v5882_v20, 0.0 }
 0x517   : > { %v5885_v16 = vsel %vm5884_vm4, %v5880_v17, 0.0  ;;  %v5890_v48 = vsel %vm5884_vm4, %v5883_v31, 0.0 }
 0x518   : > { %v5886_v49 = vsel %vm5884_vm4, %v5881_v33, 0.0 }
 0x519   : > { %v5887_v39 = vadd.f32 %v5886_v49, %v5885_v16 }
 0x51b   : > { %v5889_v47 = vadd.f32 %v5888_v40, %v5887_v39 }
 0x51d   : > { %v5891_v50 = vadd.f32 %v5890_v48, %v5889_v47 }
 0x51f   : > { %5892 = vadd.xlane.f32.xlu0 %v5891_v50 }
 0x5ac   : > { %v5893_v51 = vpop.xlane.xlu0 %5892 }
 0x5ad   : > { %v5894_v52 = vmax.f32 %v5893_v51, 1e-24 }
 0x5af   : > { %7546 = vrsqrt.f32 %v5894_v52 }
 0x5b9   : > { %v7547_v53 = vpop.eup %7546 }
 0x5ba   : > { %v5896_v54 = vmul.f32 %v7547_v53, %v6672_v9  ;;  %v5897_v2 = vmul.f32 %v7547_v53, %v6673_v24  ;;  %v5898_v55 = vmul.f32 %v7547_v53, %v6674_v12  ;;  %v5899_v26 = vmul.f32 %v7547_v53, %v6675_v13 }
 0x5bc   : > { %v5904_v30 = vcombine.low %v5896_v54, %v5897_v2  ;;  %v5905_v34 = vcombine.low %v5898_v55, %v5899_v26 }
 0x5be   : > { %v5912_v56 = vrot.slane %v5904_v30, %v8182_v18  ;;  %v5919_v57 = vrot.slane %v5905_v34, %v8182_v18 }
 0x5c0   : > { %v5920_v58 = vcombine.low %v5912_v56, %v5919_v57 }
 0x5c2   : > { %v5927_v59 = vrot.slane %v5920_v58, %v8182_v18 }
 0x5c4   : > { %5933 = vst.msk [vmem:[%s7667_s13] sm:$0xf] %vm5931_vm5, %v5927_v59 }
 0x5c5 PF: > { %s17_s28 = sadd.s32 1, %s7586_s28   ;;  %s9927_s24 = smov %s7578_s26 }
 0x5c6   : > { %p14_p9 = scmp.ge.s32.totalorder %s17_s28, 8   ;;  %s9928_s25 = smov %s7582_s27 }
 0x5c7   : > { %s9929_s26 = smov %s9932_s29  ;;  %s9930_s27 = smov %s9936_s30 }
 0x5c8   :  { %16 = sbr.rel (!%p14_p9) target bundleno = 3 (0x3), region = 86 }

</bundles_post_ra>
